<compile_context>
chip_gen: v5e
topology: v5e:2x2
jax: 0.10.0
libtpu: 0.0.40
codegen_flags: <defaults>
</compile_context>

<pallas_src>
import functools

import jax
import jax.numpy as jnp
from jax.experimental import pallas as pl
from jax.experimental.pallas import tpu as pltpu


# ----------------------------- in-kernel math (f32) -----------------------------

def _layernorm(x, gamma, beta, eps=1e-5):
    # PyTorch LayerNorm: biased variance, eps inside the sqrt.
    mu = jnp.mean(x, axis=-1, keepdims=True)
    var = jnp.mean(jnp.square(x - mu), axis=-1, keepdims=True)
    return (x - mu) * jax.lax.rsqrt(var + eps) * gamma + beta


def _erf(x):
    # Abramowitz & Stegun 7.1.26 rational approximation (|err| < 1.5e-7).
    # TODO(synk): torch.nn.GELU() uses exact erf; this matches it to ~1e-7.
    # (tanh-GELU would offload to the EUP on v6e/v7x if VALU-bound.)
    a1, a2, a3, a4, a5 = (0.254829592, -0.284496736, 1.421413741,
                          -1.453152027, 1.061405429)
    p = 0.3275911
    sign = jnp.where(x >= 0.0, 1.0, -1.0)
    ax = jnp.abs(x)
    t = 1.0 / (1.0 + p * ax)
    poly = ((((a5 * t + a4) * t + a3) * t + a2) * t + a1) * t
    return sign * (1.0 - poly * jnp.exp(-ax * ax))


def _gelu(x):
    return 0.5 * x * (1.0 + _erf(x * 0.7071067811865476))


# ----------------------------- the fused ViT kernel -----------------------------

def _vit_kernel(patches_ref, tokbase_ref, pw_ref, pb_ref,
                ln1g_ref, ln1b_ref, wqkv_ref, bqkv_ref, wpj_ref, bpj_ref,
                ln2g_ref, ln2b_ref, w1_ref, b1_ref, w2_ref, b2_ref,
                nrmg_ref, nrmb_ref, hw_ref, hb_ref,
                o_ref,
                *, depth, batch, n_heads, head_dim, n_patches, n_valid, n_pad):
    f32, bf16 = jnp.float32, jnp.bfloat16
    inner = n_heads * head_dim
    m_tok = batch * n_pad

    # ---- patch embedding: (B*Np, C*p*p) @ (C*p*p, D), bf16 MXU, f32 acc ----
    emb = jnp.dot(patches_ref[...], pw_ref[...],
                  preferred_element_type=f32) + pb_ref[...]          # (B*Np, D) f32
    d_model = emb.shape[-1]

    # ---- padded token stream (B*Npad, D) -------------------------------------
    # Per-batch block: rows [0, Np) = patch tokens, row Np = cls token, rows
    # [Np+1, Npad) = padding.  Attention is permutation-invariant so cls-last is
    # fine; tokbase (Npad, D) carries pos-embeddings + cls and broadcasts over B.
    emb3 = emb.reshape(batch, n_patches, d_model)                    # (B, Np, D)
    zpad = jnp.zeros((batch, n_pad - n_patches, d_model), f32)
    x = (jnp.concatenate([emb3, zpad], axis=1)
         + tokbase_ref[...]).reshape(m_tok, d_model)                 # (M, D) f32

    # Key-validity mask: padded key columns never receive attention weight.
    key_ids = jax.lax.broadcasted_iota(jnp.int32, (n_pad, n_pad), 1)
    key_mask = (key_ids < n_valid)[None, :, :]                       # (1, Npad, Npad)

    dn_scores = (((2,), (2,)), ((0,), (0,)))   # [g,n,d] x [g,m,d] -> [g,n,m]
    dn_pv     = (((2,), (1,)), ((0,), (0,)))   # [g,n,m] x [g,m,d] -> [g,n,d]

    def split_heads(t):
        # (M, inner) bf16 -> (H*B, Npad, hd): lane slices + leading-axis stack,
        # then a tile-compatible split of M into (B, Npad).
        parts = [t[:, h * head_dim:(h + 1) * head_dim] for h in range(n_heads)]
        return jnp.stack(parts, axis=0).reshape(n_heads * batch, n_pad, head_dim)

    for l in range(depth):                # static unroll (weights resident in VMEM)
        # ---------------- multi-head self-attention ----------------
        xn = _layernorm(x, ln1g_ref[l], ln1b_ref[l]).astype(bf16)
        # single lane-dense QKV matmul; scale already folded into W_q / b_q
        qkv = jnp.dot(xn, wqkv_ref[l], preferred_element_type=f32) + bqkv_ref[l]
        qkv16 = qkv.astype(bf16)                                     # (M, 3*inner)
        qh = split_heads(qkv16[:, 0:inner])                          # (H*B, Npad, hd)
        kh = split_heads(qkv16[:, inner:2 * inner])
        vh = split_heads(qkv16[:, 2 * inner:3 * inner])

        dots = jax.lax.dot_general(qh, kh, dn_scores,
                                   preferred_element_type=f32)       # (H*B, Npad, Npad)
        dots = jnp.where(key_mask, dots, -1e30)
        mx = jnp.max(dots, axis=-1, keepdims=True)
        e = jnp.exp(dots - mx)
        p = e * pl.reciprocal(jnp.sum(e, axis=-1, keepdims=True), approx=True)
        pv = jax.lax.dot_general(p.astype(bf16), vh, dn_pv,
                                 preferred_element_type=f32)         # (H*B, Npad, hd)

        # merge heads back to (M, inner) and run ONE full-K output projection
        pv16 = pv.astype(bf16)
        merged = jnp.concatenate(
            [pv16[h * batch:(h + 1) * batch] for h in range(n_heads)],
            axis=-1)                                                 # (B, Npad, inner)
        attn_flat = merged.reshape(m_tok, inner)
        x = x + jnp.dot(attn_flat, wpj_ref[l],
                        preferred_element_type=f32) + bpj_ref[l]     # residual 1

        # ---------------- MLP ----------------
        xn2 = _layernorm(x, ln2g_ref[l], ln2b_ref[l]).astype(bf16)
        h1 = jnp.dot(xn2, w1_ref[l], preferred_element_type=f32) + b1_ref[l]
        h1 = _gelu(h1)
        x = x + jnp.dot(h1.astype(bf16), w2_ref[l],
                        preferred_element_type=f32) + b2_ref[l]      # residual 2

    # ---- final LayerNorm + classification head on the cls tokens ----
    cls_rows = jnp.concatenate(
        [x[b * n_pad + n_patches: b * n_pad + n_patches + 1, :]
         for b in range(batch)], axis=0)                             # (B, D)
    cn = _layernorm(cls_rows, nrmg_ref[...], nrmb_ref[...])
    logits = jnp.dot(cn.astype(bf16), hw_ref[...],
                     preferred_element_type=f32) + hb_ref[...]
    o_ref[...] = logits.astype(o_ref.dtype)


# ----------------------------- pallas_call wrapper -----------------------------

_VMEM = pl.BlockSpec(memory_space=pltpu.MemorySpace.VMEM)


def vit_forward(x, params, *, patch, n_heads, head_dim):
    B, C, H, W = x.shape
    p = patch
    nh, nw = H // p, W // p
    n_patches = nh * nw
    n_valid = n_patches + 1
    # Sublane-only padding of the token axis (16 covers bf16 sublane packing);
    # only lane (last) dims need 128-alignment and those are weight dims here.
    n_pad = ((n_valid + 15) // 16) * 16
    D = params["pw"].shape[1]
    num_classes = params["hw"].shape[1]
    depth = params["wqkv"].shape[0]

    # Patch extraction (plain-JAX glue): (B,C,H,W) -> (B*Np, C*p*p), features
    # flattened (c, ph, pw) to match Conv2d weight flattening; spatial order
    # matches rearrange('b d nw nh -> b (nw nh) d') on the conv output.
    xp = x.reshape(B, C, nh, p, nw, p)
    xp = xp.transpose(0, 2, 4, 1, 3, 5).reshape(B * n_patches, C * p * p)
    xp = xp.astype(jnp.bfloat16)          # host-side cast: halves the largest DMA

    # Token base (Npad, D): pos-embeddings for patch rows, (cls + pos[0]) at the
    # cls row, zeros at padded rows.  Broadcast over the batch inside the kernel.
    tok_base = jnp.concatenate(
        [params["pos_patch"], params["cls_pos"][None, :],
         jnp.zeros((n_pad - n_valid, D), jnp.float32)], axis=0)      # (Npad, D)

    kernel = functools.partial(
        _vit_kernel, depth=depth, batch=B, n_heads=n_heads, head_dim=head_dim,
        n_patches=n_patches, n_valid=n_valid, n_pad=n_pad)

    args = (xp, tok_base, params["pw"], params["pb"],
            params["ln1g"], params["ln1b"], params["wqkv"], params["bqkv"],
            params["wpj"], params["bpj"], params["ln2g"], params["ln2b"],
            params["w1"], params["b1"], params["w2"], params["b2"],
            params["nrmg"], params["nrmb"], params["hw"], params["hb"])

    return pl.pallas_call(
        kernel,
        out_shape=jax.ShapeDtypeStruct((B, num_classes), jnp.float32),
        in_specs=[_VMEM] * len(args),
        out_specs=_VMEM,
        compiler_params=pltpu.CompilerParams(
            vmem_limit_bytes=32 * 1024 * 1024),   # raise further when scaling D/depth
    )(*args)


# ----------------------------- parameters -----------------------------

def init_params(key, *, c_in, patch, dim, depth, n_heads, head_dim, mlp_dim,
                num_patches, num_classes):
    """PyTorch-layout float32 parameters (matmul-oriented: W is (in, out))."""
    inner = n_heads * head_dim

    def nrm(k, shape, scale=0.02):
        return scale * jax.random.normal(k, shape, jnp.float32)

    keys = jax.random.split(key, 4 + depth)
    params = {
        "patch_w": nrm(keys[0], (c_in * patch * patch, dim)),
        "patch_b": jnp.zeros((dim,), jnp.float32),
        "cls_token": nrm(keys[1], (1, 1, dim), 1.0),
        "pos_embed": nrm(keys[2], (1, num_patches + 1, dim), 1.0),
        "norm_g": jnp.ones((dim,), jnp.float32),
        "norm_b": jnp.zeros((dim,), jnp.float32),
        "head_w": nrm(keys[3], (dim, num_classes)),
        "head_b": jnp.zeros((num_classes,), jnp.float32),
        "blocks": [],
    }
    for i in range(depth):
        bk = jax.random.split(keys[4 + i], 4)
        params["blocks"].append(dict(
            ln1_g=jnp.ones((dim,), jnp.float32),
            ln1_b=jnp.zeros((dim,), jnp.float32),
            w_qkv=nrm(bk[0], (dim, 3 * inner)),
            b_qkv=jnp.zeros((3 * inner,), jnp.float32),
            w_proj=nrm(bk[1], (inner, dim)),
            b_proj=jnp.zeros((dim,), jnp.float32),
            ln2_g=jnp.ones((dim,), jnp.float32),
            ln2_b=jnp.zeros((dim,), jnp.float32),
            w1=nrm(bk[2], (dim, mlp_dim)),
            b1=jnp.zeros((mlp_dim,), jnp.float32),
            w2=nrm(bk[3], (mlp_dim, dim)),
            b2=jnp.zeros((dim,), jnp.float32),
        ))
    return params


def prepare_params(params, *, n_heads, head_dim):
    """One-time host-side conversion to the kernel layout: attention scale
       folded into W_q / b_q, per-layer tensors stacked along a leading depth
       axis, matmul weights cast to bfloat16 (f32 accumulation in-kernel).
       QKV / proj weights keep their natural 2D (in, out) matmul layout."""
    bf16, f32 = jnp.bfloat16, jnp.float32
    dim = params["patch_w"].shape[1]
    inner = n_heads * head_dim
    scale = float(head_dim) ** -0.5

    wqkv, bqkv, wpj, bpj = [], [], [], []
    ln1g, ln1b, ln2g, ln2b = [], [], [], []
    w1, b1, w2, b2 = [], [], [], []
    for blk in params["blocks"]:
        wq = blk["w_qkv"][:, :inner] * scale          # fold softmax scale into Q
        bq = blk["b_qkv"][:inner] * scale
        wqkv.append(jnp.concatenate([wq, blk["w_qkv"][:, inner:]], axis=1))
        bqkv.append(jnp.concatenate([bq, blk["b_qkv"][inner:]], axis=0)
                    .reshape(1, 3 * inner))
        wpj.append(blk["w_proj"])                     # (inner, D), rows (h, hd)-ordered
        bpj.append(blk["b_proj"].reshape(1, dim))
        ln1g.append(blk["ln1_g"].reshape(1, dim))
        ln1b.append(blk["ln1_b"].reshape(1, dim))
        ln2g.append(blk["ln2_g"].reshape(1, dim))
        ln2b.append(blk["ln2_b"].reshape(1, dim))
        w1.append(blk["w1"])
        b1.append(blk["b1"].reshape(1, -1))
        w2.append(blk["w2"])
        b2.append(blk["b2"].reshape(1, dim))

    stk = lambda xs, dt: jnp.stack(xs, 0).astype(dt)
    return {
        "pw": params["patch_w"].astype(bf16),
        "pb": params["patch_b"].reshape(1, dim).astype(f32),
        "pos_patch": params["pos_embed"][0, 1:, :].astype(f32),
        "cls_pos": (params["cls_token"][0, 0] + params["pos_embed"][0, 0]).astype(f32),
        "ln1g": stk(ln1g, f32), "ln1b": stk(ln1b, f32),
        "wqkv": stk(wqkv, bf16), "bqkv": stk(bqkv, f32),
        "wpj": stk(wpj, bf16), "bpj": stk(bpj, f32),
        "ln2g": stk(ln2g, f32), "ln2b": stk(ln2b, f32),
        "w1": stk(w1, bf16), "b1": stk(b1, f32),
        "w2": stk(w2, bf16), "b2": stk(b2, f32),
        "nrmg": params["norm_g"].reshape(1, dim).astype(f32),
        "nrmb": params["norm_b"].reshape(1, dim).astype(f32),
        "hw": params["head_w"].astype(bf16),
        "hb": params["head_b"].reshape(1, -1).astype(f32),
    }


# ----------------------------- main -----------------------------

if __name__ == "__main__":
    IMG, PATCH, C_IN = 16, 4, 3
    DIM, DEPTH, N_HEADS, HEAD_DIM, MLP_DIM, NUM_CLASSES = 32, 2, 2, 16, 64, 10
    B = 2
    NUM_PATCHES = (IMG // PATCH) * (IMG // PATCH)

    key = jax.random.PRNGKey(0)
    kx, kp = jax.random.split(key)
    x = jax.random.normal(kx, (B, C_IN, IMG, IMG), jnp.float32)

    torch_layout = init_params(
        kp, c_in=C_IN, patch=PATCH, dim=DIM, depth=DEPTH, n_heads=N_HEADS,
        head_dim=HEAD_DIM, mlp_dim=MLP_DIM, num_patches=NUM_PATCHES,
        num_classes=NUM_CLASSES)
    kparams = prepare_params(torch_layout, n_heads=N_HEADS, head_dim=HEAD_DIM)

    fwd = jax.jit(functools.partial(
        vit_forward, patch=PATCH, n_heads=N_HEADS, head_dim=HEAD_DIM))
    logits = fwd(x, kparams)
    jax.block_until_ready(logits)
    assert logits.shape == (B, NUM_CLASSES), logits.shape
    assert bool(jnp.all(jnp.isfinite(logits)))
    print("KERNEL_OK")
</pallas_src>

<mosaic_0001>
module attributes {stable_mosaic.version = 11 : i64} {
  func.func @_vit_kernel(%arg0: memref<32x48xbf16, #tpu.memory_space<vmem>>, %arg1: memref<32x32xf32, #tpu.memory_space<vmem>>, %arg2: memref<48x32xbf16, #tpu.memory_space<vmem>>, %arg3: memref<1x32xf32, #tpu.memory_space<vmem>>, %arg4: memref<2x1x32xf32, #tpu.memory_space<vmem>>, %arg5: memref<2x1x32xf32, #tpu.memory_space<vmem>>, %arg6: memref<2x32x96xbf16, #tpu.memory_space<vmem>>, %arg7: memref<2x1x96xf32, #tpu.memory_space<vmem>>, %arg8: memref<2x32x32xbf16, #tpu.memory_space<vmem>>, %arg9: memref<2x1x32xf32, #tpu.memory_space<vmem>>, %arg10: memref<2x1x32xf32, #tpu.memory_space<vmem>>, %arg11: memref<2x1x32xf32, #tpu.memory_space<vmem>>, %arg12: memref<2x32x64xbf16, #tpu.memory_space<vmem>>, %arg13: memref<2x1x64xf32, #tpu.memory_space<vmem>>, %arg14: memref<2x64x32xbf16, #tpu.memory_space<vmem>>, %arg15: memref<2x1x32xf32, #tpu.memory_space<vmem>>, %arg16: memref<1x32xf32, #tpu.memory_space<vmem>>, %arg17: memref<1x32xf32, #tpu.memory_space<vmem>>, %arg18: memref<32x10xbf16, #tpu.memory_space<vmem>>, %arg19: memref<1x10xf32, #tpu.memory_space<vmem>>, %arg20: memref<2x10xf32, #tpu.memory_space<vmem>>) attributes {dimension_semantics = [], scalar_prefetch = 0 : i64, scratch_operands = 0 : i64, tpu.core_type = #tpu.core_type<tc>} {
    %c0 = arith.constant 0 : index
    %c0_0 = arith.constant 0 : index
    %0 = vector.load %arg0[%c0, %c0_0] : memref<32x48xbf16, #tpu.memory_space<vmem>>, vector<32x48xbf16>
    %c0_1 = arith.constant 0 : index
    %c0_2 = arith.constant 0 : index
    %1 = vector.load %arg2[%c0_1, %c0_2] : memref<48x32xbf16, #tpu.memory_space<vmem>>, vector<48x32xbf16>
    %cst = arith.constant dense<0.000000e+00> : vector<32x32xf32>
    %2 = tpu.matmul %0, %1, %cst {dimension_numbers = #tpu.dot_dimension_numbers<[1], [0], [0], [1], [0, 0, 1, 1], [], []>} : vector<32x48xbf16>, vector<48x32xbf16>, vector<32x32xf32> -> vector<32x32xf32>
    %c0_3 = arith.constant 0 : index
    %c0_4 = arith.constant 0 : index
    %3 = vector.load %arg3[%c0_3, %c0_4] : memref<1x32xf32, #tpu.memory_space<vmem>>, vector<1x32xf32>
    %4 = vector.broadcast %3 : vector<1x32xf32> to vector<32x32xf32>
    %5 = arith.addf %2, %4 : vector<32x32xf32>
    %6 = vector.shape_cast %5 : vector<32x32xf32> to vector<2x16x32xf32>
    %cst_5 = arith.constant 0.000000e+00 : f32
    %7 = vector.broadcast %cst_5 : f32 to vector<2x16x32xf32>
    %8 = tpu.concatenate %6, %7 in 1 : vector<2x16x32xf32>, vector<2x16x32xf32> -> vector<2x32x32xf32>
    %c0_6 = arith.constant 0 : index
    %c0_7 = arith.constant 0 : index
    %9 = vector.load %arg1[%c0_6, %c0_7] : memref<32x32xf32, #tpu.memory_space<vmem>>, vector<32x32xf32>
    %10 = vector.shape_cast %9 : vector<32x32xf32> to vector<1x32x32xf32>
    %11 = vector.broadcast %10 : vector<1x32x32xf32> to vector<2x32x32xf32>
    %12 = arith.addf %8, %11 : vector<2x32x32xf32>
    %13 = vector.shape_cast %12 : vector<2x32x32xf32> to vector<64x32xf32>
    %14 = tpu.iota {dimensions = array<i32: 1>} : vector<32x32xi32>
    %c17_i32 = arith.constant 17 : i32
    %15 = vector.broadcast %c17_i32 : i32 to vector<32x32xi32>
    %16 = arith.cmpi slt, %14, %15 : vector<32x32xi32>
    %17 = vector.shape_cast %16 : vector<32x32xi1> to vector<1x32x32xi1>
    %c0_8 = arith.constant 0 : index
    %c0_9 = arith.constant 0 : index
    %c0_10 = arith.constant 0 : index
    %18 = vector.load %arg4[%c0_8, %c0_9, %c0_10] : memref<2x1x32xf32, #tpu.memory_space<vmem>>, vector<1x1x32xf32>
    %19 = vector.shape_cast %18 : vector<1x1x32xf32> to vector<1x32xf32>
    %c0_11 = arith.constant 0 : index
    %c0_12 = arith.constant 0 : index
    %c0_13 = arith.constant 0 : index
    %20 = vector.load %arg5[%c0_11, %c0_12, %c0_13] : memref<2x1x32xf32, #tpu.memory_space<vmem>>, vector<1x1x32xf32>
    %21 = vector.shape_cast %20 : vector<1x1x32xf32> to vector<1x32xf32>
    %cst_14 = arith.constant dense<0.000000e+00> : vector<64xf32>
    %22 = vector.multi_reduction <add>, %13, %cst_14 [1] : vector<64x32xf32> to vector<64xf32>
    %23 = vector.shape_cast %22 : vector<64xf32> to vector<64x1xf32>
    %cst_15 = arith.constant 3.200000e+01 : f32
    %24 = vector.broadcast %cst_15 : f32 to vector<64x1xf32>
    %25 = arith.divf %23, %24 : vector<64x1xf32>
    %26 = vector.broadcast %25 : vector<64x1xf32> to vector<64x32xf32>
    %27 = arith.subf %13, %26 : vector<64x32xf32>
    %28 = arith.mulf %27, %27 : vector<64x32xf32>
    %cst_16 = arith.constant dense<0.000000e+00> : vector<64xf32>
    %29 = vector.multi_reduction <add>, %28, %cst_16 [1] : vector<64x32xf32> to vector<64xf32>
    %30 = vector.shape_cast %29 : vector<64xf32> to vector<64x1xf32>
    %cst_17 = arith.constant 3.200000e+01 : f32
    %31 = vector.broadcast %cst_17 : f32 to vector<64x1xf32>
    %32 = arith.divf %30, %31 : vector<64x1xf32>
    %33 = vector.broadcast %25 : vector<64x1xf32> to vector<64x32xf32>
    %34 = arith.subf %13, %33 : vector<64x32xf32>
    %cst_18 = arith.constant 9.99999974E-6 : f32
    %35 = vector.broadcast %cst_18 : f32 to vector<64x1xf32>
    %36 = arith.addf %32, %35 : vector<64x1xf32>
    %37 = math.rsqrt %36 : vector<64x1xf32>
    %38 = vector.broadcast %37 : vector<64x1xf32> to vector<64x32xf32>
    %39 = arith.mulf %34, %38 : vector<64x32xf32>
    %40 = vector.broadcast %19 : vector<1x32xf32> to vector<64x32xf32>
    %41 = arith.mulf %39, %40 : vector<64x32xf32>
    %42 = vector.broadcast %21 : vector<1x32xf32> to vector<64x32xf32>
    %43 = arith.addf %41, %42 : vector<64x32xf32>
    %44 = arith.truncf %43 : vector<64x32xf32> to vector<64x32xbf16>
    %c0_19 = arith.constant 0 : index
    %c0_20 = arith.constant 0 : index
    %c0_21 = arith.constant 0 : index
    %45 = vector.load %arg6[%c0_19, %c0_20, %c0_21] : memref<2x32x96xbf16, #tpu.memory_space<vmem>>, vector<1x32x96xbf16>
    %46 = vector.shape_cast %45 : vector<1x32x96xbf16> to vector<32x96xbf16>
    %cst_22 = arith.constant dense<0.000000e+00> : vector<64x96xf32>
    %47 = tpu.matmul %44, %46, %cst_22 {dimension_numbers = #tpu.dot_dimension_numbers<[1], [0], [0], [1], [0, 0, 1, 1], [], []>} : vector<64x32xbf16>, vector<32x96xbf16>, vector<64x96xf32> -> vector<64x96xf32>
    %c0_23 = arith.constant 0 : index
    %c0_24 = arith.constant 0 : index
    %c0_25 = arith.constant 0 : index
    %48 = vector.load %arg7[%c0_23, %c0_24, %c0_25] : memref<2x1x96xf32, #tpu.memory_space<vmem>>, vector<1x1x96xf32>
    %49 = vector.shape_cast %48 : vector<1x1x96xf32> to vector<1x96xf32>
    %50 = vector.broadcast %49 : vector<1x96xf32> to vector<64x96xf32>
    %51 = arith.addf %47, %50 : vector<64x96xf32>
    %52 = arith.truncf %51 : vector<64x96xf32> to vector<64x96xbf16>
    %53 = vector.extract_strided_slice %52 {offsets = [0, 0], sizes = [64, 32], strides = [1, 1]} : vector<64x96xbf16> to vector<64x32xbf16>
    %54 = vector.extract_strided_slice %53 {offsets = [0, 0], sizes = [64, 16], strides = [1, 1]} : vector<64x32xbf16> to vector<64x16xbf16>
    %55 = vector.extract_strided_slice %53 {offsets = [0, 16], sizes = [64, 16], strides = [1, 1]} : vector<64x32xbf16> to vector<64x16xbf16>
    %56 = vector.shape_cast %54 : vector<64x16xbf16> to vector<1x64x16xbf16>
    %57 = vector.shape_cast %55 : vector<64x16xbf16> to vector<1x64x16xbf16>
    %58 = tpu.concatenate %56, %57 in 0 : vector<1x64x16xbf16>, vector<1x64x16xbf16> -> vector<2x64x16xbf16>
    %59 = vector.shape_cast %58 : vector<2x64x16xbf16> to vector<4x32x16xbf16>
    %60 = vector.extract_strided_slice %52 {offsets = [0, 32], sizes = [64, 32], strides = [1, 1]} : vector<64x96xbf16> to vector<64x32xbf16>
    %61 = vector.extract_strided_slice %60 {offsets = [0, 0], sizes = [64, 16], strides = [1, 1]} : vector<64x32xbf16> to vector<64x16xbf16>
    %62 = vector.extract_strided_slice %60 {offsets = [0, 16], sizes = [64, 16], strides = [1, 1]} : vector<64x32xbf16> to vector<64x16xbf16>
    %63 = vector.shape_cast %61 : vector<64x16xbf16> to vector<1x64x16xbf16>
    %64 = vector.shape_cast %62 : vector<64x16xbf16> to vector<1x64x16xbf16>
    %65 = tpu.concatenate %63, %64 in 0 : vector<1x64x16xbf16>, vector<1x64x16xbf16> -> vector<2x64x16xbf16>
    %66 = vector.shape_cast %65 : vector<2x64x16xbf16> to vector<4x32x16xbf16>
    %67 = vector.extract_strided_slice %52 {offsets = [0, 64], sizes = [64, 32], strides = [1, 1]} : vector<64x96xbf16> to vector<64x32xbf16>
    %68 = vector.extract_strided_slice %67 {offsets = [0, 0], sizes = [64, 16], strides = [1, 1]} : vector<64x32xbf16> to vector<64x16xbf16>
    %69 = vector.extract_strided_slice %67 {offsets = [0, 16], sizes = [64, 16], strides = [1, 1]} : vector<64x32xbf16> to vector<64x16xbf16>
    %70 = vector.shape_cast %68 : vector<64x16xbf16> to vector<1x64x16xbf16>
    %71 = vector.shape_cast %69 : vector<64x16xbf16> to vector<1x64x16xbf16>
    %72 = tpu.concatenate %70, %71 in 0 : vector<1x64x16xbf16>, vector<1x64x16xbf16> -> vector<2x64x16xbf16>
    %73 = vector.shape_cast %72 : vector<2x64x16xbf16> to vector<4x32x16xbf16>
    %cst_26 = arith.constant dense<0.000000e+00> : vector<4x32x32xf32>
    %74 = tpu.matmul %59, %66, %cst_26 {dimension_numbers = #tpu.dot_dimension_numbers<[2], [2], [1], [1], [0, 0, 0, 1, 1, 1], [0], [0]>} : vector<4x32x16xbf16>, vector<4x32x16xbf16>, vector<4x32x32xf32> -> vector<4x32x32xf32>
    %cst_27 = arith.constant -1.000000e+30 : f32
    %75 = vector.shape_cast %17 : vector<1x32x32xi1> to vector<1x32x32xi1>
    %76 = vector.broadcast %75 : vector<1x32x32xi1> to vector<4x32x32xi1>
    %77 = vector.broadcast %cst_27 : f32 to vector<4x32x32xf32>
    %78 = arith.select %76, %74, %77 : vector<4x32x32xi1>, vector<4x32x32xf32>
    %cst_28 = arith.constant dense<0xFF800000> : vector<4x32xf32>
    %79 = vector.multi_reduction <maximumf>, %78, %cst_28 [2] : vector<4x32x32xf32> to vector<4x32xf32>
    %80 = vector.shape_cast %79 : vector<4x32xf32> to vector<4x32x1xf32>
    %81 = vector.broadcast %80 : vector<4x32x1xf32> to vector<4x32x32xf32>
    %82 = arith.subf %78, %81 : vector<4x32x32xf32>
    %83 = math.exp %82 : vector<4x32x32xf32>
    %cst_29 = arith.constant dense<0.000000e+00> : vector<4x32xf32>
    %84 = vector.multi_reduction <add>, %83, %cst_29 [2] : vector<4x32x32xf32> to vector<4x32xf32>
    %85 = vector.shape_cast %84 : vector<4x32xf32> to vector<4x32x1xf32>
    %86 = tpu.reciprocal %85 {approx = true} : vector<4x32x1xf32> -> vector<4x32x1xf32>
    %87 = vector.broadcast %86 : vector<4x32x1xf32> to vector<4x32x32xf32>
    %88 = arith.mulf %83, %87 : vector<4x32x32xf32>
    %89 = arith.truncf %88 : vector<4x32x32xf32> to vector<4x32x32xbf16>
    %cst_30 = arith.constant dense<0.000000e+00> : vector<4x32x16xf32>
    %90 = tpu.matmul %89, %73, %cst_30 {dimension_numbers = #tpu.dot_dimension_numbers<[2], [1], [1], [2], [0, 0, 0, 1, 1, 2], [0], [0]>} : vector<4x32x32xbf16>, vector<4x32x16xbf16>, vector<4x32x16xf32> -> vector<4x32x16xf32>
    %91 = arith.truncf %90 : vector<4x32x16xf32> to vector<4x32x16xbf16>
    %92 = vector.extract_strided_slice %91 {offsets = [0, 0, 0], sizes = [2, 32, 16], strides = [1, 1, 1]} : vector<4x32x16xbf16> to vector<2x32x16xbf16>
    %93 = vector.extract_strided_slice %91 {offsets = [2, 0, 0], sizes = [2, 32, 16], strides = [1, 1, 1]} : vector<4x32x16xbf16> to vector<2x32x16xbf16>
    %94 = tpu.concatenate %92, %93 in 2 : vector<2x32x16xbf16>, vector<2x32x16xbf16> -> vector<2x32x32xbf16>
    %95 = vector.shape_cast %94 : vector<2x32x32xbf16> to vector<64x32xbf16>
    %c0_31 = arith.constant 0 : index
    %c0_32 = arith.constant 0 : index
    %c0_33 = arith.constant 0 : index
    %96 = vector.load %arg8[%c0_31, %c0_32, %c0_33] : memref<2x32x32xbf16, #tpu.memory_space<vmem>>, vector<1x32x32xbf16>
    %97 = vector.shape_cast %96 : vector<1x32x32xbf16> to vector<32x32xbf16>
    %cst_34 = arith.constant dense<0.000000e+00> : vector<64x32xf32>
    %98 = tpu.matmul %95, %97, %cst_34 {dimension_numbers = #tpu.dot_dimension_numbers<[1], [0], [0], [1], [0, 0, 1, 1], [], []>} : vector<64x32xbf16>, vector<32x32xbf16>, vector<64x32xf32> -> vector<64x32xf32>
    %99 = arith.addf %13, %98 : vector<64x32xf32>
    %c0_35 = arith.constant 0 : index
    %c0_36 = arith.constant 0 : index
    %c0_37 = arith.constant 0 : index
    %100 = vector.load %arg9[%c0_35, %c0_36, %c0_37] : memref<2x1x32xf32, #tpu.memory_space<vmem>>, vector<1x1x32xf32>
    %101 = vector.shape_cast %100 : vector<1x1x32xf32> to vector<1x32xf32>
    %102 = vector.broadcast %101 : vector<1x32xf32> to vector<64x32xf32>
    %103 = arith.addf %99, %102 : vector<64x32xf32>
    %c0_38 = arith.constant 0 : index
    %c0_39 = arith.constant 0 : index
    %c0_40 = arith.constant 0 : index
    %104 = vector.load %arg10[%c0_38, %c0_39, %c0_40] : memref<2x1x32xf32, #tpu.memory_space<vmem>>, vector<1x1x32xf32>
    %105 = vector.shape_cast %104 : vector<1x1x32xf32> to vector<1x32xf32>
    %c0_41 = arith.constant 0 : index
    %c0_42 = arith.constant 0 : index
    %c0_43 = arith.constant 0 : index
    %106 = vector.load %arg11[%c0_41, %c0_42, %c0_43] : memref<2x1x32xf32, #tpu.memory_space<vmem>>, vector<1x1x32xf32>
    %107 = vector.shape_cast %106 : vector<1x1x32xf32> to vector<1x32xf32>
    %cst_44 = arith.constant dense<0.000000e+00> : vector<64xf32>
    %108 = vector.multi_reduction <add>, %103, %cst_44 [1] : vector<64x32xf32> to vector<64xf32>
    %109 = vector.shape_cast %108 : vector<64xf32> to vector<64x1xf32>
    %cst_45 = arith.constant 3.200000e+01 : f32
    %110 = vector.broadcast %cst_45 : f32 to vector<64x1xf32>
    %111 = arith.divf %109, %110 : vector<64x1xf32>
    %112 = vector.broadcast %111 : vector<64x1xf32> to vector<64x32xf32>
    %113 = arith.subf %103, %112 : vector<64x32xf32>
    %114 = arith.mulf %113, %113 : vector<64x32xf32>
    %cst_46 = arith.constant dense<0.000000e+00> : vector<64xf32>
    %115 = vector.multi_reduction <add>, %114, %cst_46 [1] : vector<64x32xf32> to vector<64xf32>
    %116 = vector.shape_cast %115 : vector<64xf32> to vector<64x1xf32>
    %cst_47 = arith.constant 3.200000e+01 : f32
    %117 = vector.broadcast %cst_47 : f32 to vector<64x1xf32>
    %118 = arith.divf %116, %117 : vector<64x1xf32>
    %119 = vector.broadcast %111 : vector<64x1xf32> to vector<64x32xf32>
    %120 = arith.subf %103, %119 : vector<64x32xf32>
    %cst_48 = arith.constant 9.99999974E-6 : f32
    %121 = vector.broadcast %cst_48 : f32 to vector<64x1xf32>
    %122 = arith.addf %118, %121 : vector<64x1xf32>
    %123 = math.rsqrt %122 : vector<64x1xf32>
    %124 = vector.broadcast %123 : vector<64x1xf32> to vector<64x32xf32>
    %125 = arith.mulf %120, %124 : vector<64x32xf32>
    %126 = vector.broadcast %105 : vector<1x32xf32> to vector<64x32xf32>
    %127 = arith.mulf %125, %126 : vector<64x32xf32>
    %128 = vector.broadcast %107 : vector<1x32xf32> to vector<64x32xf32>
    %129 = arith.addf %127, %128 : vector<64x32xf32>
    %130 = arith.truncf %129 : vector<64x32xf32> to vector<64x32xbf16>
    %c0_49 = arith.constant 0 : index
    %c0_50 = arith.constant 0 : index
    %c0_51 = arith.constant 0 : index
    %131 = vector.load %arg12[%c0_49, %c0_50, %c0_51] : memref<2x32x64xbf16, #tpu.memory_space<vmem>>, vector<1x32x64xbf16>
    %132 = vector.shape_cast %131 : vector<1x32x64xbf16> to vector<32x64xbf16>
    %cst_52 = arith.constant dense<0.000000e+00> : vector<64x64xf32>
    %133 = tpu.matmul %130, %132, %cst_52 {dimension_numbers = #tpu.dot_dimension_numbers<[1], [0], [0], [1], [0, 0, 1, 1], [], []>} : vector<64x32xbf16>, vector<32x64xbf16>, vector<64x64xf32> -> vector<64x64xf32>
    %c0_53 = arith.constant 0 : index
    %c0_54 = arith.constant 0 : index
    %c0_55 = arith.constant 0 : index
    %134 = vector.load %arg13[%c0_53, %c0_54, %c0_55] : memref<2x1x64xf32, #tpu.memory_space<vmem>>, vector<1x1x64xf32>
    %135 = vector.shape_cast %134 : vector<1x1x64xf32> to vector<1x64xf32>
    %136 = vector.broadcast %135 : vector<1x64xf32> to vector<64x64xf32>
    %137 = arith.addf %133, %136 : vector<64x64xf32>
    %cst_56 = arith.constant 5.000000e-01 : f32
    %138 = vector.broadcast %cst_56 : f32 to vector<64x64xf32>
    %139 = arith.mulf %138, %137 : vector<64x64xf32>
    %cst_57 = arith.constant 0.707106769 : f32
    %140 = vector.broadcast %cst_57 : f32 to vector<64x64xf32>
    %141 = arith.mulf %137, %140 : vector<64x64xf32>
    %cst_58 = arith.constant 0.000000e+00 : f32
    %142 = vector.broadcast %cst_58 : f32 to vector<64x64xf32>
    %143 = arith.cmpf oge, %141, %142 : vector<64x64xf32>
    %cst_59 = arith.constant 1.000000e+00 : f32
    %cst_60 = arith.constant -1.000000e+00 : f32
    %144 = vector.broadcast %cst_59 : f32 to vector<64x64xf32>
    %145 = vector.broadcast %cst_60 : f32 to vector<64x64xf32>
    %146 = arith.select %143, %144, %145 : vector<64x64xi1>, vector<64x64xf32>
    %147 = math.absf %141 : vector<64x64xf32>
    %cst_61 = arith.constant 0.327591091 : f32
    %148 = vector.broadcast %cst_61 : f32 to vector<64x64xf32>
    %149 = arith.mulf %148, %147 : vector<64x64xf32>
    %cst_62 = arith.constant 1.000000e+00 : f32
    %150 = vector.broadcast %cst_62 : f32 to vector<64x64xf32>
    %151 = arith.addf %150, %149 : vector<64x64xf32>
    %cst_63 = arith.constant 1.000000e+00 : f32
    %152 = vector.broadcast %cst_63 : f32 to vector<64x64xf32>
    %153 = arith.divf %152, %151 : vector<64x64xf32>
    %cst_64 = arith.constant 1.06140542 : f32
    %154 = vector.broadcast %cst_64 : f32 to vector<64x64xf32>
    %155 = arith.mulf %154, %153 : vector<64x64xf32>
    %cst_65 = arith.constant -1.45315206 : f32
    %156 = vector.broadcast %cst_65 : f32 to vector<64x64xf32>
    %157 = arith.addf %155, %156 : vector<64x64xf32>
    %158 = arith.mulf %157, %153 : vector<64x64xf32>
    %cst_66 = arith.constant 1.42141378 : f32
    %159 = vector.broadcast %cst_66 : f32 to vector<64x64xf32>
    %160 = arith.addf %158, %159 : vector<64x64xf32>
    %161 = arith.mulf %160, %153 : vector<64x64xf32>
    %cst_67 = arith.constant -0.284496725 : f32
    %162 = vector.broadcast %cst_67 : f32 to vector<64x64xf32>
    %163 = arith.addf %161, %162 : vector<64x64xf32>
    %164 = arith.mulf %163, %153 : vector<64x64xf32>
    %cst_68 = arith.constant 0.254829586 : f32
    %165 = vector.broadcast %cst_68 : f32 to vector<64x64xf32>
    %166 = arith.addf %164, %165 : vector<64x64xf32>
    %167 = arith.mulf %166, %153 : vector<64x64xf32>
    %cst_69 = arith.constant 0.000000e+00 : f32
    %168 = vector.broadcast %cst_69 : f32 to vector<64x64xf32>
    %169 = arith.subf %168, %147 : vector<64x64xf32>
    %170 = arith.mulf %169, %147 : vector<64x64xf32>
    %171 = math.exp %170 : vector<64x64xf32>
    %172 = arith.mulf %167, %171 : vector<64x64xf32>
    %cst_70 = arith.constant 1.000000e+00 : f32
    %173 = vector.broadcast %cst_70 : f32 to vector<64x64xf32>
    %174 = arith.subf %173, %172 : vector<64x64xf32>
    %175 = arith.mulf %146, %174 : vector<64x64xf32>
    %cst_71 = arith.constant 1.000000e+00 : f32
    %176 = vector.broadcast %cst_71 : f32 to vector<64x64xf32>
    %177 = arith.addf %176, %175 : vector<64x64xf32>
    %178 = arith.mulf %139, %177 : vector<64x64xf32>
    %179 = arith.truncf %178 : vector<64x64xf32> to vector<64x64xbf16>
    %c0_72 = arith.constant 0 : index
    %c0_73 = arith.constant 0 : index
    %c0_74 = arith.constant 0 : index
    %180 = vector.load %arg14[%c0_72, %c0_73, %c0_74] : memref<2x64x32xbf16, #tpu.memory_space<vmem>>, vector<1x64x32xbf16>
    %181 = vector.shape_cast %180 : vector<1x64x32xbf16> to vector<64x32xbf16>
    %cst_75 = arith.constant dense<0.000000e+00> : vector<64x32xf32>
    %182 = tpu.matmul %179, %181, %cst_75 {dimension_numbers = #tpu.dot_dimension_numbers<[1], [0], [0], [1], [0, 0, 1, 1], [], []>} : vector<64x64xbf16>, vector<64x32xbf16>, vector<64x32xf32> -> vector<64x32xf32>
    %183 = arith.addf %103, %182 : vector<64x32xf32>
    %c0_76 = arith.constant 0 : index
    %c0_77 = arith.constant 0 : index
    %c0_78 = arith.constant 0 : index
    %184 = vector.load %arg15[%c0_76, %c0_77, %c0_78] : memref<2x1x32xf32, #tpu.memory_space<vmem>>, vector<1x1x32xf32>
    %185 = vector.shape_cast %184 : vector<1x1x32xf32> to vector<1x32xf32>
    %186 = vector.broadcast %185 : vector<1x32xf32> to vector<64x32xf32>
    %187 = arith.addf %183, %186 : vector<64x32xf32>
    %c1 = arith.constant 1 : index
    %c0_79 = arith.constant 0 : index
    %c0_80 = arith.constant 0 : index
    %188 = vector.load %arg4[%c1, %c0_79, %c0_80] : memref<2x1x32xf32, #tpu.memory_space<vmem>>, vector<1x1x32xf32>
    %189 = vector.shape_cast %188 : vector<1x1x32xf32> to vector<1x32xf32>
    %c1_81 = arith.constant 1 : index
    %c0_82 = arith.constant 0 : index
    %c0_83 = arith.constant 0 : index
    %190 = vector.load %arg5[%c1_81, %c0_82, %c0_83] : memref<2x1x32xf32, #tpu.memory_space<vmem>>, vector<1x1x32xf32>
    %191 = vector.shape_cast %190 : vector<1x1x32xf32> to vector<1x32xf32>
    %cst_84 = arith.constant dense<0.000000e+00> : vector<64xf32>
    %192 = vector.multi_reduction <add>, %187, %cst_84 [1] : vector<64x32xf32> to vector<64xf32>
    %193 = vector.shape_cast %192 : vector<64xf32> to vector<64x1xf32>
    %cst_85 = arith.constant 3.200000e+01 : f32
    %194 = vector.broadcast %cst_85 : f32 to vector<64x1xf32>
    %195 = arith.divf %193, %194 : vector<64x1xf32>
    %196 = vector.broadcast %195 : vector<64x1xf32> to vector<64x32xf32>
    %197 = arith.subf %187, %196 : vector<64x32xf32>
    %198 = arith.mulf %197, %197 : vector<64x32xf32>
    %cst_86 = arith.constant dense<0.000000e+00> : vector<64xf32>
    %199 = vector.multi_reduction <add>, %198, %cst_86 [1] : vector<64x32xf32> to vector<64xf32>
    %200 = vector.shape_cast %199 : vector<64xf32> to vector<64x1xf32>
    %cst_87 = arith.constant 3.200000e+01 : f32
    %201 = vector.broadcast %cst_87 : f32 to vector<64x1xf32>
    %202 = arith.divf %200, %201 : vector<64x1xf32>
    %203 = vector.broadcast %195 : vector<64x1xf32> to vector<64x32xf32>
    %204 = arith.subf %187, %203 : vector<64x32xf32>
    %cst_88 = arith.constant 9.99999974E-6 : f32
    %205 = vector.broadcast %cst_88 : f32 to vector<64x1xf32>
    %206 = arith.addf %202, %205 : vector<64x1xf32>
    %207 = math.rsqrt %206 : vector<64x1xf32>
    %208 = vector.broadcast %207 : vector<64x1xf32> to vector<64x32xf32>
    %209 = arith.mulf %204, %208 : vector<64x32xf32>
    %210 = vector.broadcast %189 : vector<1x32xf32> to vector<64x32xf32>
    %211 = arith.mulf %209, %210 : vector<64x32xf32>
    %212 = vector.broadcast %191 : vector<1x32xf32> to vector<64x32xf32>
    %213 = arith.addf %211, %212 : vector<64x32xf32>
    %214 = arith.truncf %213 : vector<64x32xf32> to vector<64x32xbf16>
    %c1_89 = arith.constant 1 : index
    %c0_90 = arith.constant 0 : index
    %c0_91 = arith.constant 0 : index
    %215 = vector.load %arg6[%c1_89, %c0_90, %c0_91] : memref<2x32x96xbf16, #tpu.memory_space<vmem>>, vector<1x32x96xbf16>
    %216 = vector.shape_cast %215 : vector<1x32x96xbf16> to vector<32x96xbf16>
    %cst_92 = arith.constant dense<0.000000e+00> : vector<64x96xf32>
    %217 = tpu.matmul %214, %216, %cst_92 {dimension_numbers = #tpu.dot_dimension_numbers<[1], [0], [0], [1], [0, 0, 1, 1], [], []>} : vector<64x32xbf16>, vector<32x96xbf16>, vector<64x96xf32> -> vector<64x96xf32>
    %c1_93 = arith.constant 1 : index
    %c0_94 = arith.constant 0 : index
    %c0_95 = arith.constant 0 : index
    %218 = vector.load %arg7[%c1_93, %c0_94, %c0_95] : memref<2x1x96xf32, #tpu.memory_space<vmem>>, vector<1x1x96xf32>
    %219 = vector.shape_cast %218 : vector<1x1x96xf32> to vector<1x96xf32>
    %220 = vector.broadcast %219 : vector<1x96xf32> to vector<64x96xf32>
    %221 = arith.addf %217, %220 : vector<64x96xf32>
    %222 = arith.truncf %221 : vector<64x96xf32> to vector<64x96xbf16>
    %223 = vector.extract_strided_slice %222 {offsets = [0, 0], sizes = [64, 32], strides = [1, 1]} : vector<64x96xbf16> to vector<64x32xbf16>
    %224 = vector.extract_strided_slice %223 {offsets = [0, 0], sizes = [64, 16], strides = [1, 1]} : vector<64x32xbf16> to vector<64x16xbf16>
    %225 = vector.extract_strided_slice %223 {offsets = [0, 16], sizes = [64, 16], strides = [1, 1]} : vector<64x32xbf16> to vector<64x16xbf16>
    %226 = vector.shape_cast %224 : vector<64x16xbf16> to vector<1x64x16xbf16>
    %227 = vector.shape_cast %225 : vector<64x16xbf16> to vector<1x64x16xbf16>
    %228 = tpu.concatenate %226, %227 in 0 : vector<1x64x16xbf16>, vector<1x64x16xbf16> -> vector<2x64x16xbf16>
    %229 = vector.shape_cast %228 : vector<2x64x16xbf16> to vector<4x32x16xbf16>
    %230 = vector.extract_strided_slice %222 {offsets = [0, 32], sizes = [64, 32], strides = [1, 1]} : vector<64x96xbf16> to vector<64x32xbf16>
    %231 = vector.extract_strided_slice %230 {offsets = [0, 0], sizes = [64, 16], strides = [1, 1]} : vector<64x32xbf16> to vector<64x16xbf16>
    %232 = vector.extract_strided_slice %230 {offsets = [0, 16], sizes = [64, 16], strides = [1, 1]} : vector<64x32xbf16> to vector<64x16xbf16>
    %233 = vector.shape_cast %231 : vector<64x16xbf16> to vector<1x64x16xbf16>
    %234 = vector.shape_cast %232 : vector<64x16xbf16> to vector<1x64x16xbf16>
    %235 = tpu.concatenate %233, %234 in 0 : vector<1x64x16xbf16>, vector<1x64x16xbf16> -> vector<2x64x16xbf16>
    %236 = vector.shape_cast %235 : vector<2x64x16xbf16> to vector<4x32x16xbf16>
    %237 = vector.extract_strided_slice %222 {offsets = [0, 64], sizes = [64, 32], strides = [1, 1]} : vector<64x96xbf16> to vector<64x32xbf16>
    %238 = vector.extract_strided_slice %237 {offsets = [0, 0], sizes = [64, 16], strides = [1, 1]} : vector<64x32xbf16> to vector<64x16xbf16>
    %239 = vector.extract_strided_slice %237 {offsets = [0, 16], sizes = [64, 16], strides = [1, 1]} : vector<64x32xbf16> to vector<64x16xbf16>
    %240 = vector.shape_cast %238 : vector<64x16xbf16> to vector<1x64x16xbf16>
    %241 = vector.shape_cast %239 : vector<64x16xbf16> to vector<1x64x16xbf16>
    %242 = tpu.concatenate %240, %241 in 0 : vector<1x64x16xbf16>, vector<1x64x16xbf16> -> vector<2x64x16xbf16>
    %243 = vector.shape_cast %242 : vector<2x64x16xbf16> to vector<4x32x16xbf16>
    %cst_96 = arith.constant dense<0.000000e+00> : vector<4x32x32xf32>
    %244 = tpu.matmul %229, %236, %cst_96 {dimension_numbers = #tpu.dot_dimension_numbers<[2], [2], [1], [1], [0, 0, 0, 1, 1, 1], [0], [0]>} : vector<4x32x16xbf16>, vector<4x32x16xbf16>, vector<4x32x32xf32> -> vector<4x32x32xf32>
    %cst_97 = arith.constant -1.000000e+30 : f32
    %245 = vector.shape_cast %17 : vector<1x32x32xi1> to vector<1x32x32xi1>
    %246 = vector.broadcast %245 : vector<1x32x32xi1> to vector<4x32x32xi1>
    %247 = vector.broadcast %cst_97 : f32 to vector<4x32x32xf32>
    %248 = arith.select %246, %244, %247 : vector<4x32x32xi1>, vector<4x32x32xf32>
    %cst_98 = arith.constant dense<0xFF800000> : vector<4x32xf32>
    %249 = vector.multi_reduction <maximumf>, %248, %cst_98 [2] : vector<4x32x32xf32> to vector<4x32xf32>
    %250 = vector.shape_cast %249 : vector<4x32xf32> to vector<4x32x1xf32>
    %251 = vector.broadcast %250 : vector<4x32x1xf32> to vector<4x32x32xf32>
    %252 = arith.subf %248, %251 : vector<4x32x32xf32>
    %253 = math.exp %252 : vector<4x32x32xf32>
    %cst_99 = arith.constant dense<0.000000e+00> : vector<4x32xf32>
    %254 = vector.multi_reduction <add>, %253, %cst_99 [2] : vector<4x32x32xf32> to vector<4x32xf32>
    %255 = vector.shape_cast %254 : vector<4x32xf32> to vector<4x32x1xf32>
    %256 = tpu.reciprocal %255 {approx = true} : vector<4x32x1xf32> -> vector<4x32x1xf32>
    %257 = vector.broadcast %256 : vector<4x32x1xf32> to vector<4x32x32xf32>
    %258 = arith.mulf %253, %257 : vector<4x32x32xf32>
    %259 = arith.truncf %258 : vector<4x32x32xf32> to vector<4x32x32xbf16>
    %cst_100 = arith.constant dense<0.000000e+00> : vector<4x32x16xf32>
    %260 = tpu.matmul %259, %243, %cst_100 {dimension_numbers = #tpu.dot_dimension_numbers<[2], [1], [1], [2], [0, 0, 0, 1, 1, 2], [0], [0]>} : vector<4x32x32xbf16>, vector<4x32x16xbf16>, vector<4x32x16xf32> -> vector<4x32x16xf32>
    %261 = arith.truncf %260 : vector<4x32x16xf32> to vector<4x32x16xbf16>
    %262 = vector.extract_strided_slice %261 {offsets = [0, 0, 0], sizes = [2, 32, 16], strides = [1, 1, 1]} : vector<4x32x16xbf16> to vector<2x32x16xbf16>
    %263 = vector.extract_strided_slice %261 {offsets = [2, 0, 0], sizes = [2, 32, 16], strides = [1, 1, 1]} : vector<4x32x16xbf16> to vector<2x32x16xbf16>
    %264 = tpu.concatenate %262, %263 in 2 : vector<2x32x16xbf16>, vector<2x32x16xbf16> -> vector<2x32x32xbf16>
    %265 = vector.shape_cast %264 : vector<2x32x32xbf16> to vector<64x32xbf16>
    %c1_101 = arith.constant 1 : index
    %c0_102 = arith.constant 0 : index
    %c0_103 = arith.constant 0 : index
    %266 = vector.load %arg8[%c1_101, %c0_102, %c0_103] : memref<2x32x32xbf16, #tpu.memory_space<vmem>>, vector<1x32x32xbf16>
    %267 = vector.shape_cast %266 : vector<1x32x32xbf16> to vector<32x32xbf16>
    %cst_104 = arith.constant dense<0.000000e+00> : vector<64x32xf32>
    %268 = tpu.matmul %265, %267, %cst_104 {dimension_numbers = #tpu.dot_dimension_numbers<[1], [0], [0], [1], [0, 0, 1, 1], [], []>} : vector<64x32xbf16>, vector<32x32xbf16>, vector<64x32xf32> -> vector<64x32xf32>
    %269 = arith.addf %187, %268 : vector<64x32xf32>
    %c1_105 = arith.constant 1 : index
    %c0_106 = arith.constant 0 : index
    %c0_107 = arith.constant 0 : index
    %270 = vector.load %arg9[%c1_105, %c0_106, %c0_107] : memref<2x1x32xf32, #tpu.memory_space<vmem>>, vector<1x1x32xf32>
    %271 = vector.shape_cast %270 : vector<1x1x32xf32> to vector<1x32xf32>
    %272 = vector.broadcast %271 : vector<1x32xf32> to vector<64x32xf32>
    %273 = arith.addf %269, %272 : vector<64x32xf32>
    %c1_108 = arith.constant 1 : index
    %c0_109 = arith.constant 0 : index
    %c0_110 = arith.constant 0 : index
    %274 = vector.load %arg10[%c1_108, %c0_109, %c0_110] : memref<2x1x32xf32, #tpu.memory_space<vmem>>, vector<1x1x32xf32>
    %275 = vector.shape_cast %274 : vector<1x1x32xf32> to vector<1x32xf32>
    %c1_111 = arith.constant 1 : index
    %c0_112 = arith.constant 0 : index
    %c0_113 = arith.constant 0 : index
    %276 = vector.load %arg11[%c1_111, %c0_112, %c0_113] : memref<2x1x32xf32, #tpu.memory_space<vmem>>, vector<1x1x32xf32>
    %277 = vector.shape_cast %276 : vector<1x1x32xf32> to vector<1x32xf32>
    %cst_114 = arith.constant dense<0.000000e+00> : vector<64xf32>
    %278 = vector.multi_reduction <add>, %273, %cst_114 [1] : vector<64x32xf32> to vector<64xf32>
    %279 = vector.shape_cast %278 : vector<64xf32> to vector<64x1xf32>
    %cst_115 = arith.constant 3.200000e+01 : f32
    %280 = vector.broadcast %cst_115 : f32 to vector<64x1xf32>
    %281 = arith.divf %279, %280 : vector<64x1xf32>
    %282 = vector.broadcast %281 : vector<64x1xf32> to vector<64x32xf32>
    %283 = arith.subf %273, %282 : vector<64x32xf32>
    %284 = arith.mulf %283, %283 : vector<64x32xf32>
    %cst_116 = arith.constant dense<0.000000e+00> : vector<64xf32>
    %285 = vector.multi_reduction <add>, %284, %cst_116 [1] : vector<64x32xf32> to vector<64xf32>
    %286 = vector.shape_cast %285 : vector<64xf32> to vector<64x1xf32>
    %cst_117 = arith.constant 3.200000e+01 : f32
    %287 = vector.broadcast %cst_117 : f32 to vector<64x1xf32>
    %288 = arith.divf %286, %287 : vector<64x1xf32>
    %289 = vector.broadcast %281 : vector<64x1xf32> to vector<64x32xf32>
    %290 = arith.subf %273, %289 : vector<64x32xf32>
    %cst_118 = arith.constant 9.99999974E-6 : f32
    %291 = vector.broadcast %cst_118 : f32 to vector<64x1xf32>
    %292 = arith.addf %288, %291 : vector<64x1xf32>
    %293 = math.rsqrt %292 : vector<64x1xf32>
    %294 = vector.broadcast %293 : vector<64x1xf32> to vector<64x32xf32>
    %295 = arith.mulf %290, %294 : vector<64x32xf32>
    %296 = vector.broadcast %275 : vector<1x32xf32> to vector<64x32xf32>
    %297 = arith.mulf %295, %296 : vector<64x32xf32>
    %298 = vector.broadcast %277 : vector<1x32xf32> to vector<64x32xf32>
    %299 = arith.addf %297, %298 : vector<64x32xf32>
    %300 = arith.truncf %299 : vector<64x32xf32> to vector<64x32xbf16>
    %c1_119 = arith.constant 1 : index
    %c0_120 = arith.constant 0 : index
    %c0_121 = arith.constant 0 : index
    %301 = vector.load %arg12[%c1_119, %c0_120, %c0_121] : memref<2x32x64xbf16, #tpu.memory_space<vmem>>, vector<1x32x64xbf16>
    %302 = vector.shape_cast %301 : vector<1x32x64xbf16> to vector<32x64xbf16>
    %cst_122 = arith.constant dense<0.000000e+00> : vector<64x64xf32>
    %303 = tpu.matmul %300, %302, %cst_122 {dimension_numbers = #tpu.dot_dimension_numbers<[1], [0], [0], [1], [0, 0, 1, 1], [], []>} : vector<64x32xbf16>, vector<32x64xbf16>, vector<64x64xf32> -> vector<64x64xf32>
    %c1_123 = arith.constant 1 : index
    %c0_124 = arith.constant 0 : index
    %c0_125 = arith.constant 0 : index
    %304 = vector.load %arg13[%c1_123, %c0_124, %c0_125] : memref<2x1x64xf32, #tpu.memory_space<vmem>>, vector<1x1x64xf32>
    %305 = vector.shape_cast %304 : vector<1x1x64xf32> to vector<1x64xf32>
    %306 = vector.broadcast %305 : vector<1x64xf32> to vector<64x64xf32>
    %307 = arith.addf %303, %306 : vector<64x64xf32>
    %cst_126 = arith.constant 5.000000e-01 : f32
    %308 = vector.broadcast %cst_126 : f32 to vector<64x64xf32>
    %309 = arith.mulf %308, %307 : vector<64x64xf32>
    %cst_127 = arith.constant 0.707106769 : f32
    %310 = vector.broadcast %cst_127 : f32 to vector<64x64xf32>
    %311 = arith.mulf %307, %310 : vector<64x64xf32>
    %cst_128 = arith.constant 0.000000e+00 : f32
    %312 = vector.broadcast %cst_128 : f32 to vector<64x64xf32>
    %313 = arith.cmpf oge, %311, %312 : vector<64x64xf32>
    %cst_129 = arith.constant 1.000000e+00 : f32
    %cst_130 = arith.constant -1.000000e+00 : f32
    %314 = vector.broadcast %cst_129 : f32 to vector<64x64xf32>
    %315 = vector.broadcast %cst_130 : f32 to vector<64x64xf32>
    %316 = arith.select %313, %314, %315 : vector<64x64xi1>, vector<64x64xf32>
    %317 = math.absf %311 : vector<64x64xf32>
    %cst_131 = arith.constant 0.327591091 : f32
    %318 = vector.broadcast %cst_131 : f32 to vector<64x64xf32>
    %319 = arith.mulf %318, %317 : vector<64x64xf32>
    %cst_132 = arith.constant 1.000000e+00 : f32
    %320 = vector.broadcast %cst_132 : f32 to vector<64x64xf32>
    %321 = arith.addf %320, %319 : vector<64x64xf32>
    %cst_133 = arith.constant 1.000000e+00 : f32
    %322 = vector.broadcast %cst_133 : f32 to vector<64x64xf32>
    %323 = arith.divf %322, %321 : vector<64x64xf32>
    %cst_134 = arith.constant 1.06140542 : f32
    %324 = vector.broadcast %cst_134 : f32 to vector<64x64xf32>
    %325 = arith.mulf %324, %323 : vector<64x64xf32>
    %cst_135 = arith.constant -1.45315206 : f32
    %326 = vector.broadcast %cst_135 : f32 to vector<64x64xf32>
    %327 = arith.addf %325, %326 : vector<64x64xf32>
    %328 = arith.mulf %327, %323 : vector<64x64xf32>
    %cst_136 = arith.constant 1.42141378 : f32
    %329 = vector.broadcast %cst_136 : f32 to vector<64x64xf32>
    %330 = arith.addf %328, %329 : vector<64x64xf32>
    %331 = arith.mulf %330, %323 : vector<64x64xf32>
    %cst_137 = arith.constant -0.284496725 : f32
    %332 = vector.broadcast %cst_137 : f32 to vector<64x64xf32>
    %333 = arith.addf %331, %332 : vector<64x64xf32>
    %334 = arith.mulf %333, %323 : vector<64x64xf32>
    %cst_138 = arith.constant 0.254829586 : f32
    %335 = vector.broadcast %cst_138 : f32 to vector<64x64xf32>
    %336 = arith.addf %334, %335 : vector<64x64xf32>
    %337 = arith.mulf %336, %323 : vector<64x64xf32>
    %cst_139 = arith.constant 0.000000e+00 : f32
    %338 = vector.broadcast %cst_139 : f32 to vector<64x64xf32>
    %339 = arith.subf %338, %317 : vector<64x64xf32>
    %340 = arith.mulf %339, %317 : vector<64x64xf32>
    %341 = math.exp %340 : vector<64x64xf32>
    %342 = arith.mulf %337, %341 : vector<64x64xf32>
    %cst_140 = arith.constant 1.000000e+00 : f32
    %343 = vector.broadcast %cst_140 : f32 to vector<64x64xf32>
    %344 = arith.subf %343, %342 : vector<64x64xf32>
    %345 = arith.mulf %316, %344 : vector<64x64xf32>
    %cst_141 = arith.constant 1.000000e+00 : f32
    %346 = vector.broadcast %cst_141 : f32 to vector<64x64xf32>
    %347 = arith.addf %346, %345 : vector<64x64xf32>
    %348 = arith.mulf %309, %347 : vector<64x64xf32>
    %349 = arith.truncf %348 : vector<64x64xf32> to vector<64x64xbf16>
    %c1_142 = arith.constant 1 : index
    %c0_143 = arith.constant 0 : index
    %c0_144 = arith.constant 0 : index
    %350 = vector.load %arg14[%c1_142, %c0_143, %c0_144] : memref<2x64x32xbf16, #tpu.memory_space<vmem>>, vector<1x64x32xbf16>
    %351 = vector.shape_cast %350 : vector<1x64x32xbf16> to vector<64x32xbf16>
    %cst_145 = arith.constant dense<0.000000e+00> : vector<64x32xf32>
    %352 = tpu.matmul %349, %351, %cst_145 {dimension_numbers = #tpu.dot_dimension_numbers<[1], [0], [0], [1], [0, 0, 1, 1], [], []>} : vector<64x64xbf16>, vector<64x32xbf16>, vector<64x32xf32> -> vector<64x32xf32>
    %353 = arith.addf %273, %352 : vector<64x32xf32>
    %c1_146 = arith.constant 1 : index
    %c0_147 = arith.constant 0 : index
    %c0_148 = arith.constant 0 : index
    %354 = vector.load %arg15[%c1_146, %c0_147, %c0_148] : memref<2x1x32xf32, #tpu.memory_space<vmem>>, vector<1x1x32xf32>
    %355 = vector.shape_cast %354 : vector<1x1x32xf32> to vector<1x32xf32>
    %356 = vector.broadcast %355 : vector<1x32xf32> to vector<64x32xf32>
    %357 = arith.addf %353, %356 : vector<64x32xf32>
    %358 = vector.extract_strided_slice %357 {offsets = [16, 0], sizes = [1, 32], strides = [1, 1]} : vector<64x32xf32> to vector<1x32xf32>
    %359 = vector.extract_strided_slice %357 {offsets = [48, 0], sizes = [1, 32], strides = [1, 1]} : vector<64x32xf32> to vector<1x32xf32>
    %360 = tpu.concatenate %358, %359 in 0 : vector<1x32xf32>, vector<1x32xf32> -> vector<2x32xf32>
    %c0_149 = arith.constant 0 : index
    %c0_150 = arith.constant 0 : index
    %361 = vector.load %arg16[%c0_149, %c0_150] : memref<1x32xf32, #tpu.memory_space<vmem>>, vector<1x32xf32>
    %c0_151 = arith.constant 0 : index
    %c0_152 = arith.constant 0 : index
    %362 = vector.load %arg17[%c0_151, %c0_152] : memref<1x32xf32, #tpu.memory_space<vmem>>, vector<1x32xf32>
    %cst_153 = arith.constant dense<0.000000e+00> : vector<2xf32>
    %363 = vector.multi_reduction <add>, %360, %cst_153 [1] : vector<2x32xf32> to vector<2xf32>
    %364 = vector.shape_cast %363 : vector<2xf32> to vector<2x1xf32>
    %cst_154 = arith.constant 3.200000e+01 : f32
    %365 = vector.broadcast %cst_154 : f32 to vector<2x1xf32>
    %366 = arith.divf %364, %365 : vector<2x1xf32>
    %367 = vector.broadcast %366 : vector<2x1xf32> to vector<2x32xf32>
    %368 = arith.subf %360, %367 : vector<2x32xf32>
    %369 = arith.mulf %368, %368 : vector<2x32xf32>
    %cst_155 = arith.constant dense<0.000000e+00> : vector<2xf32>
    %370 = vector.multi_reduction <add>, %369, %cst_155 [1] : vector<2x32xf32> to vector<2xf32>
    %371 = vector.shape_cast %370 : vector<2xf32> to vector<2x1xf32>
    %cst_156 = arith.constant 3.200000e+01 : f32
    %372 = vector.broadcast %cst_156 : f32 to vector<2x1xf32>
    %373 = arith.divf %371, %372 : vector<2x1xf32>
    %374 = vector.broadcast %366 : vector<2x1xf32> to vector<2x32xf32>
    %375 = arith.subf %360, %374 : vector<2x32xf32>
    %cst_157 = arith.constant 9.99999974E-6 : f32
    %376 = vector.broadcast %cst_157 : f32 to vector<2x1xf32>
    %377 = arith.addf %373, %376 : vector<2x1xf32>
    %378 = math.rsqrt %377 : vector<2x1xf32>
    %379 = vector.broadcast %378 : vector<2x1xf32> to vector<2x32xf32>
    %380 = arith.mulf %375, %379 : vector<2x32xf32>
    %381 = vector.broadcast %361 : vector<1x32xf32> to vector<2x32xf32>
    %382 = arith.mulf %380, %381 : vector<2x32xf32>
    %383 = vector.broadcast %362 : vector<1x32xf32> to vector<2x32xf32>
    %384 = arith.addf %382, %383 : vector<2x32xf32>
    %385 = arith.truncf %384 : vector<2x32xf32> to vector<2x32xbf16>
    %c0_158 = arith.constant 0 : index
    %c0_159 = arith.constant 0 : index
    %386 = vector.load %arg18[%c0_158, %c0_159] : memref<32x10xbf16, #tpu.memory_space<vmem>>, vector<32x10xbf16>
    %cst_160 = arith.constant dense<0.000000e+00> : vector<2x10xf32>
    %387 = tpu.matmul %385, %386, %cst_160 {dimension_numbers = #tpu.dot_dimension_numbers<[1], [0], [0], [1], [0, 0, 1, 1], [], []>} : vector<2x32xbf16>, vector<32x10xbf16>, vector<2x10xf32> -> vector<2x10xf32>
    %c0_161 = arith.constant 0 : index
    %c0_162 = arith.constant 0 : index
    %388 = vector.load %arg19[%c0_161, %c0_162] : memref<1x10xf32, #tpu.memory_space<vmem>>, vector<1x10xf32>
    %389 = vector.broadcast %388 : vector<1x10xf32> to vector<2x10xf32>
    %390 = arith.addf %387, %389 : vector<2x10xf32>
    %c0_163 = arith.constant 0 : index
    %c0_164 = arith.constant 0 : index
    %391 = vector.load %arg20[%c0_163, %c0_164] : memref<2x10xf32, #tpu.memory_space<vmem>>, vector<2x10xf32>
    tpu.vector_store %arg20[%c0_163, %c0_164], %390 {strides = array<i32>} : memref<2x10xf32, #tpu.memory_space<vmem>>, vector<2x10xf32>,
    return
  }
}

</mosaic_0001>

<bundles_post_ra>
// kernel: vit_forward.1
= control target key start
LH: loop header
LB: loop body
LE: loop exit
PB: predicated region body
PF: predicated region fallthrough
CT: control target
= control target key end

     0   :  { %s5635_s0 = inlined_call_operand.vmem [shape: bf16[32,48], index: 0, kind: input, shape index: {}]   ;;  %s5636_s1 = inlined_call_operand.vmem [shape: f32[32,32], index: 1, kind: input, shape index: {}]   ;;  %s5637_s2 = inlined_call_operand.vmem [shape: bf16[48,32], index: 2, kind: input, shape index: {}]   ;;  %s5638_s3 = inlined_call_operand.vmem [shape: f32[1,32], index: 3, kind: input, shape index: {}]   ;;  %s5639_s4 = inlined_call_operand.vmem [shape: f32[2,1,32], index: 4, kind: input, shape index: {}]   ;;  %s5640_s5 = inlined_call_operand.vmem [shape: f32[2,1,32], index: 5, kind: input, shape index: {}]   ;;  %s5641_s6 = inlined_call_operand.vmem [shape: bf16[2,32,96], index: 6, kind: input, shape index: {}]   ;;  %s5642_s7 = inlined_call_operand.vmem [shape: f32[2,1,96], index: 7, kind: input, shape index: {}]   ;;  %s5643_s8 = inlined_call_operand.vmem [shape: bf16[2,32,32], index: 8, kind: input, shape index: {}]   ;;  %s5644_s9 = inlined_call_operand.vmem [shape: f32[2,1,32], index: 9, kind: input, shape index: {}]   ;;  %s5645_s10 = inlined_call_operand.vmem [shape: f32[2,1,32], index: 10, kind: input, shape index: {}]   ;;  %s5646_s11 = inlined_call_operand.vmem [shape: f32[2,1,32], index: 11, kind: input, shape index: {}]   ;;  %s5647_s12 = inlined_call_operand.vmem [shape: bf16[2,32,64], index: 12, kind: input, shape index: {}]   ;;  %s5648_s13 = inlined_call_operand.vmem [shape: f32[2,1,64], index: 13, kind: input, shape index: {}]   ;;  %s5649_s14 = inlined_call_operand.vmem [shape: bf16[2,64,32], index: 14, kind: input, shape index: {}]   ;;  %s5650_s15 = inlined_call_operand.vmem [shape: f32[2,1,32], index: 15, kind: input, shape index: {}]   ;;  %s5651_s16 = inlined_call_operand.vmem [shape: f32[1,32], index: 16, kind: input, shape index: {}]   ;;  %s5652_s17 = inlined_call_operand.vmem [shape: f32[1,32], index: 17, kind: input, shape index: {}]   ;;  %s5653_s18 = inlined_call_operand.vmem [shape: bf16[32,10], index: 18, kind: input, shape index: {}]   ;;  %s5654_s19 = inlined_call_operand.vmem [shape: f32[1,10], index: 19, kind: input, shape index: {}]   ;;  %s5655_s20 = inlined_call_operand.hbm [shape: f32[2,10], index: 20, kind: output, shape index: {}]  }
   0x1   :  { %5661 = sst [smem:[#allocation5_spill]] %s5635_s0 }
   0x2   :  { %5662 = sst [smem:[#allocation6_spill]] %s5636_s1 }
   0x3   :  { %5663 = sst [smem:[#allocation7_spill]] %s5637_s2 }
   0x4   :  { %5664 = sst [smem:[#allocation8_spill]] %s5638_s3 }
   0x5   :  { %5665 = sst [smem:[#allocation9_spill]] %s5639_s4 }
   0x6   :  { %5666 = sst [smem:[#allocation10_spill]] %s5650_s15 }
   0x7   :  { %s5667_s23 = sld [smem:[#allocation7_spill]]  ;;  %vm150_vm0 = vcmask 261120  }
   0x8   :  { %s5668_s15 = sld [smem:[#allocation6_spill]] }
   0x9   :  { %s5669_s0 = sld [smem:[#allocation5_spill]] }
   0xd   :  { %v3730_v0 = vld [vmem:[%s5667_s23 + $0x10] sm:$0xff]  ;;  %v3729_v2 = vld [vmem:[%s5667_s23 + $0x8] sm:$0xff]  ;;  %v3728_v6 = vld [vmem:[%s5667_s23] sm:$0xff] }
   0xe   :  { %v137_v1 = vld [vmem:[%s5668_s15 + $0x10] sm:$0xff]  ;;  %121 = vmatpush.bf16.msra.mxu2 %v3730_v0  ;;  %v138_v4 = vld [vmem:[%s5668_s15 + $0x18] sm:$0xff] }
   0xf   :  { %v157_v3 = vsel %vm150_vm0, %v137_v1, 0.0  ;;  %v160_v5 = vsel %vm150_vm0, %v138_v4, 0.0  ;;  %v3726_v7 = vld [vmem:[%s5669_s0] sm:$0xff] }
  0x10   :  { %158 = vadd.xlane.f32.xlu0 %v157_v3 }
  0x12   :  { %122 = vmatpush.bf16.msra.mxu2 %v3729_v2 }
  0x13   :  { %25 = vsyncpa [#allocation3], 0  ;;  %vm109_vm1 = vcmask 392192   ;;  %v3727_v8 = vld [vmem:[%s5669_s0 + $0x8] sm:$0xff]  ;;  %v4066_v9 = vmov 32.0   ;;  %s5670_s24 = sld [smem:[#allocation8_spill]] }
  0x14   :  { %3782 = vrcp.f32 %v4066_v9  ;;  %v135_v23 = vld [vmem:[%s5668_s15] sm:$0xff]  ;;  %v136_v28 = vld [vmem:[%s5668_s15 + $0x8] sm:$0xff]  ;;  %s5671_s21 = sld [smem:[#allocation9_spill]]  ;;  %s4067_s2 = smov 112  }
  0x15   :  { %v3732_v59 = vld [vmem:[%s5641_s6 + $0x8] sm:$0xff]  ;;  %v3731_v63 = vld [vmem:[%s5641_s6] sm:$0xff]  ;;  %s4068_s25 = smov 96   ;;  %s4069_s3 = smov 64  }
  0x16   :  { %123 = vmatpush.bf16.msra.mxu2 %v3728_v6  ;;  %3753 = vmatpush.bf16.msra.mxu1 %v3732_v59  ;;  %s4070_s26 = smov 16   ;;  %s5672_s23 = sld [smem:[#allocation10_spill]] }
  0x17   :  { %346 = vmatpush.bf16.msra.mxu0 %v3732_v59  ;;  %s4072_s22 = smov [#allocation2]  }
  0x18   :  { %161 = vadd.xlane.f32.xlu0 %v160_v5 }
  0x19   :  { %3543 = vmatmul.msk.bf16.vlgmr.msra.gmra.mxu2 %vm109_vm1, %v3726_v7  ;;  %v3762_v21 = vld [vmem:[%s5670_s24] ss:$0 sm:$0xff] }
  0x1a   :  { %v3783_v10 = vpop.eup %3782  ;;  %3754 = vmatpush.bf16.msra.mxu1 %v3731_v63 }
  0x1b   :  { %v170_v11 = vmul.f32 32.0, %v3783_v10  ;;  %vm174_vm2 = vweird.f32 %v3783_v10  ;;  %347 = vmatpush.bf16.msra.mxu0 %v3731_v63 }
  0x1d   :  { %v171_v12 = vsub.f32 1.0, %v170_v11 }
  0x1f   :  { %v172_v13 = vmul.f32 %v3783_v10, %v171_v12 }
  0x21   :  { %v173_v14 = vadd.f32 %v3783_v10, %v172_v13 }
  0x23   :  { %v4201_v15 = vsel %vm174_vm2, %v3783_v10, %v173_v14 }
  0x29   :  { %3544 = vmatmul.msk.bf16.gmra.mxu2 %vm109_vm1, %v3727_v8 }
  0x83   :  { %v159_v16 = vpop.xlane.xlu0 %158 }
  0x84   :  { %v178_v17 = vmul.f32 %v4201_v15, %v159_v16 }
  0x86   :  { %v4204_v18 = vsub.f32 %v137_v1, %v178_v17 }
  0x88   :  { %v190_v19 = vmul.f32 %v4204_v18, %v4204_v18 }
  0x8a   :  { %v200_v20 = vsel %vm150_vm0, %v190_v19, 0.0 }
  0x8b   :  { %201 = vadd.xlane.f32.xlu0 %v200_v20  ;;  %v162_v35 = vpop.xlane.xlu0 %161 }
  0x8c   :  { %v179_v37 = vmul.f32 %v4201_v15, %v162_v35 }
  0x8e   :  { %v4233_v41 = vsub.f32 %v138_v4, %v179_v37 }
  0x90   :  { %v191_v43 = vmul.f32 %v4233_v41, %v4233_v41 }
  0x92   :  { %v203_v44 = vsel %vm150_vm0, %v191_v43, 0.0 }
  0x9c   :  { %v125_v22 = vpop.f32.mrf.mxu2 }
  0x9d   :  { %v126_v24 = vadd.f32 %v3762_v21, %v125_v22 }
  0x9f   :  { %v4215_v25 = vadd.f32 %v135_v23, %v126_v24  ;;  %v4280_v24 = vld [vmem:[%s5671_s21] ss:$0 sm:$0xff] }
  0xa1   :  { %v151_v26 = vsel %vm150_vm0, %v4215_v25, 0.0 }
  0xa2   :  { %152 = vadd.xlane.f32.xlu2 %v151_v26 }
  0xa4   :  { %v127_v27 = vpop.f32.mrf.mxu2 }
  0xa5   :  { %v128_v29 = vadd.f32 %v3762_v21, %v127_v27 }
  0xa7   :  { %v4222_v30 = vadd.f32 %v136_v28, %v128_v29 }
  0xa9   :  { %v154_v31 = vsel %vm150_vm0, %v4222_v30, 0.0 }
  0xaa   :  { %155 = vadd.xlane.f32.xlu2 %v154_v31  ;;  %v4287_v31 = vld [vmem:[%s5640_s5] ss:$0 sm:$0xff] }
  0xac   :  { %v130_v32 = vpop.f32.mrf.mxu2 }
  0xad   :  { %v131_v33 = vadd.f32 %v3762_v21, %v130_v32 }
  0xaf   :  { %v4226_v34 = vadd.f32 %v135_v23, %v131_v33 }
  0xb1   :  { %v163_v36 = vsel %vm150_vm0, %v4226_v34, 0.0 }
  0xb2   :  { %164 = vadd.xlane.f32.xlu1 %v163_v36 }
  0xb4   :  { %v132_v38 = vpop.f32.mrf.mxu2 }
  0xb5   :  { %v133_v39 = vadd.f32 %v3762_v21, %v132_v38 }
  0xb7   :  { %v4231_v40 = vadd.f32 %v136_v28, %v133_v39 }
  0xb9   :  { %v166_v42 = vsel %vm150_vm0, %v4231_v40, 0.0 }
  0xba   :  { %167 = vadd.xlane.f32.xlu1 %v166_v42 }
  0xc2   :  { %204 = vadd.xlane.f32.xlu1 %v203_v44 }
  0xfe   :  { %v202_v50 = vpop.xlane.xlu0 %201 }
  0xff   :  { %v214_v51 = vmul.f32 %v202_v50, %v4201_v15 }
 0x101   :  { %v220_v52 = vadd.f32 1e-05, %v214_v51 }
 0x103   :  { %3784 = vrsqrt.f32 %v220_v52  ;;  %vm250_vm3 = vweird.f32 %v220_v52 }
 0x109   :  { %v3785_v0 = vpop.eup %3784 }
 0x10a   :  { %v245_v4 = vmul.f32 %v3785_v0, %v220_v52  ;;  %vm251_vm4 = vweird.f32 %v3785_v0 }
 0x10b   :  { %vm252_vm5 = vmor %vm250_vm3, %vm251_vm4 }
 0x10c   :  { %v246_v8 = vmul.f32 %v3785_v0, %v245_v4 }
 0x10e   :  { %v247_v12 = vmul.f32 0.5, %v246_v8 }
 0x110   :  { %v248_v13 = vsub.f32 1.5, %v247_v12 }
 0x112   :  { %v249_v16 = vmul.f32 %v3785_v0, %v248_v13 }
 0x114   :  { %v253_v20 = vsel %vm252_vm5, %v3785_v0, %v249_v16 }
 0x115   :  { %v153_v45 = vpop.xlane.xlu2 %152  ;;  %v286_v23 = vmul.f32 %v253_v20, %v4204_v18 }
 0x116   :  { %v176_v46 = vmul.f32 %v4201_v15, %v153_v45 }
 0x117   :  { %v295_v29 = vmul.f32 %v4280_v24, %v286_v23 }
 0x118   :  { %v4242_v47 = vsub.f32 %v4215_v25, %v176_v46 }
 0x119   :  { %v304_v18 = vadd.f32 %v4287_v31, %v295_v29 }
 0x11a   :  { %v188_v48 = vmul.f32 %v4242_v47, %v4242_v47 }
 0x11c   :  { %v194_v49 = vsel %vm150_vm0, %v188_v48, 0.0 }
 0x11d   :  { %195 = vadd.xlane.f32.xlu1 %v194_v49  ;;  %v156_v53 = vpop.xlane.xlu2 %155 }
 0x11e   :  { %v177_v56 = vmul.f32 %v4201_v15, %v156_v53 }
 0x120   :  { %v4259_v60 = vsub.f32 %v4222_v30, %v177_v56 }
 0x122   :  { %v189_v3 = vmul.f32 %v4259_v60, %v4259_v60 }
 0x124   :  { %v197_v7 = vsel %vm150_vm0, %v189_v3, 0.0 }
 0x125   :  { %v165_v54 = vpop.xlane.xlu1 %164 }
 0x126   :  { %v180_v55 = vmul.f32 %v4201_v15, %v165_v54 }
 0x128   :  { %v4251_v57 = vsub.f32 %v4226_v34, %v180_v55 }
 0x12a   :  { %v192_v58 = vmul.f32 %v4251_v57, %v4251_v57 }
 0x12c   :  { %v206_v61 = vsel %vm150_vm0, %v192_v58, 0.0 }
 0x12d   :  { %v168_v62 = vpop.xlane.xlu1 %167  ;;  %207 = vadd.xlane.f32.xlu2 %v206_v61 }
 0x12e   :  { %v181_v1 = vmul.f32 %v4201_v15, %v168_v62 }
 0x130   :  { %v4267_v2 = vsub.f32 %v4231_v40, %v181_v1 }
 0x132   :  { %v193_v5 = vmul.f32 %v4267_v2, %v4267_v2 }
 0x134   :  { %v209_v6 = vsel %vm150_vm0, %v193_v5, 0.0 }
 0x135   :  { %210 = vadd.xlane.f32.xlu0 %v209_v6  ;;  %v205_v9 = vpop.xlane.xlu1 %204  ;;  %198 = vadd.xlane.f32.xlu2 %v197_v7 }
 0x136   :  { %v215_v10 = vmul.f32 %v205_v9, %v4201_v15 }
 0x138   :  { %v221_v11 = vadd.f32 1e-05, %v215_v10 }
 0x13a   :  { %3786 = vrsqrt.f32 %v221_v11  ;;  %vm260_vm6 = vweird.f32 %v221_v11 }
 0x140   :  { %v3787_v14 = vpop.eup %3786 }
 0x141   :  { %v255_v17 = vmul.f32 %v3787_v14, %v221_v11  ;;  %vm261_vm7 = vweird.f32 %v3787_v14 }
 0x142   :  { %vm262_vm8 = vmor %vm260_vm6, %vm261_vm7  ;;  %vm411_vm6 = vcmask 130048  }
 0x143   :  { %v256_v19 = vmul.f32 %v3787_v14, %v255_v17 }
 0x145   :  { %v257_v21 = vmul.f32 0.5, %v256_v19 }
 0x147   :  { %v258_v22 = vsub.f32 1.5, %v257_v21 }
 0x149   :  { %v259_v26 = vmul.f32 %v3787_v14, %v258_v22 }
 0x14b   :  { %v263_v27 = vsel %vm262_vm8, %v3787_v14, %v259_v26 }
 0x14c   :  { %v287_v28 = vmul.f32 %v263_v27, %v4233_v41 }
 0x14e   :  { %v296_v32 = vmul.f32 %v4280_v24, %v287_v28 }
 0x150   :  { %v305_v33 = vadd.f32 %v4287_v31, %v296_v32 }
 0x152   :  { %v4292_v35 = vpack.c.bf16 %v305_v33, %v304_v18 }
 0x154   :  { %3554 = vmatmul.msk.bf16.vlgmr.msra.gmra.mxu1 %vm150_vm0, %v4292_v35 }
 0x190   :  { %v196_v36 = vpop.xlane.xlu1 %195 }
 0x191   :  { %v212_v37 = vmul.f32 %v196_v36, %v4201_v15 }
 0x193   :  { %v218_v38 = vadd.f32 1e-05, %v212_v37 }
 0x195   :  { %3788 = vrsqrt.f32 %v218_v38  ;;  %vm230_vm12 = vweird.f32 %v218_v38 }
 0x19b   :  { %v3789_v42 = vpop.eup %3788 }
 0x19c   :  { %v225_v44 = vmul.f32 %v3789_v42, %v218_v38  ;;  %vm231_vm10 = vweird.f32 %v3789_v42 }
 0x19d   :  { %vm232_vm14 = vmor %vm230_vm12, %vm231_vm10 }
 0x19e   :  { %v226_v48 = vmul.f32 %v3789_v42, %v225_v44 }
 0x1a0   :  { %v208_v39 = vpop.xlane.xlu2 %207  ;;  %v227_v55 = vmul.f32 0.5, %v226_v48 }
 0x1a1   :  { %v216_v41 = vmul.f32 %v208_v39, %v4201_v15 }
 0x1a2   :  { %v228_v59 = vsub.f32 1.5, %v227_v55 }
 0x1a3   :  { %v222_v43 = vadd.f32 1e-05, %v216_v41 }
 0x1a4   :  { %v229_v3 = vmul.f32 %v3789_v42, %v228_v59 }
 0x1a5   :  { %3790 = vrsqrt.f32 %v222_v43  ;;  %vm270_vm11 = vweird.f32 %v222_v43 }
 0x1a6   :  { %v233_v9 = vsel %vm232_vm14, %v3789_v42, %v229_v3 }
 0x1a7   :  { %v284_v16 = vmul.f32 %v233_v9, %v4242_v47 }
 0x1a8   :  { %v211_v45 = vpop.xlane.xlu0 %210  ;;  %v199_v46 = vpop.xlane.xlu2 %198 }
 0x1a9   :  { %v217_v49 = vmul.f32 %v211_v45, %v4201_v15  ;;  %v213_v50 = vmul.f32 %v199_v46, %v4201_v15  ;;  %v293_v26 = vmul.f32 %v4280_v24, %v284_v16 }
 0x1ab   :  { %v3791_v51 = vpop.eup %3790  ;;  %v223_v52 = vadd.f32 1e-05, %v217_v49  ;;  %v219_v53 = vadd.f32 1e-05, %v213_v50  ;;  %v302_v29 = vadd.f32 %v4287_v31, %v293_v26 }
 0x1ac   :  { %v265_v54 = vmul.f32 %v3791_v51, %v222_v43  ;;  %vm271_vm9 = vweird.f32 %v3791_v51 }
 0x1ad   :  { %3792 = vrsqrt.f32 %v223_v52  ;;  %vm272_vm13 = vmor %vm270_vm11, %vm271_vm9  ;;  %vm280_vm2 = vweird.f32 %v223_v52  ;;  %vm240_vm4 = vweird.f32 %v219_v53 }
 0x1ae   :  { %v266_v56 = vmul.f32 %v3791_v51, %v265_v54  ;;  %3794 = vrsqrt.f32 %v219_v53 }
 0x1b0   :  { %v267_v58 = vmul.f32 0.5, %v266_v56 }
 0x1b2   :  { %v268_v61 = vsub.f32 1.5, %v267_v58 }
 0x1b3   :  { %v3793_v62 = vpop.eup %3792 }
 0x1b4   :  { %v3795_v63 = vpop.eup %3794  ;;  %v269_v0 = vmul.f32 %v3791_v51, %v268_v61  ;;  %v275_v1 = vmul.f32 %v3793_v62, %v223_v52  ;;  %vm281_vm15 = vweird.f32 %v3793_v62 }
 0x1b5   :  { %v235_v4 = vmul.f32 %v3795_v63, %v219_v53  ;;  %vm241_vm1 = vweird.f32 %v3795_v63  ;;  %vm282_vm3 = vmor %vm280_vm2, %vm281_vm15 }
 0x1b6   :  { %v276_v5 = vmul.f32 %v3793_v62, %v275_v1  ;;  %v273_v7 = vsel %vm272_vm13, %v3791_v51, %v269_v0  ;;  %vm242_vm5 = vmor %vm240_vm4, %vm241_vm1 }
 0x1b7   :  { %v236_v6 = vmul.f32 %v3795_v63, %v235_v4  ;;  %v288_v13 = vmul.f32 %v273_v7, %v4251_v57 }
 0x1b8   :  { %v277_v8 = vmul.f32 0.5, %v276_v5 }
 0x1b9   :  { %v237_v10 = vmul.f32 0.5, %v236_v6  ;;  %v297_v22 = vmul.f32 %v4280_v24, %v288_v13 }
 0x1ba   :  { %v278_v11 = vsub.f32 1.5, %v277_v8 }
 0x1bb   :  { %v238_v12 = vsub.f32 1.5, %v237_v10  ;;  %v306_v47 = vadd.f32 %v4287_v31, %v297_v22 }
 0x1bc   :  { %v279_v14 = vmul.f32 %v3793_v62, %v278_v11 }
 0x1bd   :  { %v239_v17 = vmul.f32 %v3795_v63, %v238_v12 }
 0x1be   :  { %v283_v19 = vsel %vm282_vm3, %v3793_v62, %v279_v14 }
 0x1bf   :  { %v243_v20 = vsel %vm242_vm5, %v3795_v63, %v239_v17  ;;  %v289_v21 = vmul.f32 %v283_v19, %v4267_v2 }
 0x1c0   :  { %v285_v23 = vmul.f32 %v243_v20, %v4259_v60  ;;  %v3765_v60 = vld [vmem:[%s5642_s7] ss:$0 sm:$0xff] }
 0x1c1   :  { %v298_v57 = vmul.f32 %v4280_v24, %v289_v21 }
 0x1c2   :  { %v294_v27 = vmul.f32 %v4280_v24, %v285_v23 }
 0x1c3   :  { %v307_v28 = vadd.f32 %v4287_v31, %v298_v57 }
 0x1c4   :  { %v303_v32 = vadd.f32 %v4287_v31, %v294_v27 }
 0x1c5   :  { %v310_v18 = vpack.c.bf16 %v307_v28, %v306_v47 }
 0x1c6   :  { %v308_v2 = vpack.c.bf16 %v303_v32, %v302_v29 }
 0x1c7   :  { %3555 = vmatmul.msk.bf16.gmra.mxu1 %vm150_vm0, %v310_v18 }
 0x1c8   :  { %3553 = vmatmul.msk.bf16.vlgmr.msra.gmra.mxu0 %vm150_vm0, %v308_v2 }
 0x1d1   :  { %v354_v33 = vpop.f32.mrf.mxu1 }
 0x1d2   :  { %v355_v24 = vadd.f32 %v3765_v60, %v354_v33 }
 0x1d4   :  { %v371_v36 = vpack.c.bf16 %v355_v24, %v355_v24 }
 0x1d6   :  { %389 = vrot.lane.b32.xlu0 %v371_v36, %s4067_s2  ;;  %v403_v39 = vunpack.c.l.b16 %v371_v36 }
 0x1d7   :  { %3556 = vmatmul.msk.bf16.gmra.mxu1 %vm150_vm0, %v4292_v35 }
 0x1d9   :  { %v356_v31 = vpop.f32.mrf.mxu1 }
 0x1da   :  { %v357_v37 = vadd.f32 %v3765_v60, %v356_v31 }
 0x1dc   :  { %v372_v38 = vpack.c.bf16 %v357_v37, %v357_v37 }
 0x1de   :  { %v404_v41 = vunpack.c.l.b16 %v372_v38  ;;  %391 = vrot.lane.b32.xlu1 %v372_v38, %s4067_s2 }
 0x1e0   :  { %v4321_v42 = vpack.c.b16 %v404_v41, %v403_v39 }
 0x244   :  { %v359_v43 = vpop.f32.mrf.mxu1 }
 0x245   :  { %v349_v44 = vpop.f32.mrf.mxu0  ;;  %v360_v48 = vadd.f32 %v3765_v60, %v359_v43 }
 0x246   :  { %v350_v45 = vadd.f32 %v3765_v60, %v349_v44 }
 0x247   :  { %v373_v50 = vpack.c.bf16 %v360_v48, %v360_v48 }
 0x248   :  { %v369_v46 = vpack.c.bf16 %v350_v45, %v350_v45  ;;  %v390_v9 = vpop.permute.xlu0 %389 }
 0x249   :  { %v443_v55 = vunpack.c.l.b16 %v373_v50  ;;  %v486_v12 = vunpack.c.l.b16 %v390_v9 }
 0x24a   :  { %385 = vrot.lane.b32.xlu2 %v369_v46, %s4067_s2  ;;  %v401_v3 = vunpack.c.l.b16 %v369_v46 }
 0x24c   :  { %v361_v49 = vpop.f32.mrf.mxu1 }
 0x24d   :  { %v351_v51 = vpop.f32.mrf.mxu0  ;;  %v362_v35 = vadd.f32 %v3765_v60, %v361_v49 }
 0x24e   :  { %v352_v52 = vadd.f32 %v3765_v60, %v351_v51 }
 0x24f   :  { %v374_v53 = vpack.c.bf16 %v362_v35, %v362_v35  ;;  %v145_v35 = vlaneseq }
 0x250   :  { %v370_v54 = vpack.c.bf16 %v352_v52, %v352_v52  ;;  %v392_v5 = vpop.permute.xlu1 %391 }
 0x251   :  { %v444_v56 = vunpack.c.l.b16 %v374_v53  ;;  %v487_v10 = vunpack.c.l.b16 %v392_v5  ;;  %v4371_v52 = vand.u32 127, %v145_v35 }
 0x252   :  { %387 = vrot.lane.b32.xlu0 %v370_v54, %s4067_s2  ;;  %v402_v63 = vunpack.c.l.b16 %v370_v54 }
 0x253   :  { %v4325_v58 = vpack.c.b16 %v444_v56, %v443_v55  ;;  %v489_v13 = vpack.c.b16 %v487_v10, %v486_v12  ;;  %vm147_vm7 = vcmp.lt.s32.totalorder %v4371_v52, 17 }
 0x254   :  { %v364_v59 = vpop.f32.mrf.mxu1  ;;  %v4329_v6 = vpack.c.b16 %v402_v63, %v401_v3 }
 0x255   :  { %v365_v61 = vadd.f32 %v3765_v60, %v364_v59 }
 0x257   :  { %v375_v62 = vpack.c.bf16 %v365_v61, %v365_v61 }
 0x259   :  { %397 = vrot.lane.b32.xlu2 %v375_v62, %s4067_s2  ;;  %v445_v7 = vunpack.c.l.b16 %v375_v62 }
 0x25a   :  { %393 = vrot.lane.b32.xlu0 %v373_v50, %s4067_s2 }
 0x25c   :  { %v366_v0 = vpop.f32.mrf.mxu1 }
 0x25d   :  { %v367_v1 = vadd.f32 %v3765_v60, %v366_v0 }
 0x25f   :  { %v376_v4 = vpack.c.bf16 %v367_v1, %v367_v1 }
 0x261   :  { %v446_v8 = vunpack.c.l.b16 %v376_v4  ;;  %399 = vrot.lane.b32.xlu1 %v376_v4, %s4067_s2  ;;  %395 = vrot.lane.b32.xlu2 %v374_v53, %s4067_s2 }
 0x262   :  { %407 = vrot.lane.b32.xlu0 %v4329_v6, %s4068_s25 }
 0x263   :  { %v4335_v11 = vpack.c.b16 %v446_v8, %v445_v7 }
 0x269   :  { %409 = vrot.lane.b32.xlu1 %v4321_v42, %s4068_s25  ;;  %492 = vrot.lane.b32.xlu2 %v489_v13, %s4068_s25 }
 0x2a4   :  { %v386_v14 = vpop.permute.xlu2 %385 }
 0x2a5   :  { %v484_v22 = vunpack.c.l.b16 %v386_v14 }
 0x2b3   :  { %v398_v16 = vpop.permute.xlu2 %397 }
 0x2b4   :  { %v527_v32 = vunpack.c.l.b16 %v398_v16 }
 0x2bb   :  { %v396_v17 = vpop.permute.xlu2 %395 }
 0x2bc   :  { %v526_v27 = vunpack.c.l.b16 %v396_v17 }
 0x2c3   :  { %v493_v19 = vpop.permute.xlu2 %492 }
 0x2c4   :  { %v388_v20 = vpop.permute.xlu0 %387  ;;  %v504_v21 = vsel %vm411_vm6, %v493_v19, 0 }
 0x2c5   :  { %v485_v23 = vunpack.c.l.b16 %v388_v20  ;;  %512 = vmatpush.bf16.xpose.msrb.mxu0 %v504_v21 }
 0x2c7   :  { %v488_v26 = vpack.c.b16 %v485_v23, %v484_v22 }
 0x2c9   :  { %490 = vrot.lane.b32.xlu1 %v488_v26, %s4068_s25 }
 0x2cc   :  { %v394_v57 = vpop.permute.xlu0 %393 }
 0x2cd   :  { %v525_v47 = vunpack.c.l.b16 %v394_v57 }
 0x2cf   :  { %v4342_v28 = vpack.c.b16 %v526_v27, %v525_v47 }
 0x2d1   :  { %451 = vrot.lane.b32.xlu1 %v4335_v11, %s4068_s25  ;;  %531 = vrot.lane.b32.xlu2 %v4342_v28, %s4068_s25 }
 0x2d3   :  { %v400_v29 = vpop.permute.xlu1 %399 }
 0x2d4   :  { %v528_v18 = vunpack.c.l.b16 %v400_v29  ;;  %v408_v24 = vpop.permute.xlu0 %407 }
 0x2d5   :  { %v419_v36 = vsel %vm411_vm6, %v408_v24, 0 }
 0x2d6   :  { %v530_v2 = vpack.c.b16 %v528_v18, %v527_v32 }
 0x2d8   :  { %533 = vrot.lane.b32.xlu0 %v530_v2, %s4068_s25 }
 0x2d9   :  { %868 = vrot.lane.b32.xlu2 %v488_v26, %s4069_s3 }
 0x2db   :  { %v410_v60 = vpop.permute.xlu1 %409 }
 0x2dc   :  { %v422_v33 = vsel %vm411_vm6, %v410_v60, 0 }
 0x2dd   :  { %430 = vmatpush.bf16.xpose.msrb.mxu2 %v422_v33 }
 0x2e0   :  { %449 = vrot.lane.b32.xlu0 %v4325_v58, %s4068_s25 }
 0x2e5   :  { %431 = vmatpush.bf16.xpose.msrb.mxu2 %v419_v36 }
 0x2e8   :  { %870 = vrot.lane.b32.xlu0 %v489_v13, %s4069_s3 }
 0x2ec   :  { %3557 = vmatmul.msk.bf16.vlgmr.msrb.gmra.mxu2 %vm411_vm6, %v4329_v6 }
 0x2f0   :  { %911 = vrot.lane.b32.xlu0 %v530_v2, %s4069_s3 }
 0x2fc   :  { %3558 = vmatmul.msk.bf16.gmra.mxu2 %vm411_vm6, %v4321_v42 }
 0x32b   :  { %v532_v44 = vpop.permute.xlu2 %531 }
 0x32c   :  { %v542_v48 = vsel %vm411_vm6, %v532_v44, 0 }
 0x333   :  { %v869_v50 = vpop.permute.xlu2 %868 }
 0x33b   :  { %v491_v31 = vpop.permute.xlu1 %490 }
 0x33c   :  { %v501_v37 = vsel %vm411_vm6, %v491_v31, 0 }
 0x33d   :  { %513 = vmatpush.bf16.xpose.msrb.mxu0 %v501_v37 }
 0x343   :  { %v452_v38 = vpop.permute.xlu1 %451 }
 0x344   :  { %3561 = vmatmul.msk.bf16.vlgmr.msrb.gmra.mxu0 %vm411_vm6, %v488_v26  ;;  %v463_v39 = vsel %vm411_vm6, %v452_v38, 0 }
 0x345   :  { %471 = vmatpush.bf16.xpose.msra.mxu3 %v463_v39 }
 0x34a   :  { %v534_v41 = vpop.permute.xlu0 %533 }
 0x34b   :  { %v545_v43 = vsel %vm411_vm6, %v534_v41, 0 }
 0x34c   :  { %553 = vmatpush.bf16.xpose.msra.mxu2 %v545_v43 }
 0x352   :  { %v450_v45 = vpop.permute.xlu0 %449 }
 0x353   :  { %v460_v46 = vsel %vm411_vm6, %v450_v45, 0 }
 0x354   :  { %3562 = vmatmul.msk.bf16.gmra.mxu0 %vm411_vm6, %v489_v13  ;;  %472 = vmatpush.bf16.xpose.msra.mxu3 %v460_v46 }
 0x355   :  { %554 = vmatpush.bf16.xpose.msra.mxu2 %v542_v48 }
 0x35a   :  { %v871_v49 = vpop.permute.xlu0 %870 }
 0x35b   :  { %3559 = vmatmul.msk.bf16.vlgmr.msra.gmra.mxu3 %vm411_vm6, %v4325_v58  ;;  %886 = vmatpush.bf16.msra.mxu0 %v871_v49 }
 0x35c   :  { %3563 = vmatmul.msk.bf16.vlgmr.msra.gmra.mxu2 %vm411_vm6, %v4342_v28 }
 0x35f   :  { %887 = vmatpush.bf16.msra.mxu0 %v869_v50 }
 0x362   :  { %v912_v51 = vpop.permute.xlu0 %911 }
 0x363   :  { %927 = vmatpush.bf16.msrb.mxu2 %v912_v51 }
 0x36b   :  { %3560 = vmatmul.msk.bf16.gmra.mxu3 %vm411_vm6, %v4335_v11 }
 0x36c   :  { %3564 = vmatmul.msk.bf16.gmra.mxu2 %vm411_vm6, %v530_v2 }
 0x36f   :  { %v433_v53 = vpop.f32.mrf.mxu2 }
 0x370   :  { %v568_v54 = vsel %vm147_vm7, %v433_v53, -1e+30 }
 0x371   :  { %v584_v55 = vsel %vm150_vm0, %v568_v54, -inf }
 0x372   :  { %585 = vmax.xlane.f32.xlu2 %v584_v55 }
 0x377   :  { %v435_v56 = vpop.f32.mrf.mxu2 }
 0x378   :  { %v569_v59 = vsel %vm147_vm7, %v435_v56, -1e+30 }
 0x379   :  { %v587_v61 = vsel %vm150_vm0, %v569_v59, -inf }
 0x37a   :  { %588 = vmax.xlane.f32.xlu1 %v587_v61 }
 0x37f   :  { %v438_v62 = vpop.f32.mrf.mxu2 }
 0x380   :  { %v4385_v63 = vsel %vm147_vm7, %v438_v62, -1e+30 }
 0x381   :  { %v590_v0 = vsel %vm150_vm0, %v4385_v63, -inf }
 0x382   :  { %591 = vmax.xlane.f32.xlu1 %v590_v0 }
 0x387   :  { %v440_v1 = vpop.f32.mrf.mxu2 }
 0x388   :  { %v4391_v3 = vsel %vm147_vm7, %v440_v1, -1e+30 }
 0x389   :  { %v593_v4 = vsel %vm150_vm0, %v4391_v3, -inf }
 0x38a   :  { %594 = vmax.xlane.f32.xlu0 %v593_v4 }
 0x3c1   :  { %v515_v5 = vpop.f32.mrf.mxu0 }
 0x3c2   :  { %v4397_v7 = vsel %vm147_vm7, %v515_v5, -1e+30 }
 0x3c3   :  { %v608_v8 = vsel %vm150_vm0, %v4397_v7, -inf }
 0x3c4   :  { %609 = vmax.xlane.f32.xlu2 %v608_v8 }
 0x3c9   :  { %v517_v9 = vpop.f32.mrf.mxu0 }
 0x3ca   :  { %v577_v48 = vsel %vm147_vm7, %v517_v9, -1e+30 }
 0x3cb   :  { %v611_v50 = vsel %vm150_vm0, %v577_v48, -inf }
 0x3d1   :  { %v520_v10 = vpop.f32.mrf.mxu0 }
 0x3d2   :  { %v4415_v21 = vsel %vm147_vm7, %v520_v10, -1e+30 }
 0x3d3   :  { %v614_v57 = vsel %vm150_vm0, %v4415_v21, -inf }
 0x3d9   :  { %v522_v12 = vpop.f32.mrf.mxu0 }
 0x3da   :  { %v4403_v13 = vsel %vm147_vm7, %v522_v12, -1e+30 }
 0x3db   :  { %v617_v14 = vsel %vm150_vm0, %v4403_v13, -inf }
 0x3dc   :  { %618 = vmax.xlane.f32.xlu2 %v617_v14 }
 0x3de   :  { %v474_v16 = vpop.f32.mrf.mxu3 }
 0x3df   :  { %v4409_v17 = vsel %vm147_vm7, %v474_v16, -1e+30  ;;  %v556_v19 = vpop.f32.mrf.mxu2 }
 0x3e0   :  { %v596_v20 = vsel %vm150_vm0, %v4409_v17, -inf  ;;  %v580_v56 = vsel %vm147_vm7, %v556_v19, -1e+30 }
 0x3e1   :  { %597 = vmax.xlane.f32.xlu0 %v596_v20 }
 0x3e5   :  { %v586_v33 = vpop.xlane.xlu2 %585 }
 0x3e6   :  { %v476_v22 = vpop.f32.mrf.mxu3  ;;  %v632_v31 = vsub.f32 %v568_v54, %v586_v33 }
 0x3e7   :  { %v558_v23 = vpop.f32.mrf.mxu2  ;;  %v4419_v26 = vsel %vm147_vm7, %v476_v22, -1e+30 }
 0x3e8   :  { %v599_v27 = vsel %vm150_vm0, %v4419_v26, -inf  ;;  %v4427_v47 = vsel %vm147_vm7, %v558_v23, -1e+30  ;;  %v648_v45 = vmul.f32 1.442695, %v632_v31 }
 0x3e9   :  { %615 = vmax.xlane.f32.xlu0 %v614_v57  ;;  %600 = vmax.xlane.f32.xlu1 %v599_v27  ;;  %v623_v2 = vsel %vm150_vm0, %v4427_v47, -inf }
 0x3ea   :  { %3796 = vpow2.f32 %v648_v45 }
 0x3ed   :  { %v589_v46 = vpop.xlane.xlu1 %588 }
 0x3ee   :  { %v479_v29 = vpop.f32.mrf.mxu3  ;;  %v633_v49 = vsub.f32 %v569_v59, %v589_v46  ;;  %v620_v59 = vsel %vm150_vm0, %v580_v56, -inf }
 0x3ef   :  { %v4431_v32 = vsel %vm147_vm7, %v479_v29, -1e+30  ;;  %v561_v18 = vpop.f32.mrf.mxu2 }
 0x3f0   :  { %v602_v60 = vsel %vm150_vm0, %v4431_v32, -inf  ;;  %v4439_v24 = vsel %vm147_vm7, %v561_v18, -1e+30  ;;  %v650_v51 = vmul.f32 1.442695, %v633_v49  ;;  %v4458_v35 = vpop.eup %3796 }
 0x3f1   :  { %624 = vmax.xlane.f32.xlu0 %v623_v2  ;;  %603 = vmax.xlane.f32.xlu1 %v602_v60  ;;  %v626_v41 = vsel %vm150_vm0, %v4439_v24, -inf  ;;  %v680_v53 = vsel %vm150_vm0, %v4458_v35, 0.0 }
 0x3f2   :  { %3798 = vpow2.f32 %v650_v51 }
 0x3f5   :  { %v592_v61 = vpop.xlane.xlu1 %591 }
 0x3f6   :  { %v481_v36 = vpop.f32.mrf.mxu3  ;;  %v634_v62 = vsub.f32 %v4385_v63, %v592_v61 }
 0x3f7   :  { %v563_v37 = vpop.f32.mrf.mxu2  ;;  %v4443_v38 = vsel %vm147_vm7, %v481_v36, -1e+30 }
 0x3f8   :  { %v4447_v39 = vsel %vm147_vm7, %v563_v37, -1e+30  ;;  %v605_v43 = vsel %vm150_vm0, %v4443_v38, -inf  ;;  %v4462_v54 = vpop.eup %3798  ;;  %v652_v0 = vmul.f32 1.442695, %v634_v62 }
 0x3f9   :  { %v629_v44 = vsel %vm150_vm0, %v4447_v39, -inf  ;;  %627 = vmax.xlane.f32.xlu0 %v626_v41  ;;  %606 = vmax.xlane.f32.xlu1 %v605_v43  ;;  %v683_v55 = vsel %vm150_vm0, %v4462_v54, 0.0 }
 0x3fa   :  { %630 = vmax.xlane.f32.xlu2 %v629_v44  ;;  %3800 = vpow2.f32 %v652_v0 }
 0x3fd   :  { %v595_v63 = vpop.xlane.xlu0 %594 }
 0x3fe   :  { %v635_v51 = vsub.f32 %v4391_v3, %v595_v63 }
 0x400   :  { %v4472_v1 = vpop.eup %3800 }
 0x401   :  { %612 = vmax.xlane.f32.xlu1 %v611_v50 }
 0x409   :  { %681 = vadd.xlane.f32.xlu1 %v680_v53 }
 0x40d   :  { %788 = vrot.lane.b32.xlu0 %v4321_v42, %s4069_s3  ;;  %v686_v42 = vsel %vm150_vm0, %v4472_v1, 0.0 }
 0x411   :  { %684 = vadd.xlane.f32.xlu1 %v683_v55 }
 0x419   :  { %621 = vmax.xlane.f32.xlu1 %v620_v59 }
 0x437   :  { %v610_v4 = vpop.xlane.xlu2 %609  ;;  %687 = vadd.xlane.f32.xlu0 %v686_v42 }
 0x438   :  { %v640_v5 = vsub.f32 %v4397_v7, %v610_v4 }
 0x43a   :  { %v664_v8 = vmul.f32 1.442695, %v640_v5 }
 0x43c   :  { %3802 = vpow2.f32 %v664_v8 }
 0x442   :  { %v4477_v9 = vpop.eup %3802 }
 0x443   :  { %v704_v10 = vsel %vm150_vm0, %v4477_v9, 0.0 }
 0x444   :  { %705 = vadd.xlane.f32.xlu2 %v704_v10 }
 0x44f   :  { %v619_v33 = vpop.xlane.xlu2 %618 }
 0x450   :  { %v643_v37 = vsub.f32 %v4403_v13, %v619_v33 }
 0x452   :  { %v670_v43 = vmul.f32 1.442695, %v643_v37 }
 0x454   :  { %v4481_v12 = vpop.xlane.xlu0 %597 }
 0x45c   :  { %909 = vrot.lane.b32.xlu2 %v4342_v28, %s4069_s3  ;;  %v601_v14 = vpop.xlane.xlu1 %600  ;;  %v616_v7 = vpop.xlane.xlu0 %615 }
 0x45d   :  { %v637_v16 = vsub.f32 %v4419_v26, %v601_v14  ;;  %v642_v28 = vsub.f32 %v4415_v21, %v616_v7 }
 0x45f   :  { %v658_v19 = vmul.f32 1.442695, %v637_v16  ;;  %v668_v60 = vmul.f32 1.442695, %v642_v28 }
 0x461   :  { %3804 = vpow2.f32 %v658_v19 }
 0x464   :  { %v4486_v20 = vpop.xlane.xlu1 %603  ;;  %v625_v27 = vpop.xlane.xlu0 %624 }
 0x465   :  { %v645_v46 = vsub.f32 %v4427_v47, %v625_v27  ;;  %v654_v47 = vmul.f32 1.442695, %v635_v51  ;;  %v636_v27 = vsub.f32 %v4409_v17, %v4481_v12 }
 0x467   :  { %v4488_v22 = vpop.eup %3804  ;;  %v674_v13 = vmul.f32 1.442695, %v645_v46 }
 0x468   :  { %v695_v23 = vsel %vm150_vm0, %v4488_v22, 0.0 }
 0x469   :  { %696 = vadd.xlane.f32.xlu0 %v695_v23 }
 0x46c   :  { %v4492_v57 = vpop.xlane.xlu1 %606  ;;  %v628_v2 = vpop.xlane.xlu0 %627 }
 0x46d   :  { %v646_v53 = vsub.f32 %v4439_v24, %v628_v2  ;;  %v631_v62 = vpop.xlane.xlu2 %630  ;;  %v639_v7 = vsub.f32 %v4443_v38, %v4492_v57 }
 0x46f   :  { %v676_v61 = vmul.f32 1.442695, %v646_v53  ;;  %v662_v23 = vmul.f32 1.442695, %v639_v7 }
 0x474   :  { %v613_v29 = vpop.xlane.xlu1 %612 }
 0x475   :  { %v641_v18 = vsub.f32 %v577_v48, %v613_v29 }
 0x477   :  { %v666_v26 = vmul.f32 1.442695, %v641_v18  ;;  %v656_v18 = vmul.f32 1.442695, %v636_v27 }
 0x479   :  { %3806 = vpow2.f32 %v666_v26 }
 0x47a   :  { %3808 = vpow2.f32 %v668_v60 }
 0x47b   :  { %3810 = vpow2.f32 %v670_v43 }
 0x47c   :  { %v4495_v36 = vpop.xlane.xlu1 %681  ;;  %3812 = vpow2.f32 %v674_v13 }
 0x47d   :  { %827 = vrot.lane.b32.xlu0 %v4325_v58, %s4069_s3 }
 0x47f   :  { %v4499_v31 = vpop.eup %3806  ;;  %v789_v41 = vpop.permute.xlu0 %788 }
 0x480   :  { %804 = vmatpush.bf16.msrb.mxu3 %v789_v41  ;;  %v707_v21 = vsel %vm150_vm0, %v4499_v31, 0.0  ;;  %v4506_v45 = vpop.eup %3808 }
 0x481   :  { %708 = vadd.xlane.f32.xlu1 %v707_v21  ;;  %v710_v58 = vsel %vm150_vm0, %v4506_v45, 0.0  ;;  %v4511_v49 = vpop.eup %3810 }
 0x482   :  { %v713_v59 = vsel %vm150_vm0, %v4511_v49, 0.0  ;;  %v4517_v0 = vpop.eup %3812 }
 0x483   :  { %v719_v24 = vsel %vm150_vm0, %v4517_v0, 0.0 }
 0x484   :  { %v4504_v44 = vpop.xlane.xlu1 %684 }
 0x489   :  { %711 = vadd.xlane.f32.xlu1 %v710_v58 }
 0x48c   :  { %v622_v48 = vpop.xlane.xlu1 %621 }
 0x48d   :  { %v644_v50 = vsub.f32 %v580_v56, %v622_v48  ;;  %v647_v56 = vsub.f32 %v4447_v39, %v631_v62 }
 0x48f   :  { %v672_v55 = vmul.f32 1.442695, %v644_v50  ;;  %v678_v4 = vmul.f32 1.442695, %v647_v56 }
 0x491   :  { %3814 = vpow2.f32 %v672_v55  ;;  %714 = vadd.xlane.f32.xlu1 %v713_v59 }
 0x492   :  { %3816 = vpow2.f32 %v654_v47 }
 0x493   :  { %3818 = vpow2.f32 %v676_v61 }
 0x494   :  { %3820 = vpow2.f32 %v678_v4 }
 0x495   :  { %3822 = vpow2.f32 %v662_v23 }
 0x496   :  { %3824 = vpow2.f32 %v656_v18 }
 0x497   :  { %v4519_v42 = vpop.eup %3814 }
 0x498   :  { %v716_v3 = vsel %vm150_vm0, %v4519_v42, 0.0  ;;  %v4526_v5 = vpop.eup %3816 }
 0x499   :  { %717 = vadd.xlane.f32.xlu2 %v716_v3  ;;  %720 = vadd.xlane.f32.xlu1 %v719_v24  ;;  %v4528_v8 = vpop.eup %3818  ;;  %v689_v10 = vsel %vm150_vm0, %v4526_v5, 0.0 }
 0x49a   :  { %v722_v39 = vsel %vm150_vm0, %v4528_v8, 0.0  ;;  %v4534_v63 = vpop.eup %3820 }
 0x49b   :  { %v725_v14 = vsel %vm150_vm0, %v4534_v63, 0.0  ;;  %v4546_v29 = vpop.eup %3822 }
 0x49c   :  { %v701_v28 = vsel %vm150_vm0, %v4546_v29, 0.0  ;;  %v4552_v2 = vpop.eup %3824 }
 0x49d   :  { %v692_v38 = vsel %vm150_vm0, %v4552_v2, 0.0 }
 0x4a1   :  { %690 = vadd.xlane.f32.xlu2 %v689_v10  ;;  %723 = vadd.xlane.f32.xlu1 %v722_v39 }
 0x4a9   :  { %726 = vadd.xlane.f32.xlu1 %v725_v14 }
 0x4aa   :  { %v688_v59 = vpop.xlane.xlu0 %687 }
 0x4b7   :  { %v706_v16 = vpop.xlane.xlu2 %705 }
 0x4b9   :  { %829 = vrot.lane.b32.xlu2 %v4335_v11, %s4069_s3  ;;  %v638_v11 = vsub.f32 %v4431_v32, %v4486_v20 }
 0x4bf   :  { %v910_v19 = vpop.permute.xlu2 %909 }
 0x4c0   :  { %928 = vmatpush.bf16.msrb.mxu2 %v910_v19 }
 0x4c2   :  { %786 = vrot.lane.b32.xlu1 %v4329_v6, %s4069_s3  ;;  %v660_v6 = vmul.f32 1.442695, %v638_v11 }
 0x4c4   :  { %3826 = vpow2.f32 %v660_v6 }
 0x4c5   :  { %3828 = vrcp.f32 %v706_v16 }
 0x4ca   :  { %v4556_v17 = vpop.eup %3826 }
 0x4cb   :  { %v698_v12 = vsel %vm150_vm0, %v4556_v17, 0.0  ;;  %v3829_v26 = vpop.eup %3828 }
 0x4cc   :  { %v752_v32 = vmul.f32 %v3829_v26, %v4477_v9 }
 0x4ce   :  { %v768_v60 = vpack.c.bf16 %v752_v32, %v752_v32 }
 0x4d0   :  { %v862_v21 = vunpack.c.l.b16 %v768_v60 }
 0x4dc   :  { %v697_v14 = vpop.xlane.xlu0 %696 }
 0x4e2   :  { %702 = vadd.xlane.f32.xlu2 %v701_v28 }
 0x4ec   :  { %693 = vadd.xlane.f32.xlu1 %v692_v38 }
 0x4f4   :  { %v709_v57 = vpop.xlane.xlu1 %708  ;;  %699 = vadd.xlane.f32.xlu1 %v698_v12 }
 0x4f5   :  { %3830 = vrcp.f32 %v709_v57 }
 0x4fb   :  { %v3831_v20 = vpop.eup %3830 }
 0x4fc   :  { %v753_v33 = vmul.f32 %v3831_v20, %v4499_v31  ;;  %v712_v37 = vpop.xlane.xlu1 %711 }
 0x4fd   :  { %3832 = vrcp.f32 %v712_v37 }
 0x4fe   :  { %v769_v41 = vpack.c.bf16 %v753_v33, %v753_v33 }
 0x500   :  { %v863_v43 = vunpack.c.l.b16 %v769_v41 }
 0x502   :  { %v866_v46 = vpack.c.b16 %v863_v43, %v862_v21 }
 0x503   :  { %v3833_v13 = vpop.eup %3832 }
 0x504   :  { %3569 = vmatmul.msk.bf16.vlgmr.msra.gmra.mxu0 %vm150_vm0, %v866_v46  ;;  %v715_v58 = vpop.xlane.xlu1 %714  ;;  %v754_v48 = vmul.f32 %v3833_v13, %v4506_v45 }
 0x505   :  { %3834 = vrcp.f32 %v715_v58 }
 0x506   :  { %v770_v55 = vpack.c.bf16 %v754_v48, %v754_v48 }
 0x508   :  { %v864_v47 = vunpack.c.l.b16 %v770_v55 }
 0x50b   :  { %v3835_v50 = vpop.eup %3834 }
 0x50c   :  { %v718_v51 = vpop.xlane.xlu2 %717  ;;  %v721_v9 = vpop.xlane.xlu1 %720  ;;  %v755_v53 = vmul.f32 %v3835_v50, %v4511_v49 }
 0x50d   :  { %3836 = vrcp.f32 %v718_v51 }
 0x50e   :  { %3838 = vrcp.f32 %v721_v9  ;;  %v771_v31 = vpack.c.bf16 %v755_v53, %v755_v53 }
 0x510   :  { %v865_v61 = vunpack.c.l.b16 %v771_v31 }
 0x512   :  { %v867_v62 = vpack.c.b16 %v865_v61, %v864_v47 }
 0x513   :  { %v3837_v56 = vpop.eup %3836 }
 0x514   :  { %v3839_v3 = vpop.eup %3838  ;;  %v756_v24 = vmul.f32 %v3837_v56, %v4519_v42  ;;  %v691_v4 = vpop.xlane.xlu2 %690  ;;  %3570 = vmatmul.msk.bf16.gmra.mxu0 %vm150_vm0, %v867_v62 }
 0x515   :  { %v724_v45 = vpop.xlane.xlu1 %723  ;;  %v757_v10 = vmul.f32 %v3839_v3, %v4517_v0  ;;  %v828_v42 = vpop.permute.xlu0 %827 }
 0x516   :  { %v772_v39 = vpack.c.bf16 %v756_v24, %v756_v24  ;;  %3840 = vrcp.f32 %v724_v45 }
 0x517   :  { %v773_v49 = vpack.c.bf16 %v757_v10, %v757_v10 }
 0x518   :  { %v903_v16 = vunpack.c.l.b16 %v772_v39 }
 0x519   :  { %v904_v19 = vunpack.c.l.b16 %v773_v49 }
 0x51b   :  { %v907_v7 = vpack.c.b16 %v904_v19, %v903_v16 }
 0x51c   :  { %v830_v23 = vpop.permute.xlu2 %829  ;;  %v3841_v18 = vpop.eup %3840 }
 0x51d   :  { %v727_v27 = vpop.xlane.xlu1 %726  ;;  %3571 = vmatmul.msk.bf16.vlgmr.msrb.gmra.mxu2 %vm150_vm0, %v907_v7  ;;  %845 = vmatpush.bf16.msrb.mxu1 %v830_v23  ;;  %v758_v28 = vmul.f32 %v3841_v18, %v4528_v8 }
 0x51e   :  { %3842 = vrcp.f32 %v727_v27 }
 0x51f   :  { %3844 = vrcp.f32 %v4504_v44  ;;  %v774_v6 = vpack.c.bf16 %v758_v28, %v758_v28 }
 0x520   :  { %3846 = vrcp.f32 %v4495_v36 }
 0x521   :  { %846 = vmatpush.bf16.msrb.mxu1 %v828_v42  ;;  %v905_v57 = vunpack.c.l.b16 %v774_v6  ;;  %3848 = vrcp.f32 %v691_v4 }
 0x522   :  { %3850 = vrcp.f32 %v688_v59 }
 0x523   :  { %3852 = vrcp.f32 %v697_v14 }
 0x524   :  { %v3843_v0 = vpop.eup %3842 }
 0x525   :  { %v759_v11 = vmul.f32 %v3843_v0, %v4534_v63  ;;  %v3845_v12 = vpop.eup %3844 }
 0x526   :  { %v3847_v32 = vpop.eup %3846  ;;  %v745_v20 = vmul.f32 %v3845_v12, %v4462_v54 }
 0x527   :  { %v775_v38 = vpack.c.bf16 %v759_v11, %v759_v11  ;;  %v744_v33 = vmul.f32 %v3847_v32, %v4458_v35  ;;  %v3849_v21 = vpop.eup %3848 }
 0x528   :  { %v761_v44 = vpack.c.bf16 %v745_v20, %v745_v20  ;;  %v3851_v43 = vpop.eup %3850  ;;  %v747_v54 = vmul.f32 %v3849_v21, %v4526_v5  ;;  %v3734_v21 = vld [vmem:[%s5643_s8 + $0x8] sm:$0xff] }
 0x529   :  { %v906_v26 = vunpack.c.l.b16 %v775_v38  ;;  %v760_v8 = vpack.c.bf16 %v744_v33, %v744_v33  ;;  %v746_v46 = vmul.f32 %v3851_v43, %v4472_v1  ;;  %v3853_v9 = vpop.eup %3852  ;;  %v3733_v43 = vld [vmem:[%s5643_s8] sm:$0xff] }
 0x52a   :  { %v781_v37 = vunpack.c.l.b16 %v761_v44  ;;  %v763_v35 = vpack.c.bf16 %v747_v54, %v747_v54  ;;  %v749_v53 = vmul.f32 %v3853_v9, %v4488_v22 }
 0x52b   :  { %v908_v60 = vpack.c.b16 %v906_v26, %v905_v57  ;;  %v780_v63 = vunpack.c.l.b16 %v760_v8  ;;  %v762_v58 = vpack.c.bf16 %v746_v46, %v746_v46 }
 0x52c   :  { %v783_v13 = vunpack.c.l.b16 %v763_v35  ;;  %v765_v31 = vpack.c.bf16 %v749_v53, %v749_v53 }
 0x52d   :  { %3572 = vmatmul.msk.bf16.gmra.mxu2 %vm150_vm0, %v908_v60  ;;  %v784_v41 = vpack.c.b16 %v781_v37, %v780_v63  ;;  %v782_v48 = vunpack.c.l.b16 %v762_v58 }
 0x52e   :  { %v822_v61 = vunpack.c.l.b16 %v765_v31 }
 0x52f   :  { %v785_v50 = vpack.c.b16 %v783_v13, %v782_v48 }
 0x534   :  { %v787_v36 = vpop.permute.xlu1 %786 }
 0x535   :  { %805 = vmatpush.bf16.msrb.mxu3 %v787_v36 }
 0x538   :  { %3565 = vmatmul.msk.bf16.vlgmr.msrb.gmra.mxu3 %vm150_vm0, %v784_v41 }
 0x539   :  { %1046 = vmatpush.bf16.msra.mxu3 %v3734_v21 }
 0x53d   :  { %1047 = vmatpush.bf16.msra.mxu3 %v3733_v43 }
 0x548   :  { %3566 = vmatmul.msk.bf16.gmra.mxu3 %vm150_vm0, %v785_v50 }
 0x555   :  { %v703_v59 = vpop.xlane.xlu2 %702 }
 0x55f   :  { %v694_v51 = vpop.xlane.xlu1 %693 }
 0x560   :  { %3854 = vrcp.f32 %v694_v51 }
 0x566   :  { %v3855_v55 = vpop.eup %3854 }
 0x567   :  { %v748_v5 = vmul.f32 %v3855_v55, %v4552_v2  ;;  %v700_v47 = vpop.xlane.xlu1 %699 }
 0x568   :  { %3856 = vrcp.f32 %v700_v47 }
 0x569   :  { %v764_v1 = vpack.c.bf16 %v748_v5, %v748_v5  ;;  %3858 = vrcp.f32 %v703_v59 }
 0x56b   :  { %v821_v62 = vunpack.c.l.b16 %v764_v1 }
 0x56d   :  { %v825_v56 = vpack.c.b16 %v822_v61, %v821_v62 }
 0x56e   :  { %v3857_v3 = vpop.eup %3856 }
 0x56f   :  { %3567 = vmatmul.msk.bf16.vlgmr.msrb.gmra.mxu1 %vm150_vm0, %v825_v56  ;;  %v3859_v24 = vpop.eup %3858  ;;  %v750_v4 = vmul.f32 %v3857_v3, %v4556_v17 }
 0x570   :  { %v751_v22 = vmul.f32 %v3859_v24, %v4546_v29 }
 0x571   :  { %v766_v45 = vpack.c.bf16 %v750_v4, %v750_v4 }
 0x572   :  { %v767_v10 = vpack.c.bf16 %v751_v22, %v751_v22 }
 0x573   :  { %v823_v39 = vunpack.c.l.b16 %v766_v45 }
 0x574   :  { %v824_v49 = vunpack.c.l.b16 %v767_v10 }
 0x576   :  { %v826_v2 = vpack.c.b16 %v824_v49, %v823_v39 }
 0x57f   :  { %3568 = vmatmul.msk.bf16.gmra.mxu1 %vm150_vm0, %v826_v2 }
 0x581   :  { %v889_v14 = vpop.f32.mrf.mxu0 }
 0x582   :  { %v948_v16 = vpack.c.bf16 %v889_v14, %v889_v14 }
 0x584   :  { %v984_v23 = vunpack.c.l.b16 %v948_v16 }
 0x589   :  { %v891_v19 = vpop.f32.mrf.mxu0 }
 0x58a   :  { %v949_v7 = vpack.c.bf16 %v891_v19, %v891_v19 }
 0x58c   :  { %v985_v27 = vunpack.c.l.b16 %v949_v7 }
 0x58e   :  { %v992_v18 = vpack.c.b16 %v985_v27, %v984_v23 }
 0x590   :  { %996 = vrot.lane.b32.xlu0 %v992_v18, %s4070_s26 }
 0x591   :  { %v894_v17 = vpop.f32.mrf.mxu0 }
 0x592   :  { %v950_v42 = vpack.c.bf16 %v894_v17, %v894_v17 }
 0x594   :  { %v986_v0 = vunpack.c.l.b16 %v950_v42  ;;  %v3766_v42 = vld [vmem:[%s5644_s9] ss:$0 sm:$0xff] }
 0x599   :  { %v896_v29 = vpop.f32.mrf.mxu0 }
 0x59a   :  { %v951_v28 = vpack.c.bf16 %v896_v29, %v896_v29 }
 0x59c   :  { %v987_v11 = vunpack.c.l.b16 %v951_v28 }
 0x59e   :  { %v993_v6 = vpack.c.b16 %v987_v11, %v986_v0 }
 0x5a0   :  { %v930_v38 = vpop.f32.mrf.mxu2  ;;  %998 = vrot.lane.b32.xlu1 %v993_v6, %s4070_s26 }
 0x5a1   :  { %v952_v12 = vpack.c.bf16 %v930_v38, %v930_v38 }
 0x5a3   :  { %v988_v32 = vunpack.c.l.b16 %v952_v12 }
 0x5a8   :  { %v932_v57 = vpop.f32.mrf.mxu2 }
 0x5a9   :  { %v953_v26 = vpack.c.bf16 %v932_v57, %v932_v57 }
 0x5ab   :  { %v989_v20 = vunpack.c.l.b16 %v953_v26 }
 0x5ad   :  { %v994_v60 = vpack.c.b16 %v989_v20, %v988_v32 }
 0x5af   :  { %1000 = vrot.lane.b32.xlu0 %v994_v60, %s4070_s26 }
 0x5b0   :  { %v935_v33 = vpop.f32.mrf.mxu2 }
 0x5b1   :  { %v954_v44 = vpack.c.bf16 %v935_v33, %v935_v33 }
 0x5b3   :  { %v990_v36 = vunpack.c.l.b16 %v954_v44 }
 0x5b8   :  { %v937_v8 = vpop.f32.mrf.mxu2 }
 0x5b9   :  { %v955_v37 = vpack.c.bf16 %v937_v8, %v937_v8 }
 0x5bb   :  { %v991_v63 = vunpack.c.l.b16 %v955_v37  ;;  %v807_v54 = vpop.f32.mrf.mxu3 }
 0x5bc   :  { %v940_v58 = vpack.c.bf16 %v807_v54, %v807_v54 }
 0x5bd   :  { %v995_v41 = vpack.c.b16 %v991_v63, %v990_v36 }
 0x5be   :  { %v964_v50 = vunpack.c.l.b16 %v940_v58 }
 0x5bf   :  { %1002 = vrot.lane.b32.xlu0 %v995_v41, %s4070_s26 }
 0x5c3   :  { %v809_v46 = vpop.f32.mrf.mxu3 }
 0x5c4   :  { %v941_v35 = vpack.c.bf16 %v809_v46, %v809_v46 }
 0x5c6   :  { %v965_v48 = vunpack.c.l.b16 %v941_v35 }
 0x5c8   :  { %v972_v51 = vpack.c.b16 %v965_v48, %v964_v50 }
 0x5cb   :  { %v812_v13 = vpop.f32.mrf.mxu3 }
 0x5cc   :  { %v942_v5 = vpack.c.bf16 %v812_v13, %v812_v13 }
 0x5ce   :  { %v966_v1 = vunpack.c.l.b16 %v942_v5 }
 0x5d3   :  { %v814_v55 = vpop.f32.mrf.mxu3 }
 0x5d4   :  { %v943_v59 = vpack.c.bf16 %v814_v55, %v814_v55 }
 0x5d6   :  { %v967_v47 = vunpack.c.l.b16 %v943_v59 }
 0x5d8   :  { %v973_v61 = vpack.c.b16 %v967_v47, %v966_v1 }
 0x5ec   :  { %v848_v31 = vpop.f32.mrf.mxu1 }
 0x5ed   :  { %v944_v4 = vpack.c.bf16 %v848_v31, %v848_v31 }
 0x5ef   :  { %v968_v10 = vunpack.c.l.b16 %v944_v4 }
 0x5f4   :  { %v850_v62 = vpop.f32.mrf.mxu1 }
 0x5f5   :  { %v945_v24 = vpack.c.bf16 %v850_v62, %v850_v62 }
 0x5f7   :  { %v969_v45 = vunpack.c.l.b16 %v945_v24 }
 0x5f9   :  { %v974_v39 = vpack.c.b16 %v969_v45, %v968_v10 }
 0x5fc   :  { %v853_v22 = vpop.f32.mrf.mxu1 }
 0x5fd   :  { %v946_v19 = vpack.c.bf16 %v853_v22, %v853_v22 }
 0x5ff   :  { %v970_v23 = vunpack.c.l.b16 %v946_v19 }
 0x602   :  { %v997_v9 = vpop.permute.xlu0 %996 }
 0x603   :  { %v1006_v53 = vsel %vm411_vm6, %v972_v51, %v997_v9 }
 0x604   :  { %3581 = vmatmul.msk.bf16.vlgmr.msra.gmra.mxu3 %vm150_vm0, %v1006_v53  ;;  %v855_v14 = vpop.f32.mrf.mxu1 }
 0x605   :  { %v947_v16 = vpack.c.bf16 %v855_v14, %v855_v14 }
 0x607   :  { %v971_v7 = vunpack.c.l.b16 %v947_v16 }
 0x609   :  { %v975_v27 = vpack.c.b16 %v971_v7, %v970_v23 }
 0x612   :  { %v999_v56 = vpop.permute.xlu1 %998 }
 0x613   :  { %v1009_v3 = vsel %vm411_vm6, %v973_v61, %v999_v56 }
 0x614   :  { %3582 = vmatmul.msk.bf16.gmra.mxu3 %vm150_vm0, %v1009_v3 }
 0x621   :  { %v1001_v49 = vpop.permute.xlu0 %1000 }
 0x622   :  { %v1012_v2 = vsel %vm411_vm6, %v974_v39, %v1001_v49 }
 0x624   :  { %3583 = vmatmul.msk.bf16.gmra.mxu3 %vm150_vm0, %v1012_v2 }
 0x631   :  { %v1003_v18 = vpop.permute.xlu0 %1002 }
 0x632   :  { %v1015_v17 = vsel %vm411_vm6, %v975_v27, %v1003_v18 }
 0x634   :  { %3584 = vmatmul.msk.bf16.gmra.mxu3 %vm150_vm0, %v1015_v17 }
 0x687   :  { %v1049_v29 = vpop.f32.mrf.mxu3 }
 0x688   :  { %v1069_v28 = vadd.f32 %v1049_v29, %v4215_v25  ;;  %v4038_v25 = vld [vmem:[%s5668_s15 + $0x10] sm:$0xff] }
 0x68a   :  { %v4608_v0 = vadd.f32 %v3766_v42, %v1069_v28 }
 0x68c   :  { %v1091_v11 = vsel %vm150_vm0, %v4608_v0, 0.0 }
 0x68d   :  { %1092 = vadd.xlane.f32.xlu0 %v1091_v11 }
 0x68f   :  { %v1051_v6 = vpop.f32.mrf.mxu3 }
 0x690   :  { %v1070_v38 = vadd.f32 %v1051_v6, %v4222_v30  ;;  %v4039_v30 = vld [vmem:[%s5668_s15 + $0x18] sm:$0xff]  ;;  %s3514_s15 = sshll.u32 %s5655_s20, 4  ;;  %s3515_s15 = int_to_ptr.hbm [resolvable:$true] %s3514_s15 }
 0x692   :  { %v4613_v12 = vadd.f32 %v3766_v42, %v1070_v38 }
 0x694   :  { %v1094_v57 = vsel %vm150_vm0, %v4613_v12, 0.0 }
 0x695   :  { %1095 = vadd.xlane.f32.xlu1 %v1094_v57 }
 0x697   :  { %v1054_v26 = vpop.f32.mrf.mxu3 }
 0x698   :  { %v1071_v32 = vadd.f32 %v4038_v25, %v1054_v26 }
 0x69a   :  { %v4620_v20 = vadd.f32 %v3766_v42, %v1071_v32  ;;  %v3736_v32 = vld [vmem:[%s5647_s12 + $0x8] sm:$0xff] }
 0x69b   :  { %1331 = vmatpush.bf16.msra.mxu1 %v3736_v32 }
 0x69c   :  { %v1097_v60 = vsel %vm150_vm0, %v4620_v20, 0.0 }
 0x69d   :  { %1098 = vadd.xlane.f32.xlu2 %v1097_v60 }
 0x69f   :  { %v1056_v33 = vpop.f32.mrf.mxu3 }
 0x6a0   :  { %v1072_v44 = vadd.f32 %v4039_v30, %v1056_v33 }
 0x6a2   :  { %v4627_v8 = vadd.f32 %v3766_v42, %v1072_v44 }
 0x6a4   :  { %v1100_v37 = vsel %vm150_vm0, %v4627_v8, 0.0 }
 0x6a5   :  { %1101 = vadd.xlane.f32.xlu2 %v1100_v37 }
 0x6a7   :  { %v1059_v36 = vpop.f32.mrf.mxu3 }
 0x6a8   :  { %v1073_v63 = vadd.f32 %v1059_v36, %v4226_v34 }
 0x6aa   :  { %v4632_v41 = vadd.f32 %v3766_v42, %v1073_v63 }
 0x6ac   :  { %v1103_v21 = vsel %vm150_vm0, %v4632_v41, 0.0 }
 0x6ad   :  { %1104 = vadd.xlane.f32.xlu2 %v1103_v21 }
 0x6af   :  { %v1061_v43 = vpop.f32.mrf.mxu3 }
 0x6b0   :  { %v1074_v54 = vadd.f32 %v1061_v43, %v4231_v40 }
 0x6b2   :  { %v4637_v46 = vadd.f32 %v3766_v42, %v1074_v54 }
 0x6b4   :  { %v1106_v35 = vsel %vm150_vm0, %v4637_v46, 0.0 }
 0x6b5   :  { %1107 = vadd.xlane.f32.xlu2 %v1106_v35 }
 0x6b7   :  { %v1064_v58 = vpop.f32.mrf.mxu3 }
 0x6b8   :  { %v1075_v13 = vadd.f32 %v4038_v25, %v1064_v58 }
 0x6ba   :  { %v4641_v48 = vadd.f32 %v3766_v42, %v1075_v13 }
 0x6bc   :  { %v1109_v34 = vsel %vm150_vm0, %v4641_v48, 0.0 }
 0x6bd   :  { %1110 = vadd.xlane.f32.xlu2 %v1109_v34 }
 0x6bf   :  { %v1066_v40 = vpop.f32.mrf.mxu3 }
 0x6c0   :  { %v1076_v55 = vadd.f32 %v4039_v30, %v1066_v40  ;;  %v3735_v30 = vld [vmem:[%s5647_s12] sm:$0xff] }
 0x6c1   :  { %1332 = vmatpush.bf16.msra.mxu1 %v3735_v30 }
 0x6c2   :  { %v4653_v47 = vadd.f32 %v3766_v42, %v1076_v55 }
 0x6c4   :  { %v1112_v56 = vsel %vm150_vm0, %v4653_v47, 0.0 }
 0x700   :  { %v1093_v50 = vpop.xlane.xlu0 %1092 }
 0x701   :  { %v1115_v51 = vmul.f32 %v1093_v50, %v4201_v15 }
 0x703   :  { %v4647_v9 = vsub.f32 %v4608_v0, %v1115_v51 }
 0x705   :  { %v1131_v53 = vmul.f32 %v4647_v9, %v4647_v9 }
 0x707   :  { %v1139_v31 = vsel %vm150_vm0, %v1131_v53, 0.0 }
 0x708   :  { %v1096_v59 = vpop.xlane.xlu1 %1095  ;;  %1140 = vadd.xlane.f32.xlu0 %v1139_v31 }
 0x709   :  { %v1116_v5 = vmul.f32 %v1096_v59, %v4201_v15 }
 0x70b   :  { %v4656_v1 = vsub.f32 %v4613_v12, %v1116_v5 }
 0x70d   :  { %v1132_v61 = vmul.f32 %v4656_v1, %v4656_v1 }
 0x70f   :  { %v1142_v62 = vsel %vm150_vm0, %v1132_v61, 0.0 }
 0x710   :  { %1143 = vadd.xlane.f32.xlu1 %v1142_v62  ;;  %v1099_v3 = vpop.xlane.xlu2 %1098  ;;  %1113 = vadd.xlane.f32.xlu0 %v1112_v56 }
 0x711   :  { %v1117_v24 = vmul.f32 %v1099_v3, %v4201_v15 }
 0x713   :  { %v4665_v4 = vsub.f32 %v4620_v20, %v1117_v24 }
 0x715   :  { %v1133_v22 = vmul.f32 %v4665_v4, %v4665_v4 }
 0x717   :  { %v1145_v45 = vsel %vm150_vm0, %v1133_v22, 0.0 }
 0x718   :  { %1146 = vadd.xlane.f32.xlu1 %v1145_v45  ;;  %v1102_v10 = vpop.xlane.xlu2 %1101 }
 0x719   :  { %v1118_v39 = vmul.f32 %v1102_v10, %v4201_v15  ;;  %v4718_v10 = vld [vmem:[%s5645_s10] ss:$0 sm:$0xff] }
 0x71b   :  { %v4672_v49 = vsub.f32 %v4627_v8, %v1118_v39 }
 0x71d   :  { %v1134_v2 = vmul.f32 %v4672_v49, %v4672_v49 }
 0x71f   :  { %v1148_v14 = vsel %vm150_vm0, %v1134_v2, 0.0 }
 0x720   :  { %v1105_v16 = vpop.xlane.xlu2 %1104  ;;  %1149 = vadd.xlane.f32.xlu2 %v1148_v14 }
 0x721   :  { %v1119_v19 = vmul.f32 %v1105_v16, %v4201_v15 }
 0x723   :  { %v4679_v7 = vsub.f32 %v4632_v41, %v1119_v19 }
 0x725   :  { %v1135_v23 = vmul.f32 %v4679_v7, %v4679_v7 }
 0x727   :  { %v1151_v27 = vsel %vm150_vm0, %v1135_v23, 0.0 }
 0x728   :  { %v1108_v18 = vpop.xlane.xlu2 %1107  ;;  %1152 = vadd.xlane.f32.xlu0 %v1151_v27  ;;  %v4724_v27 = vld [vmem:[%s5646_s11] ss:$0 sm:$0xff] }
 0x729   :  { %v1120_v17 = vmul.f32 %v1108_v18, %v4201_v15 }
 0x72b   :  { %v4686_v42 = vsub.f32 %v4637_v46, %v1120_v17 }
 0x72d   :  { %v1136_v29 = vmul.f32 %v4686_v42, %v4686_v42 }
 0x72f   :  { %v1154_v28 = vsel %vm150_vm0, %v1136_v29, 0.0 }
 0x730   :  { %1155 = vadd.xlane.f32.xlu1 %v1154_v28  ;;  %v1111_v11 = vpop.xlane.xlu2 %1110 }
 0x731   :  { %v1121_v6 = vmul.f32 %v1111_v11, %v4201_v15 }
 0x733   :  { %v4693_v38 = vsub.f32 %v4641_v48, %v1121_v6 }
 0x735   :  { %v1137_v57 = vmul.f32 %v4693_v38, %v4693_v38 }
 0x737   :  { %v1157_v26 = vsel %vm150_vm0, %v1137_v57, 0.0 }
 0x738   :  { %1158 = vadd.xlane.f32.xlu2 %v1157_v26 }
 0x77b   :  { %v1141_v25 = vpop.xlane.xlu0 %1140 }
 0x77c   :  { %v1163_v60 = vmul.f32 %v1141_v25, %v4201_v15 }
 0x77e   :  { %v1171_v33 = vadd.f32 1e-05, %v1163_v60 }
 0x780   :  { %3860 = vrsqrt.f32 %v1171_v33  ;;  %vm1185_vm9 = vweird.f32 %v1171_v33 }
 0x783   :  { %v1144_v44 = vpop.xlane.xlu1 %1143  ;;  %v1114_v37 = vpop.xlane.xlu0 %1113 }
 0x784   :  { %v1164_v36 = vmul.f32 %v1144_v44, %v4201_v15  ;;  %v1122_v63 = vmul.f32 %v1114_v37, %v4201_v15 }
 0x786   :  { %v3861_v21 = vpop.eup %3860  ;;  %v1172_v43 = vadd.f32 1e-05, %v1164_v36  ;;  %v4708_v54 = vsub.f32 %v4653_v47, %v1122_v63 }
 0x787   :  { %v1180_v35 = vmul.f32 %v3861_v21, %v1171_v33  ;;  %vm1186_vm8 = vweird.f32 %v3861_v21 }
 0x788   :  { %3862 = vrsqrt.f32 %v1172_v43  ;;  %v1138_v58 = vmul.f32 %v4708_v54, %v4708_v54  ;;  %vm1187_vm10 = vmor %vm1185_vm9, %vm1186_vm8  ;;  %vm1195_vm12 = vweird.f32 %v1172_v43 }
 0x789   :  { %v1181_v13 = vmul.f32 %v3861_v21, %v1180_v35 }
 0x78a   :  { %v1160_v34 = vsel %vm150_vm0, %v1138_v58, 0.0 }
 0x78b   :  { %v1182_v50 = vmul.f32 0.5, %v1181_v13  ;;  %v1147_v51 = vpop.xlane.xlu1 %1146  ;;  %1161 = vadd.xlane.f32.xlu0 %v1160_v34 }
 0x78c   :  { %v1165_v40 = vmul.f32 %v1147_v51, %v4201_v15 }
 0x78d   :  { %v1183_v53 = vsub.f32 1.5, %v1182_v50 }
 0x78e   :  { %v3863_v55 = vpop.eup %3862  ;;  %v1173_v31 = vadd.f32 1e-05, %v1165_v40 }
 0x78f   :  { %v1184_v59 = vmul.f32 %v3861_v21, %v1183_v53  ;;  %v1190_v5 = vmul.f32 %v3863_v55, %v1172_v43  ;;  %vm1196_vm11 = vweird.f32 %v3863_v55 }
 0x790   :  { %3864 = vrsqrt.f32 %v1173_v31  ;;  %vm1197_vm13 = vmor %vm1195_vm12, %vm1196_vm11  ;;  %vm1205_vm15 = vweird.f32 %v1173_v31 }
 0x791   :  { %v1191_v61 = vmul.f32 %v3863_v55, %v1190_v5  ;;  %v1188_v62 = vsel %vm1187_vm10, %v3861_v21, %v1184_v59 }
 0x792   :  { %v1259_v39 = vmul.f32 %v1188_v62, %v4647_v9 }
 0x793   :  { %v1192_v56 = vmul.f32 0.5, %v1191_v61  ;;  %v1150_v3 = vpop.xlane.xlu2 %1149 }
 0x794   :  { %v1166_v24 = vmul.f32 %v1150_v3, %v4201_v15  ;;  %v1270_v18 = vmul.f32 %v4718_v10, %v1259_v39 }
 0x795   :  { %v1193_v22 = vsub.f32 1.5, %v1192_v56 }
 0x796   :  { %v3865_v45 = vpop.eup %3864  ;;  %v1174_v2 = vadd.f32 1e-05, %v1166_v24  ;;  %v1281_v26 = vadd.f32 %v4724_v27, %v1270_v18 }
 0x797   :  { %v1194_v14 = vmul.f32 %v3863_v55, %v1193_v22  ;;  %v1200_v16 = vmul.f32 %v3865_v45, %v1173_v31  ;;  %vm1206_vm14 = vweird.f32 %v3865_v45 }
 0x798   :  { %3866 = vrsqrt.f32 %v1174_v2  ;;  %vm1207_vm1 = vmor %vm1205_vm15, %vm1206_vm14  ;;  %vm1215_vm3 = vweird.f32 %v1174_v2 }
 0x799   :  { %v1198_v19 = vsel %vm1197_vm13, %v3863_v55, %v1194_v14  ;;  %v1201_v23 = vmul.f32 %v3865_v45, %v1200_v16 }
 0x79a   :  { %v1260_v17 = vmul.f32 %v1198_v19, %v4656_v1 }
 0x79b   :  { %v1202_v29 = vmul.f32 0.5, %v1201_v23  ;;  %v1153_v28 = vpop.xlane.xlu0 %1152 }
 0x79c   :  { %v1271_v9 = vmul.f32 %v4718_v10, %v1260_v17  ;;  %v1167_v11 = vmul.f32 %v1153_v28, %v4201_v15 }
 0x79d   :  { %v1203_v6 = vsub.f32 1.5, %v1202_v29 }
 0x79e   :  { %v3867_v57 = vpop.eup %3866  ;;  %v1282_v25 = vadd.f32 %v4724_v27, %v1271_v9  ;;  %v1175_v32 = vadd.f32 1e-05, %v1167_v11 }
 0x79f   :  { %v1204_v60 = vmul.f32 %v3865_v45, %v1203_v6  ;;  %v1210_v33 = vmul.f32 %v3867_v57, %v1174_v2  ;;  %vm1216_vm2 = vweird.f32 %v3867_v57 }
 0x7a0   :  { %3868 = vrsqrt.f32 %v1175_v32  ;;  %v1289_v30 = vpack.c.bf16 %v1282_v25, %v1281_v26  ;;  %vm1217_vm4 = vmor %vm1215_vm3, %vm1216_vm2  ;;  %vm1225_vm8 = vweird.f32 %v1175_v32 }
 0x7a1   :  { %v1211_v1 = vmul.f32 %v3867_v57, %v1210_v33  ;;  %v1208_v44 = vsel %vm1207_vm1, %v3865_v45, %v1204_v60 }
 0x7a2   :  { %3593 = vmatmul.msk.bf16.vlgmr.msra.gmra.mxu1 %vm150_vm0, %v1289_v30  ;;  %v1261_v35 = vmul.f32 %v1208_v44, %v4665_v4 }
 0x7a3   :  { %v1212_v37 = vmul.f32 0.5, %v1211_v1  ;;  %v1156_v36 = vpop.xlane.xlu1 %1155 }
 0x7a4   :  { %v1168_v63 = vmul.f32 %v1156_v36, %v4201_v15  ;;  %v1272_v53 = vmul.f32 %v4718_v10, %v1261_v35 }
 0x7a5   :  { %v1213_v21 = vsub.f32 1.5, %v1212_v37 }
 0x7a6   :  { %v3869_v43 = vpop.eup %3868  ;;  %v1176_v58 = vadd.f32 1e-05, %v1168_v63  ;;  %v1283_v61 = vadd.f32 %v4724_v27, %v1272_v53  ;;  %v4759_v53 = vld [vmem:[%s5648_s13] ss:$0 sm:$0xff] }
 0x7a7   :  { %v1214_v13 = vmul.f32 %v3867_v57, %v1213_v21  ;;  %v1220_v34 = vmul.f32 %v3869_v43, %v1175_v32  ;;  %vm1226_vm5 = vweird.f32 %v3869_v43 }
 0x7a8   :  { %3870 = vrsqrt.f32 %v1176_v58  ;;  %vm1227_vm9 = vmor %vm1225_vm8, %vm1226_vm5  ;;  %vm1235_vm11 = vweird.f32 %v1176_v58 }
 0x7a9   :  { %v1218_v50 = vsel %vm1217_vm4, %v3867_v57, %v1214_v13  ;;  %v1221_v51 = vmul.f32 %v3869_v43, %v1220_v34 }
 0x7aa   :  { %v1262_v40 = vmul.f32 %v1218_v50, %v4672_v49 }
 0x7ab   :  { %v1222_v55 = vmul.f32 0.5, %v1221_v51  ;;  %v1159_v28 = vpop.xlane.xlu2 %1158 }
 0x7ac   :  { %v1273_v31 = vmul.f32 %v4718_v10, %v1262_v40 }
 0x7ad   :  { %v1223_v59 = vsub.f32 1.5, %v1222_v55 }
 0x7ae   :  { %v3871_v5 = vpop.eup %3870  ;;  %v1284_v4 = vadd.f32 %v4724_v27, %v1273_v31 }
 0x7af   :  { %v1224_v62 = vmul.f32 %v3869_v43, %v1223_v59  ;;  %v1230_v56 = vmul.f32 %v3871_v5, %v1176_v58  ;;  %vm1236_vm10 = vweird.f32 %v3871_v5 }
 0x7b0   :  { %v1290_v3 = vpack.c.bf16 %v1284_v4, %v1283_v61  ;;  %vm1237_vm12 = vmor %vm1235_vm11, %vm1236_vm10 }
 0x7b1   :  { %v1231_v24 = vmul.f32 %v3871_v5, %v1230_v56  ;;  %v1228_v49 = vsel %vm1227_vm9, %v3869_v43, %v1224_v62 }
 0x7b2   :  { %3594 = vmatmul.msk.bf16.gmra.mxu1 %vm150_vm0, %v1290_v3  ;;  %v1263_v39 = vmul.f32 %v1228_v49, %v4679_v7  ;;  %v1169_v7 = vmul.f32 %v1159_v28, %v4201_v15 }
 0x7b3   :  { %v1232_v22 = vmul.f32 0.5, %v1231_v24 }
 0x7b4   :  { %v1274_v19 = vmul.f32 %v4718_v10, %v1263_v39  ;;  %v1177_v9 = vadd.f32 1e-05, %v1169_v7 }
 0x7b5   :  { %v1233_v45 = vsub.f32 1.5, %v1232_v22 }
 0x7b6   :  { %v1285_v18 = vadd.f32 %v4724_v27, %v1274_v19  ;;  %3872 = vrsqrt.f32 %v1177_v9  ;;  %vm1245_vm14 = vweird.f32 %v1177_v9 }
 0x7b7   :  { %v1234_v2 = vmul.f32 %v3871_v5, %v1233_v45 }
 0x7b9   :  { %v1238_v14 = vsel %vm1237_vm12, %v3871_v5, %v1234_v2 }
 0x7ba   :  { %v1264_v16 = vmul.f32 %v1238_v14, %v4686_v42 }
 0x7bc   :  { %v1275_v23 = vmul.f32 %v4718_v10, %v1264_v16  ;;  %v3873_v11 = vpop.eup %3872 }
 0x7bd   :  { %v1240_v6 = vmul.f32 %v3873_v11, %v1177_v9  ;;  %vm1246_vm13 = vweird.f32 %v3873_v11 }
 0x7be   :  { %v1286_v17 = vadd.f32 %v4724_v27, %v1275_v23  ;;  %vm1247_vm15 = vmor %vm1245_vm14, %vm1246_vm13 }
 0x7bf   :  { %v1241_v57 = vmul.f32 %v3873_v11, %v1240_v6 }
 0x7c0   :  { %v1291_v29 = vpack.c.bf16 %v1286_v17, %v1285_v18 }
 0x7c1   :  { %v1242_v32 = vmul.f32 0.5, %v1241_v57 }
 0x7c2   :  { %3595 = vmatmul.msk.bf16.gmra.mxu1 %vm150_vm0, %v1291_v29 }
 0x7c3   :  { %v1243_v60 = vsub.f32 1.5, %v1242_v32 }
 0x7c5   :  { %v1244_v30 = vmul.f32 %v3873_v11, %v1243_v60 }
 0x7c7   :  { %v1248_v37 = vsel %vm1247_vm15, %v3873_v11, %v1244_v30 }
 0x7c8   :  { %v1265_v21 = vmul.f32 %v1248_v37, %v4693_v38 }
 0x7ca   :  { %v1276_v13 = vmul.f32 %v4718_v10, %v1265_v21 }
 0x7cc   :  { %v1287_v50 = vadd.f32 %v4724_v27, %v1276_v13 }
 0x7fe   :  { %v1162_v42 = vpop.xlane.xlu0 %1161 }
 0x7ff   :  { %v1170_v26 = vmul.f32 %v1162_v42, %v4201_v15 }
 0x801   :  { %v1178_v25 = vadd.f32 1e-05, %v1170_v26  ;;  %v3740_v26 = vld [vmem:[%s5649_s14 + $0x18] sm:$0xff] }
 0x802   :  { %1727 = vmatpush.bf16.msrb.mxu0 %v3740_v26 }
 0x803   :  { %3874 = vrsqrt.f32 %v1178_v25  ;;  %vm1255_vm2 = vweird.f32 %v1178_v25 }
 0x809   :  { %v3875_v33 = vpop.eup %3874 }
 0x80a   :  { %v1250_v1 = vmul.f32 %v3875_v33, %v1178_v25  ;;  %vm1256_vm1 = vweird.f32 %v3875_v33 }
 0x80b   :  { %vm1257_vm3 = vmor %vm1255_vm2, %vm1256_vm1 }
 0x80c   :  { %v1251_v44 = vmul.f32 %v3875_v33, %v1250_v1 }
 0x80e   :  { %v1252_v36 = vmul.f32 0.5, %v1251_v44 }
 0x810   :  { %v1253_v63 = vsub.f32 1.5, %v1252_v36 }
 0x812   :  { %v1254_v43 = vmul.f32 %v3875_v33, %v1253_v63  ;;  %v3739_v63 = vld [vmem:[%s5649_s14 + $0x10] sm:$0xff] }
 0x813   :  { %1728 = vmatpush.bf16.msrb.mxu0 %v3739_v63 }
 0x814   :  { %v1258_v35 = vsel %vm1257_vm3, %v3875_v33, %v1254_v43 }
 0x815   :  { %v1266_v58 = vmul.f32 %v1258_v35, %v4708_v54 }
 0x817   :  { %v1277_v34 = vmul.f32 %v4718_v10, %v1266_v58 }
 0x819   :  { %v1288_v51 = vadd.f32 %v4724_v27, %v1277_v34 }
 0x81b   :  { %v1292_v40 = vpack.c.bf16 %v1288_v51, %v1287_v50 }
 0x81d   :  { %3596 = vmatmul.msk.bf16.gmra.mxu1 %vm150_vm0, %v1292_v40 }
 0x81f   :  { %v1334_v38 = vpop.f32.mrf.mxu1 }
 0x820   :  { %v4763_v55 = vadd.f32 %v4759_v53, %v1334_v38 }
 0x822   :  { %v4766_v54 = vmul.f32 0.70710677, %v4763_v55 }
 0x824   :  { %v1386_v10 = vand.u32 2147483647, %v4766_v54  ;;  %vm1370_vm3 = vcmp.ge.f32.partialorder %v4766_v54, 0.0 }
 0x826   :  { %v1394_v31 = vmul.f32 0.3275911, %v1386_v10  ;;  %v1602_v6 = vsub.f32 0.0, %v1386_v10 }
 0x827   :  { %v1336_v59 = vpop.f32.mrf.mxu1 }
 0x828   :  { %v1402_v27 = vadd.f32 1.0, %v1394_v31  ;;  %v4770_v5 = vadd.f32 %v4759_v53, %v1336_v59  ;;  %v1610_v30 = vmul.f32 %v1602_v6, %v1386_v10 }
 0x82a   :  { %3876 = vrcp.f32 %v1402_v27  ;;  %v4773_v61 = vmul.f32 0.70710677, %v4770_v5  ;;  %v1421_v2 = vand.u32 2147483648, %v1402_v27  ;;  %v1419_v19 = vand.u32 2147483647, %v1402_v27 }
 0x82b   :  { %vm1415_vm5 = vweird.f32 %v1402_v27  ;;  %v1618_v51 = vmul.f32 1.442695, %v1610_v30 }
 0x82c   :  { %v4776_v4 = vand.u32 2147483647, %v4773_v61  ;;  %v1422_v29 = vor.u32 1.1754944e-38, %v1421_v2  ;;  %vm1420_vm9 = vcmp.eq.f32.partialorder %v1419_v19, 8.507059e+37 }
 0x82e   :  { %v1395_v62 = vmul.f32 0.3275911, %v4776_v4  ;;  %v1603_v31 = vsub.f32 0.0, %v4776_v4 }
 0x82f   :  { %v1339_v56 = vpop.f32.mrf.mxu1 }
 0x830   :  { %v3877_v3 = vpop.eup %3876  ;;  %v4780_v24 = vadd.f32 %v4759_v53, %v1339_v56  ;;  %v1403_v22 = vadd.f32 1.0, %v1395_v62 }
 0x831   :  { %v1411_v49 = vmul.f32 %v3877_v3, %v1402_v27  ;;  %vm1416_vm4 = vweird.f32 %v3877_v3  ;;  %v3738_v27 = vld [vmem:[%s5649_s14 + $0x8] sm:$0xff] }
 0x832   :  { %v4783_v45 = vmul.f32 0.70710677, %v4780_v24  ;;  %3878 = vrcp.f32 %v1403_v22  ;;  %vm1417_vm8 = vmor %vm1415_vm5, %vm1416_vm4  ;;  %v1436_v1 = vand.u32 2147483648, %v1403_v22  ;;  %v1434_v37 = vand.u32 2147483647, %v1403_v22  ;;  %1729 = vmatpush.bf16.msrb.mxu0 %v3738_v27 }
 0x833   :  { %v1412_v39 = vsub.f32 1.0, %v1411_v49  ;;  %vm1430_vm11 = vweird.f32 %v1403_v22  ;;  %vm1371_vm5 = vcmp.ge.f32.partialorder %v4773_v61, 0.0 }
 0x834   :  { %v4786_v14 = vand.u32 2147483647, %v4783_v45  ;;  %v1437_v40 = vor.u32 1.1754944e-38, %v1436_v1  ;;  %vm1435_vm13 = vcmp.eq.f32.partialorder %v1434_v37, 8.507059e+37 }
 0x835   :  { %v1413_v16 = vmul.f32 %v3877_v3, %v1412_v39 }
 0x836   :  { %v1396_v23 = vmul.f32 0.3275911, %v4786_v14 }
 0x837   :  { %v1414_v18 = vadd.f32 %v3877_v3, %v1413_v16  ;;  %v1341_v17 = vpop.f32.mrf.mxu1 }
 0x838   :  { %v4789_v28 = vadd.f32 1.0, %v1396_v23  ;;  %v4792_v7 = vadd.f32 %v4759_v53, %v1341_v17  ;;  %v3879_v9 = vpop.eup %3878 }
 0x839   :  { %v1418_v11 = vsel %vm1417_vm8, %v3877_v3, %v1414_v18  ;;  %v1426_v42 = vmul.f32 %v3879_v9, %v1403_v22  ;;  %vm1431_vm10 = vweird.f32 %v3879_v9  ;;  %v1611_v18 = vmul.f32 %v1603_v31, %v4776_v4 }
 0x83a   :  { %v4794_v57 = vsel %vm1420_vm9, %v1422_v29, %v1418_v11  ;;  %3880 = vrcp.f32 %v4789_v28  ;;  %v4802_v60 = vmul.f32 0.70710677, %v4792_v7  ;;  %vm1432_vm12 = vmor %vm1430_vm11, %vm1431_vm10  ;;  %v1451_v39 = vand.u32 2147483648, %v4789_v28  ;;  %v3737_v11 = vld [vmem:[%s5649_s14] sm:$0xff] }
 0x83b   :  { %v1530_v25 = vmul.f32 1.0614054, %v4794_v57  ;;  %v1427_v32 = vsub.f32 1.0, %v1426_v42  ;;  %v1449_v19 = vand.u32 2147483647, %v4789_v28  ;;  %vm1445_vm15 = vweird.f32 %v4789_v28  ;;  %1730 = vmatpush.bf16.msrb.mxu0 %v3737_v11 }
 0x83c   :  { %v4805_v36 = vand.u32 2147483647, %v4802_v60  ;;  %v1452_v42 = vor.u32 1.1754944e-38, %v1451_v39 }
 0x83d   :  { %v1538_v33 = vadd.f32 -1.4531521, %v1530_v25  ;;  %v1428_v44 = vmul.f32 %v3879_v9, %v1427_v32  ;;  %vm1450_vm2 = vcmp.eq.f32.partialorder %v1449_v19, 8.507059e+37  ;;  %v1604_v32 = vsub.f32 0.0, %v4786_v14 }
 0x83e   :  { %v1397_v13 = vmul.f32 0.3275911, %v4805_v36 }
 0x83f   :  { %v1546_v21 = vmul.f32 %v1538_v33, %v4794_v57  ;;  %v1344_v43 = vpop.f32.mrf.mxu1  ;;  %v1429_v58 = vadd.f32 %v3879_v9, %v1428_v44 }
 0x840   :  { %v3881_v35 = vpop.eup %3880  ;;  %v4813_v34 = vadd.f32 %v4759_v53, %v1344_v43  ;;  %v4817_v59 = vadd.f32 1.0, %v1397_v13 }
 0x841   :  { %v1554_v50 = vadd.f32 1.4214138, %v1546_v21  ;;  %v1441_v38 = vmul.f32 %v3881_v35, %v4789_v28  ;;  %v1433_v10 = vsel %vm1432_vm12, %v3879_v9, %v1429_v58  ;;  %vm1446_vm14 = vweird.f32 %v3881_v35 }
 0x842   :  { %v4823_v56 = vsel %vm1435_vm13, %v1437_v40, %v1433_v10  ;;  %v4826_v49 = vmul.f32 0.70710677, %v4813_v34  ;;  %3882 = vrcp.f32 %v4817_v59  ;;  %vm1447_vm1 = vmor %vm1445_vm15, %vm1446_vm14  ;;  %v1620_v28 = vmul.f32 1.442695, %v1611_v18 }
 0x843   :  { %v1562_v62 = vmul.f32 %v1554_v50, %v4794_v57  ;;  %v1442_v3 = vsub.f32 1.0, %v1441_v38  ;;  %v1531_v22 = vmul.f32 1.0614054, %v4823_v56  ;;  %3884 = vpow2.f32 %v1618_v51 }
 0x844   :  { %v4834_v17 = vand.u32 2147483647, %v4826_v49  ;;  %vm1460_vm8 = vweird.f32 %v4817_v59  ;;  %vm1710_vm15 = vcmask 523264  }
 0x845   :  { %v1570_v2 = vadd.f32 -0.28449672, %v1562_v62  ;;  %v1443_v16 = vmul.f32 %v3881_v35, %v1442_v3  ;;  %v1539_v23 = vadd.f32 -1.4531521, %v1531_v22  ;;  %v1464_v62 = vand.u32 2147483647, %v4817_v59 }
 0x846   :  { %v1398_v26 = vmul.f32 0.3275911, %v4834_v17  ;;  %v4071_v3 = vmov -1.0  }
 0x847   :  { %v1578_v29 = vmul.f32 %v1570_v2, %v4794_v57  ;;  %v1444_v9 = vadd.f32 %v3881_v35, %v1443_v16  ;;  %v1547_v6 = vmul.f32 %v1539_v23, %v4823_v56  ;;  %v1346_v33 = vpop.f32.mrf.mxu1  ;;  %v1378_v22 = vsel %vm1370_vm3, 1.0, %v4071_v3 }
 0x848   :  { %v3883_v30 = vpop.eup %3882  ;;  %v4846_v37 = vadd.f32 1.0, %v1398_v26  ;;  %v4857_v13 = vadd.f32 %v4759_v53, %v1346_v33  ;;  %vm1465_vm10 = vcmp.eq.f32.partialorder %v1464_v62, 8.507059e+37  ;;  %v1379_v33 = vsel %vm1371_vm5, 1.0, %v4071_v3 }
 0x849   :  { %v1586_v4 = vadd.f32 0.2548296, %v1578_v29  ;;  %v1448_v25 = vsel %vm1447_vm1, %v3881_v35, %v1444_v9  ;;  %v1555_v1 = vadd.f32 1.4214138, %v1547_v6  ;;  %v1456_v43 = vmul.f32 %v3883_v30, %v4817_v59  ;;  %v3885_v50 = vpop.eup %3884 }
 0x84a   :  { %v4844_v44 = vsel %vm1450_vm2, %v1452_v42, %v1448_v25  ;;  %v4852_v35 = vmul.f32 0.5, %v4763_v55  ;;  %3886 = vrcp.f32 %v4846_v37  ;;  %v1466_v55 = vand.u32 2147483648, %v4817_v59 }
 0x84b   :  { %v1594_v63 = vmul.f32 %v1586_v4, %v4794_v57  ;;  %v1532_v21 = vmul.f32 1.0614054, %v4844_v44  ;;  %v1563_v58 = vmul.f32 %v1555_v1, %v4823_v56  ;;  %v1612_v57 = vmul.f32 %v1604_v32, %v4786_v14 }
 0x84c   :  { %v1457_v40 = vsub.f32 1.0, %v1456_v43  ;;  %3888 = vpow2.f32 %v1620_v28  ;;  %vm1461_vm4 = vweird.f32 %v3883_v30  ;;  %v4868_v14 = vmul.f32 0.70710677, %v4857_v13 }
 0x84d   :  { %v1540_v51 = vadd.f32 -1.4531521, %v1532_v21  ;;  %v1634_v38 = vmul.f32 %v3885_v50, %v1594_v63  ;;  %v1571_v10 = vadd.f32 -0.28449672, %v1563_v58  ;;  %v1622_v2 = vmul.f32 1.442695, %v1612_v57  ;;  %vm1462_vm9 = vmor %vm1460_vm8, %vm1461_vm4 }
 0x84e   :  { %v1458_v27 = vmul.f32 %v3883_v30, %v1457_v40  ;;  %v1467_v29 = vor.u32 1.1754944e-38, %v1466_v55  ;;  %v4872_v9 = vand.u32 2147483647, %v4868_v14  ;;  %v1605_v59 = vsub.f32 0.0, %v4805_v36 }
 0x84f   :  { %v1548_v31 = vmul.f32 %v1540_v51, %v4844_v44  ;;  %v1579_v54 = vmul.f32 %v1571_v10, %v4823_v56  ;;  %v1642_v23 = vsub.f32 1.0, %v1634_v38  ;;  %v1479_v32 = vand.u32 2147483647, %v4846_v37 }
 0x850   :  { %v1459_v16 = vadd.f32 %v3883_v30, %v1458_v27  ;;  %v3887_v19 = vpop.eup %3886  ;;  %v1481_v43 = vand.u32 2147483648, %v4846_v37  ;;  %v1399_v58 = vmul.f32 0.3275911, %v4872_v9  ;;  %3890 = vpow2.f32 %v1622_v2 }
 0x851   :  { %v1556_v39 = vadd.f32 1.4214138, %v1548_v31  ;;  %v1587_v18 = vadd.f32 0.2548296, %v1579_v54  ;;  %v1471_v42 = vmul.f32 %v3887_v19, %v4846_v37  ;;  %v1650_v21 = vmul.f32 %v1642_v23, %v1378_v22 }
 0x852   :  { %v1463_v6 = vsel %vm1462_vm9, %v3883_v30, %v1459_v16  ;;  %v3889_v26 = vpop.eup %3888  ;;  %vm1476_vm11 = vweird.f32 %v3887_v19  ;;  %v1613_v40 = vmul.f32 %v1605_v59, %v4805_v36  ;;  %v1407_v61 = vadd.f32 1.0, %v1399_v58 }
 0x853   :  { %v1564_v11 = vmul.f32 %v1556_v39, %v4844_v44  ;;  %v1595_v4 = vmul.f32 %v1587_v18, %v4823_v56  ;;  %v1468_v25 = vsel %vm1465_vm10, %v1467_v29, %v1463_v6  ;;  %v1472_v63 = vsub.f32 1.0, %v1471_v42 }
 0x854   :  { %v1533_v28 = vmul.f32 1.0614054, %v1468_v25  ;;  %vm1475_vm12 = vweird.f32 %v4846_v37  ;;  %v1658_v31 = vadd.f32 1.0, %v1650_v21  ;;  %v1482_v62 = vor.u32 1.1754944e-38, %v1481_v43 }
 0x855   :  { %v1572_v1 = vadd.f32 -0.28449672, %v1564_v11  ;;  %v1635_v30 = vmul.f32 %v3889_v26, %v1595_v4  ;;  %v1473_v51 = vmul.f32 %v3887_v19, %v1472_v63  ;;  %vm1477_vm13 = vmor %vm1475_vm12, %vm1476_vm11  ;;  %3892 = vrcp.f32 %v1407_v61 }
 0x856   :  { %v1541_v50 = vadd.f32 -1.4531521, %v1533_v28  ;;  %vm1480_vm14 = vcmp.eq.f32.partialorder %v1479_v32, 8.507059e+37  ;;  %v1355_v2 = vmul.f32 0.5, %v4770_v5  ;;  %v1624_v36 = vmul.f32 1.442695, %v1613_v40  ;;  %v3891_v11 = vpop.eup %3890 }
 0x857   :  { %v1580_v56 = vmul.f32 %v1572_v1, %v4844_v44  ;;  %v1643_v57 = vsub.f32 1.0, %v1635_v30  ;;  %v1474_v55 = vadd.f32 %v3887_v19, %v1473_v51  ;;  %v1666_v37 = vmul.f32 %v1658_v31, %v4852_v35 }
 0x858   :  { %v1549_v10 = vmul.f32 %v1541_v50, %v1468_v25  ;;  %3894 = vpow2.f32 %v1624_v36  ;;  %vm1372_vm1 = vcmp.ge.f32.partialorder %v4783_v45, 0.0  ;;  %v1606_v5 = vsub.f32 0.0, %v4834_v17 }
 0x859   :  { %v1588_v38 = vadd.f32 0.2548296, %v1580_v56  ;;  %v1651_v27 = vmul.f32 %v1643_v57, %v1379_v33  ;;  %v1478_v39 = vsel %vm1477_vm13, %v3887_v19, %v1474_v55  ;;  %v1494_v21 = vand.u32 2147483647, %v1407_v61 }
 0x85a   :  { %v1557_v54 = vadd.f32 1.4214138, %v1549_v10  ;;  %v1483_v23 = vsel %vm1480_vm14, %v1482_v62, %v1478_v39  ;;  %v1496_v30 = vand.u32 2147483648, %v1407_v61  ;;  %v1380_v51 = vsel %vm1372_vm1, 1.0, %v4071_v3 }
 0x85b   :  { %v1596_v22 = vmul.f32 %v1588_v38, %v4844_v44  ;;  %v1659_v16 = vadd.f32 1.0, %v1651_v27  ;;  %v1534_v29 = vmul.f32 1.0614054, %v1483_v23  ;;  %v3893_v59 = vpop.eup %3892  ;;  %vm1373_vm3 = vcmp.ge.f32.partialorder %v4802_v60, 0.0 }
 0x85c   :  { %v1565_v18 = vmul.f32 %v1557_v54, %v1468_v25  ;;  %v1486_v33 = vmul.f32 %v3893_v59, %v1407_v61  ;;  %vm1491_vm2 = vweird.f32 %v3893_v59  ;;  %v1614_v45 = vmul.f32 %v1606_v5, %v4834_v17 }
 0x85d   :  { %v1667_v6 = vmul.f32 %v1659_v16, %v1355_v2  ;;  %v1636_v42 = vmul.f32 %v3891_v11, %v1596_v22  ;;  %v1542_v4 = vadd.f32 -1.4531521, %v1534_v29  ;;  %vm1490_vm4 = vweird.f32 %v1407_v61 }
 0x85e   :  { %v1573_v26 = vadd.f32 -0.28449672, %v1565_v18  ;;  %v1487_v63 = vsub.f32 1.0, %v1486_v33  ;;  %v3895_v50 = vpop.eup %3894  ;;  %vm1492_vm5 = vmor %vm1490_vm4, %vm1491_vm2  ;;  %v1497_v55 = vor.u32 1.1754944e-38, %v1496_v30  ;;  %vm1495_vm8 = vcmp.eq.f32.partialorder %v1494_v21, 8.507059e+37 }
 0x85f   :  { %v1674_v44 = vpack.c.bf16 %v1667_v6, %v1666_v37  ;;  %v1550_v32 = vmul.f32 %v1542_v4, %v1483_v23  ;;  %v1644_v1 = vsub.f32 1.0, %v1636_v42  ;;  %v1381_v62 = vsel %vm1373_vm3, 1.0, %v4071_v3 }
 0x860   :  { %v1581_v19 = vmul.f32 %v1573_v26, %v1468_v25  ;;  %v1488_v56 = vmul.f32 %v3893_v59, %v1487_v63  ;;  %v1626_v22 = vmul.f32 1.442695, %v1614_v45  ;;  %v1607_v39 = vsub.f32 0.0, %v4872_v9 }
 0x861   :  { %3613 = vmatmul.msk.bf16.vlgmr.msrb.gmra.mxu0 %vm1710_vm15, %v1674_v44  ;;  %v1558_v35 = vadd.f32 1.4214138, %v1550_v32  ;;  %v1652_v57 = vmul.f32 %v1644_v1, %v1380_v51  ;;  %v1356_v61 = vmul.f32 0.5, %v4780_v24  ;;  %v1357_v16 = vmul.f32 0.5, %v4792_v7 }
 0x862   :  { %v1589_v28 = vadd.f32 0.2548296, %v1581_v19  ;;  %v1489_v10 = vadd.f32 %v3893_v59, %v1488_v56  ;;  %3896 = vpow2.f32 %v1626_v22  ;;  %v1615_v11 = vmul.f32 %v1607_v39, %v4872_v9 }
 0x863   :  { %v1566_v58 = vmul.f32 %v1558_v35, %v1483_v23  ;;  %v1660_v60 = vadd.f32 1.0, %v1652_v57  ;;  %vm1374_vm9 = vcmp.ge.f32.partialorder %v4826_v49, 0.0  ;;  %vm1375_vm10 = vcmp.ge.f32.partialorder %v4868_v14, 0.0 }
 0x864   :  { %v1597_v43 = vmul.f32 %v1589_v28, %v1468_v25  ;;  %v1493_v25 = vsel %vm1492_vm5, %v3893_v59, %v1489_v10  ;;  %v1628_v44 = vmul.f32 1.442695, %v1615_v11  ;;  %v1382_v35 = vsel %vm1374_vm9, 1.0, %v4071_v3 }
 0x865   :  { %v1574_v38 = vadd.f32 -0.28449672, %v1566_v58  ;;  %v1498_v54 = vsel %vm1495_vm8, %v1497_v55, %v1493_v25  ;;  %v1668_v37 = vmul.f32 %v1660_v60, %v1356_v61  ;;  %v1383_v30 = vsel %vm1375_vm10, 1.0, %v4071_v3 }
 0x866   :  { %v1637_v40 = vmul.f32 %v3895_v50, %v1597_v43  ;;  %v1535_v17 = vmul.f32 1.0614054, %v1498_v54  ;;  %3898 = vpow2.f32 %v1628_v44  ;;  %v1358_v56 = vmul.f32 0.5, %v4813_v34 }
 0x867   :  { %v1582_v27 = vmul.f32 %v1574_v38, %v1483_v23  ;;  %v1359_v50 = vmul.f32 0.5, %v4857_v13 }
 0x868   :  { %v1645_v31 = vsub.f32 1.0, %v1637_v40  ;;  %v1543_v29 = vadd.f32 -1.4531521, %v1535_v17  ;;  %v3897_v32 = vpop.eup %3896 }
 0x869   :  { %v1590_v18 = vadd.f32 0.2548296, %v1582_v27 }
 0x86a   :  { %v1653_v2 = vmul.f32 %v1645_v31, %v1381_v62  ;;  %v1551_v42 = vmul.f32 %v1543_v29, %v1498_v54 }
 0x86b   :  { %v1598_v26 = vmul.f32 %v1590_v18, %v1483_v23 }
 0x86c   :  { %v1661_v36 = vadd.f32 1.0, %v1653_v2  ;;  %v1559_v4 = vadd.f32 1.4214138, %v1551_v42  ;;  %v3899_v28 = vpop.eup %3898 }
 0x86d   :  { %v1638_v24 = vmul.f32 %v3897_v32, %v1598_v26 }
 0x86e   :  { %v1669_v6 = vmul.f32 %v1661_v36, %v1357_v16  ;;  %v1567_v19 = vmul.f32 %v1559_v4, %v1498_v54 }
 0x86f   :  { %v1646_v5 = vsub.f32 1.0, %v1638_v24 }
 0x870   :  { %v1675_v59 = vpack.c.bf16 %v1669_v6, %v1668_v37  ;;  %v1575_v33 = vadd.f32 -0.28449672, %v1567_v19 }
 0x871   :  { %v1654_v23 = vmul.f32 %v1646_v5, %v1382_v35 }
 0x872   :  { %3614 = vmatmul.msk.bf16.gmra.mxu0 %vm1710_vm15, %v1675_v59  ;;  %v1583_v7 = vmul.f32 %v1575_v33, %v1498_v54 }
 0x873   :  { %v1662_v43 = vadd.f32 1.0, %v1654_v23 }
 0x874   :  { %v1591_v1 = vadd.f32 0.2548296, %v1583_v7 }
 0x875   :  { %v1670_v51 = vmul.f32 %v1662_v43, %v1358_v56 }
 0x876   :  { %v1599_v9 = vmul.f32 %v1591_v1, %v1498_v54 }
 0x878   :  { %v1639_v63 = vmul.f32 %v3899_v28, %v1599_v9 }
 0x87a   :  { %v1647_v21 = vsub.f32 1.0, %v1639_v63 }
 0x87c   :  { %v1655_v58 = vmul.f32 %v1647_v21, %v1383_v30 }
 0x87e   :  { %v1663_v49 = vadd.f32 1.0, %v1655_v58 }
 0x880   :  { %v1671_v45 = vmul.f32 %v1663_v49, %v1359_v50 }
 0x882   :  { %v1676_v57 = vpack.c.bf16 %v1671_v45, %v1670_v51 }
 0x884   :  { %3615 = vmatmul.msk.bf16.gmra.mxu0 %vm1710_vm15, %v1676_v57 }
 0x89a   :  { %v1349_v40 = vpop.f32.mrf.mxu1 }
 0x89b   :  { %v4910_v38 = vadd.f32 %v4759_v53, %v1349_v40 }
 0x89d   :  { %v4913_v14 = vmul.f32 0.70710677, %v4910_v38 }
 0x89f   :  { %v1392_v10 = vand.u32 2147483647, %v4913_v14  ;;  %vm1376_vm5 = vcmp.ge.f32.partialorder %v4913_v14, 0.0 }
 0x8a1   :  { %v1400_v55 = vmul.f32 0.3275911, %v1392_v10  ;;  %v1608_v6 = vsub.f32 0.0, %v1392_v10 }
 0x8a2   :  { %v1351_v31 = vpop.f32.mrf.mxu1 }
 0x8a3   :  { %v1408_v34 = vadd.f32 1.0, %v1400_v55  ;;  %v4917_v13 = vadd.f32 %v4759_v53, %v1351_v31  ;;  %v1616_v32 = vmul.f32 %v1608_v6, %v1392_v10 }
 0x8a5   :  { %3900 = vrcp.f32 %v1408_v34  ;;  %v4920_v27 = vmul.f32 0.70710677, %v4917_v13  ;;  %v1511_v2 = vand.u32 2147483648, %v1408_v34  ;;  %v1509_v61 = vand.u32 2147483647, %v1408_v34 }
 0x8a6   :  { %vm1505_vm12 = vweird.f32 %v1408_v34  ;;  %v1630_v9 = vmul.f32 1.442695, %v1616_v32 }
 0x8a7   :  { %v1393_v25 = vand.u32 2147483647, %v4920_v27  ;;  %v1512_v53 = vor.u32 1.1754944e-38, %v1511_v2  ;;  %vm1510_vm14 = vcmp.eq.f32.partialorder %v1509_v61, 8.507059e+37  ;;  %vm1377_vm8 = vcmp.ge.f32.partialorder %v4920_v27, 0.0 }
 0x8a8   :  { %v1385_v2 = vsel %vm1377_vm8, 1.0, %v4071_v3  ;;  %v3770_v27 = vld [vmem:[%s5672_s23] ss:$0 sm:$0xff] }
 0x8a9   :  { %v1401_v62 = vmul.f32 0.3275911, %v1393_v25  ;;  %v1609_v35 = vsub.f32 0.0, %v1393_v25 }
 0x8ab   :  { %v3901_v22 = vpop.eup %3900  ;;  %v1409_v39 = vadd.f32 1.0, %v1401_v62  ;;  %v1617_v43 = vmul.f32 %v1609_v35, %v1393_v25 }
 0x8ac   :  { %v1501_v54 = vmul.f32 %v3901_v22, %v1408_v34  ;;  %vm1506_vm11 = vweird.f32 %v3901_v22 }
 0x8ad   :  { %3902 = vrcp.f32 %v1409_v39  ;;  %vm1507_vm13 = vmor %vm1505_vm12, %vm1506_vm11  ;;  %v1526_v4 = vand.u32 2147483648, %v1409_v39  ;;  %v1524_v44 = vand.u32 2147483647, %v1409_v39  ;;  %vm1520_vm2 = vweird.f32 %v1409_v39 }
 0x8ae   :  { %v1502_v60 = vsub.f32 1.0, %v1501_v54  ;;  %3904 = vpow2.f32 %v1630_v9  ;;  %v1632_v51 = vmul.f32 1.442695, %v1617_v43  ;;  %v1384_v54 = vsel %vm1376_vm5, 1.0, %v4071_v3 }
 0x8af   :  { %v1527_v7 = vor.u32 1.1754944e-38, %v1526_v4  ;;  %vm1525_vm4 = vcmp.eq.f32.partialorder %v1524_v44, 8.507059e+37 }
 0x8b0   :  { %v1503_v17 = vmul.f32 %v3901_v22, %v1502_v60  ;;  %3906 = vpow2.f32 %v1632_v51 }
 0x8b2   :  { %v1504_v16 = vadd.f32 %v3901_v22, %v1503_v17 }
 0x8b3   :  { %v3903_v36 = vpop.eup %3902 }
 0x8b4   :  { %v1508_v18 = vsel %vm1507_vm13, %v3901_v22, %v1504_v16  ;;  %v1516_v11 = vmul.f32 %v3903_v36, %v1409_v39  ;;  %vm1521_vm1 = vweird.f32 %v3903_v36  ;;  %v3905_v57 = vpop.eup %3904  ;;  %v1360_v16 = vmul.f32 0.5, %v4910_v38 }
 0x8b5   :  { %v1513_v29 = vsel %vm1510_vm14, %v1512_v53, %v1508_v18  ;;  %vm1522_vm3 = vmor %vm1520_vm2, %vm1521_vm1  ;;  %v1361_v53 = vmul.f32 0.5, %v4917_v13 }
 0x8b6   :  { %v1536_v37 = vmul.f32 1.0614054, %v1513_v29  ;;  %v1517_v42 = vsub.f32 1.0, %v1516_v11  ;;  %v3907_v22 = vpop.eup %3906 }
 0x8b8   :  { %v1544_v26 = vadd.f32 -1.4531521, %v1536_v37  ;;  %v1518_v59 = vmul.f32 %v3903_v36, %v1517_v42 }
 0x8ba   :  { %v1552_v19 = vmul.f32 %v1544_v26, %v1513_v29  ;;  %v1519_v24 = vadd.f32 %v3903_v36, %v1518_v59 }
 0x8bc   :  { %v1560_v33 = vadd.f32 1.4214138, %v1552_v19  ;;  %v1523_v5 = vsel %vm1522_vm3, %v3903_v36, %v1519_v24 }
 0x8bd   :  { %v1528_v28 = vsel %vm1525_vm4, %v1527_v7, %v1523_v5 }
 0x8be   :  { %v1568_v1 = vmul.f32 %v1560_v33, %v1513_v29  ;;  %v1537_v23 = vmul.f32 1.0614054, %v1528_v28 }
 0x8c0   :  { %v1576_v63 = vadd.f32 -0.28449672, %v1568_v1  ;;  %v1545_v21 = vadd.f32 -1.4531521, %v1537_v23 }
 0x8c2   :  { %v1584_v30 = vmul.f32 %v1576_v63, %v1513_v29  ;;  %v1553_v58 = vmul.f32 %v1545_v21, %v1528_v28 }
 0x8c4   :  { %v1592_v56 = vadd.f32 0.2548296, %v1584_v30  ;;  %v1561_v50 = vadd.f32 1.4214138, %v1553_v58 }
 0x8c6   :  { %v1600_v49 = vmul.f32 %v1592_v56, %v1513_v29  ;;  %v1569_v45 = vmul.f32 %v1561_v50, %v1528_v28 }
 0x8c8   :  { %v1640_v40 = vmul.f32 %v3905_v57, %v1600_v49  ;;  %v1577_v10 = vadd.f32 -0.28449672, %v1569_v45 }
 0x8ca   :  { %v1585_v55 = vmul.f32 %v1577_v10, %v1528_v28  ;;  %v1648_v31 = vsub.f32 1.0, %v1640_v40 }
 0x8cc   :  { %v1593_v34 = vadd.f32 0.2548296, %v1585_v55  ;;  %v1656_v25 = vmul.f32 %v1648_v31, %v1384_v54 }
 0x8ce   :  { %v1601_v62 = vmul.f32 %v1593_v34, %v1528_v28  ;;  %v1664_v17 = vadd.f32 1.0, %v1656_v25 }
 0x8d0   :  { %v1641_v39 = vmul.f32 %v3907_v22, %v1601_v62  ;;  %v1672_v36 = vmul.f32 %v1664_v17, %v1360_v16 }
 0x8d2   :  { %v1649_v60 = vsub.f32 1.0, %v1641_v39 }
 0x8d4   :  { %v1657_v61 = vmul.f32 %v1649_v60, %v1385_v2 }
 0x8d6   :  { %v1665_v14 = vadd.f32 1.0, %v1657_v61 }
 0x8d8   :  { %v1673_v18 = vmul.f32 %v1665_v14, %v1361_v53 }
 0x8da   :  { %v1677_v29 = vpack.c.bf16 %v1673_v18, %v1672_v36 }
 0x8dc   :  { %3616 = vmatmul.msk.bf16.gmra.mxu0 %vm1710_vm15, %v1677_v29 }
 0x8de   :  { %v1732_v11 = vpop.f32.mrf.mxu0 }
 0x8df   :  { %v1752_v37 = vadd.f32 %v1732_v11, %v4608_v0 }
 0x8e1   :  { %v4934_v6 = vadd.f32 %v3770_v27, %v1752_v37 }
 0x8e3   :  { %v1776_v38 = vsel %vm150_vm0, %v4934_v6, 0.0 }
 0x8e4   :  { %1777 = vadd.xlane.f32.xlu1 %v1776_v38 }
 0x8e6   :  { %v1734_v13 = vpop.f32.mrf.mxu0 }
 0x8e7   :  { %v1753_v42 = vadd.f32 %v1734_v13, %v4613_v12 }
 0x8e9   :  { %v4939_v26 = vadd.f32 %v3770_v27, %v1753_v42 }
 0x8eb   :  { %v1779_v4 = vsel %vm150_vm0, %v4939_v26, 0.0 }
 0x8ec   :  { %1780 = vadd.xlane.f32.xlu2 %v1779_v4 }
 0x8ef   :  { %v1737_v59 = vpop.f32.mrf.mxu0 }
 0x8f0   :  { %v1754_v44 = vadd.f32 %v1737_v59, %v4620_v20 }
 0x8f2   :  { %v4944_v19 = vadd.f32 %v3770_v27, %v1754_v44 }
 0x8f4   :  { %v1782_v0 = vsel %vm150_vm0, %v4944_v19, 0.0 }
 0x8f5   :  { %1783 = vadd.xlane.f32.xlu0 %v1782_v0 }
 0x8f7   :  { %v1739_v32 = vpop.f32.mrf.mxu0 }
 0x8f8   :  { %v1755_v24 = vadd.f32 %v1739_v32, %v4627_v8  ;;  %v3742_v32 = vld [vmem:[%s5641_s6 + $0x18] sm:$0xff] }
 0x8f9   :  { %2018 = vmatpush.bf16.msra.mxu2 %v3742_v32 }
 0x8fa   :  { %v4949_v33 = vadd.f32 %v3770_v27, %v1755_v24 }
 0x8fc   :  { %v1785_v12 = vsel %vm150_vm0, %v4949_v33, 0.0 }
 0x8fd   :  { %1786 = vadd.xlane.f32.xlu1 %v1785_v12 }
 0x901   :  { %v1742_v7 = vpop.f32.mrf.mxu0 }
 0x902   :  { %v1756_v5 = vadd.f32 %v1742_v7, %v4632_v41 }
 0x904   :  { %v4954_v1 = vadd.f32 %v3770_v27, %v1756_v5 }
 0x906   :  { %v1788_v20 = vsel %vm150_vm0, %v4954_v1, 0.0 }
 0x907   :  { %1789 = vadd.xlane.f32.xlu2 %v1788_v20 }
 0x909   :  { %v1744_v9 = vpop.f32.mrf.mxu0 }
 0x90a   :  { %v1757_v28 = vadd.f32 %v1744_v9, %v4637_v46 }
 0x90c   :  { %v4959_v35 = vadd.f32 %v3770_v27, %v1757_v28 }
 0x90e   :  { %v1791_v8 = vsel %vm150_vm0, %v4959_v35, 0.0 }
 0x90f   :  { %1792 = vadd.xlane.f32.xlu0 %v1791_v8  ;;  %v3741_v8 = vld [vmem:[%s5641_s6 + $0x10] sm:$0xff] }
 0x910   :  { %2019 = vmatpush.bf16.msra.mxu2 %v3741_v8 }
 0x957   :  { %v1778_v23 = vpop.xlane.xlu1 %1777 }
 0x958   :  { %v1800_v63 = vmul.f32 %v1778_v23, %v4201_v15 }
 0x959   :  { %v1747_v21 = vpop.f32.mrf.mxu0 }
 0x95a   :  { %v4965_v41 = vsub.f32 %v4934_v6, %v1800_v63  ;;  %v1758_v30 = vadd.f32 %v1747_v21, %v4641_v48 }
 0x95c   :  { %v4968_v43 = vadd.f32 %v3770_v27, %v1758_v30  ;;  %v1816_v46 = vmul.f32 %v4965_v41, %v4965_v41 }
 0x95e   :  { %v1824_v58 = vsel %vm150_vm0, %v1816_v46, 0.0  ;;  %v1794_v56 = vsel %vm150_vm0, %v4968_v43, 0.0 }
 0x95f   :  { %v1781_v50 = vpop.xlane.xlu2 %1780  ;;  %1825 = vadd.xlane.f32.xlu1 %v1824_v58  ;;  %1795 = vadd.xlane.f32.xlu0 %v1794_v56 }
 0x960   :  { %v1801_v49 = vmul.f32 %v1781_v50, %v4201_v15 }
 0x961   :  { %v1749_v51 = vpop.f32.mrf.mxu0 }
 0x962   :  { %v4977_v45 = vsub.f32 %v4939_v26, %v1801_v49  ;;  %v1759_v48 = vadd.f32 %v1749_v51, %v4653_v47 }
 0x964   :  { %v4980_v57 = vadd.f32 %v3770_v27, %v1759_v48  ;;  %v1817_v40 = vmul.f32 %v4977_v45, %v4977_v45 }
 0x966   :  { %v1827_v10 = vsel %vm150_vm0, %v1817_v40, 0.0  ;;  %v1797_v55 = vsel %vm150_vm0, %v4980_v57, 0.0 }
 0x967   :  { %1828 = vadd.xlane.f32.xlu2 %v1827_v10  ;;  %1798 = vadd.xlane.f32.xlu1 %v1797_v55 }
 0x968   :  { %v1784_v31 = vpop.xlane.xlu0 %1783 }
 0x969   :  { %v1802_v34 = vmul.f32 %v1784_v31, %v4201_v15 }
 0x96b   :  { %v4989_v62 = vsub.f32 %v4944_v19, %v1802_v34 }
 0x96d   :  { %v1818_v47 = vmul.f32 %v4989_v62, %v4989_v62 }
 0x96f   :  { %v1830_v22 = vsel %vm150_vm0, %v1818_v47, 0.0 }
 0x970   :  { %v1787_v54 = vpop.xlane.xlu1 %1786  ;;  %1831 = vadd.xlane.f32.xlu2 %v1830_v22 }
 0x971   :  { %v1803_v25 = vmul.f32 %v1787_v54, %v4201_v15  ;;  %v5042_v54 = vld [vmem:[%s5671_s21 + $0x1] ss:$0 sm:$0xff] }
 0x973   :  { %v4996_v39 = vsub.f32 %v4949_v33, %v1803_v25 }
 0x975   :  { %v1819_v60 = vmul.f32 %v4996_v39, %v4996_v39 }
 0x977   :  { %v1833_v2 = vsel %vm150_vm0, %v1819_v60, 0.0 }
 0x978   :  { %1834 = vadd.xlane.f32.xlu0 %v1833_v2 }
 0x97a   :  { %v1790_v17 = vpop.xlane.xlu2 %1789 }
 0x97b   :  { %v1804_v61 = vmul.f32 %v1790_v17, %v4201_v15 }
 0x97d   :  { %v5003_v16 = vsub.f32 %v4954_v1, %v1804_v61 }
 0x97f   :  { %v1820_v53 = vmul.f32 %v5003_v16, %v5003_v16 }
 0x981   :  { %v1836_v14 = vsel %vm150_vm0, %v1820_v53, 0.0 }
 0x982   :  { %1837 = vadd.xlane.f32.xlu1 %v1836_v14  ;;  %v1793_v36 = vpop.xlane.xlu0 %1792  ;;  %v5048_v14 = vld [vmem:[%s5640_s5 + $0x1] ss:$0 sm:$0xff] }
 0x983   :  { %v1805_v18 = vmul.f32 %v1793_v36, %v4201_v15 }
 0x985   :  { %v5010_v29 = vsub.f32 %v4959_v35, %v1805_v18 }
 0x987   :  { %v1821_v27 = vmul.f32 %v5010_v29, %v5010_v29 }
 0x989   :  { %v1839_v11 = vsel %vm150_vm0, %v1821_v27, 0.0 }
 0x98a   :  { %1840 = vadd.xlane.f32.xlu2 %v1839_v11 }
 0x9d2   :  { %v1826_v37 = vpop.xlane.xlu1 %1825  ;;  %v1796_v38 = vpop.xlane.xlu0 %1795 }
 0x9d3   :  { %v1848_v13 = vmul.f32 %v1826_v37, %v4201_v15  ;;  %v1806_v42 = vmul.f32 %v1796_v38, %v4201_v15 }
 0x9d5   :  { %v1856_v4 = vadd.f32 1e-05, %v1848_v13  ;;  %v5018_v59 = vsub.f32 %v4968_v43, %v1806_v42 }
 0x9d7   :  { %3908 = vrsqrt.f32 %v1856_v4  ;;  %v1822_v44 = vmul.f32 %v5018_v59, %v5018_v59  ;;  %vm1870_vm10 = vweird.f32 %v1856_v4 }
 0x9d9   :  { %v1842_v0 = vsel %vm150_vm0, %v1822_v44, 0.0 }
 0x9da   :  { %v1829_v24 = vpop.xlane.xlu2 %1828  ;;  %v1799_v12 = vpop.xlane.xlu1 %1798  ;;  %1843 = vadd.xlane.f32.xlu0 %v1842_v0 }
 0x9db   :  { %v1849_v7 = vmul.f32 %v1829_v24, %v4201_v15  ;;  %v1807_v5 = vmul.f32 %v1799_v12, %v4201_v15 }
 0x9dd   :  { %v3909_v20 = vpop.eup %3908  ;;  %v1857_v9 = vadd.f32 1e-05, %v1849_v7  ;;  %v5029_v28 = vsub.f32 %v4980_v57, %v1807_v5 }
 0x9de   :  { %v1865_v23 = vmul.f32 %v3909_v20, %v1856_v4  ;;  %vm1871_vm9 = vweird.f32 %v3909_v20 }
 0x9df   :  { %3910 = vrsqrt.f32 %v1857_v9  ;;  %v1823_v63 = vmul.f32 %v5029_v28, %v5029_v28  ;;  %vm1872_vm11 = vmor %vm1870_vm10, %vm1871_vm9  ;;  %vm1880_vm13 = vweird.f32 %v1857_v9 }
 0x9e0   :  { %v1866_v21 = vmul.f32 %v3909_v20, %v1865_v23 }
 0x9e1   :  { %v1845_v30 = vsel %vm150_vm0, %v1823_v63, 0.0 }
 0x9e2   :  { %v1867_v46 = vmul.f32 0.5, %v1866_v21  ;;  %1846 = vadd.xlane.f32.xlu1 %v1845_v30 }
 0x9e3   :  { %v1832_v58 = vpop.xlane.xlu2 %1831 }
 0x9e4   :  { %v1868_v56 = vsub.f32 1.5, %v1867_v46  ;;  %v1850_v50 = vmul.f32 %v1832_v58, %v4201_v15 }
 0x9e5   :  { %v3911_v49 = vpop.eup %3910 }
 0x9e6   :  { %v1869_v51 = vmul.f32 %v3909_v20, %v1868_v56  ;;  %v1875_v48 = vmul.f32 %v3911_v49, %v1857_v9  ;;  %v1858_v40 = vadd.f32 1e-05, %v1850_v50  ;;  %vm1881_vm12 = vweird.f32 %v3911_v49 }
 0x9e7   :  { %vm1882_vm14 = vmor %vm1880_vm13, %vm1881_vm12 }
 0x9e8   :  { %v1876_v10 = vmul.f32 %v3911_v49, %v1875_v48  ;;  %3912 = vrsqrt.f32 %v1858_v40  ;;  %v1873_v55 = vsel %vm1872_vm11, %v3909_v20, %v1869_v51  ;;  %vm1890_vm2 = vweird.f32 %v1858_v40 }
 0x9e9   :  { %v1944_v25 = vmul.f32 %v1873_v55, %v4965_v41 }
 0x9ea   :  { %v1877_v31 = vmul.f32 0.5, %v1876_v10 }
 0x9eb   :  { %v1835_v34 = vpop.xlane.xlu0 %1834  ;;  %v1955_v36 = vmul.f32 %v5042_v54, %v1944_v25 }
 0x9ec   :  { %v1878_v47 = vsub.f32 1.5, %v1877_v31  ;;  %v1851_v22 = vmul.f32 %v1835_v34, %v4201_v15 }
 0x9ed   :  { %v1966_v37 = vadd.f32 %v5048_v14, %v1955_v36 }
 0x9ee   :  { %v3913_v60 = vpop.eup %3912  ;;  %v1879_v2 = vmul.f32 %v3911_v49, %v1878_v47  ;;  %v1859_v17 = vadd.f32 1e-05, %v1851_v22 }
 0x9ef   :  { %v1885_v61 = vmul.f32 %v3913_v60, %v1858_v40  ;;  %vm1891_vm1 = vweird.f32 %v3913_v60 }
 0x9f0   :  { %v1883_v53 = vsel %vm1882_vm14, %v3911_v49, %v1879_v2  ;;  %3914 = vrsqrt.f32 %v1859_v17  ;;  %vm1892_vm3 = vmor %vm1890_vm2, %vm1891_vm1  ;;  %vm1900_vm5 = vweird.f32 %v1859_v17 }
 0x9f1   :  { %v1945_v18 = vmul.f32 %v1883_v53, %v4977_v45  ;;  %v1886_v27 = vmul.f32 %v3913_v60, %v1885_v61 }
 0x9f3   :  { %v1956_v41 = vmul.f32 %v5042_v54, %v1945_v18  ;;  %v1887_v11 = vmul.f32 0.5, %v1886_v27 }
 0x9f5   :  { %v1967_v38 = vadd.f32 %v5048_v14, %v1956_v41  ;;  %v1888_v13 = vsub.f32 1.5, %v1887_v11  ;;  %v1838_v24 = vpop.xlane.xlu1 %1837 }
 0x9f6   :  { %v3915_v42 = vpop.eup %3914  ;;  %v1852_v45 = vmul.f32 %v1838_v24, %v4201_v15 }
 0x9f7   :  { %v1889_v4 = vmul.f32 %v3913_v60, %v1888_v13  ;;  %v1895_v44 = vmul.f32 %v3915_v42, %v1859_v17  ;;  %v1974_v0 = vpack.c.bf16 %v1967_v38, %v1966_v37  ;;  %vm1901_vm4 = vweird.f32 %v3915_v42 }
 0x9f8   :  { %v1860_v5 = vadd.f32 1e-05, %v1852_v45  ;;  %vm1902_vm8 = vmor %vm1900_vm5, %vm1901_vm4 }
 0x9f9   :  { %v1896_v32 = vmul.f32 %v3915_v42, %v1895_v44  ;;  %3632 = vmatmul.msk.bf16.vlgmr.msra.gmra.mxu2 %vm150_vm0, %v1974_v0  ;;  %v1893_v12 = vsel %vm1892_vm3, %v3913_v60, %v1889_v4 }
 0x9fa   :  { %v1946_v9 = vmul.f32 %v1893_v12, %v4989_v62  ;;  %3916 = vrsqrt.f32 %v1860_v5  ;;  %vm1910_vm10 = vweird.f32 %v1860_v5 }
 0x9fb   :  { %v1897_v7 = vmul.f32 0.5, %v1896_v32 }
 0x9fc   :  { %v1957_v46 = vmul.f32 %v5042_v54, %v1946_v9 }
 0x9fd   :  { %v1898_v20 = vsub.f32 1.5, %v1897_v7  ;;  %v1841_v63 = vpop.xlane.xlu2 %1840 }
 0x9fe   :  { %v1853_v30 = vmul.f32 %v1841_v63, %v4201_v15  ;;  %v1968_v62 = vadd.f32 %v5048_v14, %v1957_v46 }
 0x9ff   :  { %v1899_v8 = vmul.f32 %v3915_v42, %v1898_v20 }
 0xa00   :  { %v3917_v58 = vpop.eup %3916  ;;  %v1861_v56 = vadd.f32 1e-05, %v1853_v30 }
 0xa01   :  { %v1903_v23 = vsel %vm1902_vm8, %v3915_v42, %v1899_v8  ;;  %v1905_v49 = vmul.f32 %v3917_v58, %v1860_v5  ;;  %vm1911_vm9 = vweird.f32 %v3917_v58 }
 0xa02   :  { %v1947_v21 = vmul.f32 %v1903_v23, %v4996_v39  ;;  %3918 = vrsqrt.f32 %v1861_v56  ;;  %vm1912_vm11 = vmor %vm1910_vm10, %vm1911_vm9  ;;  %vm1920_vm13 = vweird.f32 %v1861_v56 }
 0xa03   :  { %v1906_v48 = vmul.f32 %v3917_v58, %v1905_v49 }
 0xa04   :  { %v1958_v50 = vmul.f32 %v5042_v54, %v1947_v21 }
 0xa05   :  { %v1907_v10 = vmul.f32 0.5, %v1906_v48 }
 0xa06   :  { %v1969_v51 = vadd.f32 %v5048_v14, %v1958_v50 }
 0xa07   :  { %v1908_v39 = vsub.f32 1.5, %v1907_v10 }
 0xa08   :  { %v1975_v40 = vpack.c.bf16 %v1969_v51, %v1968_v62  ;;  %v3919_v55 = vpop.eup %3918 }
 0xa09   :  { %v1909_v31 = vmul.f32 %v3917_v58, %v1908_v39  ;;  %v1915_v34 = vmul.f32 %v3919_v55, %v1861_v56  ;;  %vm1921_vm12 = vweird.f32 %v3919_v55 }
 0xa0a   :  { %3633 = vmatmul.msk.bf16.gmra.mxu2 %vm150_vm0, %v1975_v40  ;;  %vm1922_vm14 = vmor %vm1920_vm13, %vm1921_vm12 }
 0xa0b   :  { %v1916_v47 = vmul.f32 %v3919_v55, %v1915_v34  ;;  %v1913_v22 = vsel %vm1912_vm11, %v3917_v58, %v1909_v31 }
 0xa0c   :  { %v1948_v2 = vmul.f32 %v1913_v22, %v5003_v16 }
 0xa0d   :  { %v1917_v25 = vmul.f32 0.5, %v1916_v47 }
 0xa0e   :  { %v1959_v36 = vmul.f32 %v5042_v54, %v1948_v2 }
 0xa0f   :  { %v1918_v60 = vsub.f32 1.5, %v1917_v25 }
 0xa10   :  { %v1970_v27 = vadd.f32 %v5048_v14, %v1959_v36 }
 0xa11   :  { %v1919_v17 = vmul.f32 %v3919_v55, %v1918_v60 }
 0xa13   :  { %v1923_v61 = vsel %vm1922_vm14, %v3919_v55, %v1919_v17 }
 0xa14   :  { %v1949_v53 = vmul.f32 %v1923_v61, %v5010_v29 }
 0xa16   :  { %v1960_v18 = vmul.f32 %v5042_v54, %v1949_v53 }
 0xa18   :  { %v1971_v41 = vadd.f32 %v5048_v14, %v1960_v18 }
 0xa1a   :  { %v1976_v11 = vpack.c.bf16 %v1971_v41, %v1970_v27 }
 0xa1c   :  { %3634 = vmatmul.msk.bf16.gmra.mxu2 %vm150_vm0, %v1976_v11 }
 0xa4d   :  { %v1844_v37 = vpop.xlane.xlu0 %1843 }
 0xa4e   :  { %v1854_v16 = vmul.f32 %v1844_v37, %v4201_v15 }
 0xa50   :  { %v1862_v38 = vadd.f32 1e-05, %v1854_v16 }
 0xa52   :  { %3920 = vrsqrt.f32 %v1862_v38  ;;  %vm1930_vm2 = vweird.f32 %v1862_v38 }
 0xa55   :  { %v1847_v13 = vpop.xlane.xlu1 %1846 }
 0xa56   :  { %v1855_v42 = vmul.f32 %v1847_v13, %v4201_v15 }
 0xa58   :  { %v3921_v29 = vpop.eup %3920  ;;  %v1863_v4 = vadd.f32 1e-05, %v1855_v42 }
 0xa59   :  { %v1925_v44 = vmul.f32 %v3921_v29, %v1862_v38  ;;  %vm1931_vm1 = vweird.f32 %v3921_v29 }
 0xa5a   :  { %3922 = vrsqrt.f32 %v1863_v4  ;;  %vm1932_vm3 = vmor %vm1930_vm2, %vm1931_vm1  ;;  %vm1940_vm5 = vweird.f32 %v1863_v4 }
 0xa5b   :  { %v1926_v0 = vmul.f32 %v3921_v29, %v1925_v44 }
 0xa5d   :  { %v1927_v32 = vmul.f32 0.5, %v1926_v0 }
 0xa5f   :  { %v1928_v24 = vsub.f32 1.5, %v1927_v32 }
 0xa60   :  { %v3923_v45 = vpop.eup %3922 }
 0xa61   :  { %v1929_v12 = vmul.f32 %v3921_v29, %v1928_v24  ;;  %v1935_v7 = vmul.f32 %v3923_v45, %v1863_v4  ;;  %vm1941_vm4 = vweird.f32 %v3923_v45 }
 0xa62   :  { %vm1942_vm8 = vmor %vm1940_vm5, %vm1941_vm4 }
 0xa63   :  { %v1936_v5 = vmul.f32 %v3923_v45, %v1935_v7  ;;  %v1933_v20 = vsel %vm1932_vm3, %v3921_v29, %v1929_v12 }
 0xa64   :  { %v1950_v23 = vmul.f32 %v1933_v20, %v5018_v59  ;;  %v3773_v59 = vld [vmem:[%s5642_s7 + $0x1] ss:$0 sm:$0xff] }
 0xa65   :  { %v1937_v9 = vmul.f32 0.5, %v1936_v5 }
 0xa66   :  { %v1961_v46 = vmul.f32 %v5042_v54, %v1950_v23 }
 0xa67   :  { %v1938_v8 = vsub.f32 1.5, %v1937_v9 }
 0xa68   :  { %v1972_v56 = vadd.f32 %v5048_v14, %v1961_v46 }
 0xa69   :  { %v1939_v63 = vmul.f32 %v3923_v45, %v1938_v8 }
 0xa6b   :  { %v1943_v21 = vsel %vm1942_vm8, %v3923_v45, %v1939_v63 }
 0xa6c   :  { %v1951_v30 = vmul.f32 %v1943_v21, %v5029_v28 }
 0xa6e   :  { %v1962_v58 = vmul.f32 %v5042_v54, %v1951_v30 }
 0xa70   :  { %v1973_v50 = vadd.f32 %v5048_v14, %v1962_v58 }
 0xa72   :  { %v1977_v49 = vpack.c.bf16 %v1973_v50, %v1972_v56 }
 0xa74   :  { %3635 = vmatmul.msk.bf16.gmra.mxu2 %vm150_vm0, %v1977_v49 }
 0xa7c   :  { %v2021_v62 = vpop.f32.mrf.mxu2 }
 0xa7d   :  { %v2022_v51 = vadd.f32 %v3773_v59, %v2021_v62 }
 0xa7f   :  { %v2041_v48 = vpack.c.bf16 %v2022_v51, %v2022_v51 }
 0xa81   :  { %2057 = vrot.lane.b32.xlu1 %v2041_v48, %s4067_s2  ;;  %v2073_v54 = vunpack.c.l.b16 %v2041_v48 }
 0xa84   :  { %v2023_v28 = vpop.f32.mrf.mxu2 }
 0xa85   :  { %v2024_v40 = vadd.f32 %v3773_v59, %v2023_v28 }
 0xa87   :  { %v2042_v10 = vpack.c.bf16 %v2024_v40, %v2024_v40 }
 0xa89   :  { %v2074_v39 = vunpack.c.l.b16 %v2042_v10 }
 0xa8b   :  { %v5085_v55 = vpack.c.b16 %v2074_v39, %v2073_v54 }
 0xa8d   :  { %v2026_v14 = vpop.f32.mrf.mxu2 }
 0xa8e   :  { %v2027_v31 = vadd.f32 %v3773_v59, %v2026_v14 }
 0xa90   :  { %v2043_v34 = vpack.c.bf16 %v2027_v31, %v2027_v31 }
 0xa92   :  { %2061 = vrot.lane.b32.xlu2 %v2043_v34, %s4067_s2  ;;  %v2075_v60 = vunpack.c.l.b16 %v2043_v34 }
 0xa95   :  { %v2028_v47 = vpop.f32.mrf.mxu2 }
 0xa96   :  { %v2029_v22 = vadd.f32 %v3773_v59, %v2028_v47 }
 0xa98   :  { %v2044_v25 = vpack.c.bf16 %v2029_v22, %v2029_v22 }
 0xa9a   :  { %v2076_v2 = vunpack.c.l.b16 %v2044_v25  ;;  %2063 = vrot.lane.b32.xlu0 %v2044_v25, %s4067_s2 }
 0xa9c   :  { %v5089_v17 = vpack.c.b16 %v2076_v2, %v2075_v60 }
 0xa9f   :  { %v2031_v61 = vpop.f32.mrf.mxu2 }
 0xaa0   :  { %v2032_v53 = vadd.f32 %v3773_v59, %v2031_v61 }
 0xaa2   :  { %2059 = vrot.lane.b32.xlu0 %v2042_v10, %s4067_s2  ;;  %v2045_v36 = vpack.c.bf16 %v2032_v53, %v2032_v53 }
 0xaa4   :  { %v2114_v50 = vunpack.c.l.b16 %v2045_v36 }
 0xaa7   :  { %v2033_v18 = vpop.f32.mrf.mxu2 }
 0xaa8   :  { %v2034_v37 = vadd.f32 %v3773_v59, %v2033_v18 }
 0xaaa   :  { %2065 = vrot.lane.b32.xlu0 %v2045_v36, %s4067_s2  ;;  %v2046_v13 = vpack.c.bf16 %v2034_v37, %v2034_v37 }
 0xaac   :  { %v2115_v56 = vunpack.c.l.b16 %v2046_v13 }
 0xaae   :  { %v5108_v49 = vpack.c.b16 %v2115_v56, %v2114_v50 }
 0xaec   :  { %v2062_v29 = vpop.permute.xlu2 %2061 }
 0xaed   :  { %v2157_v44 = vunpack.c.l.b16 %v2062_v29 }
 0xaf3   :  { %v2058_v24 = vpop.permute.xlu1 %2057 }
 0xaf4   :  { %v2155_v12 = vunpack.c.l.b16 %v2058_v24 }
 0xaf7   :  { %v2036_v27 = vpop.f32.mrf.mxu2 }
 0xaf8   :  { %v2037_v41 = vadd.f32 %v3773_v59, %v2036_v27 }
 0xafa   :  { %v2047_v11 = vpack.c.bf16 %v2037_v41, %v2037_v41 }
 0xafc   :  { %2069 = vrot.lane.b32.xlu2 %v2047_v11, %s4067_s2  ;;  %v2116_v9 = vunpack.c.l.b16 %v2047_v11 }
 0xaff   :  { %v2038_v16 = vpop.f32.mrf.mxu2 }
 0xb00   :  { %v2039_v38 = vadd.f32 %v3773_v59, %v2038_v16 }
 0xb02   :  { %v2048_v42 = vpack.c.bf16 %v2039_v38, %v2039_v38 }
 0xb04   :  { %2071 = vrot.lane.b32.xlu1 %v2048_v42, %s4067_s2  ;;  %2067 = vrot.lane.b32.xlu2 %v2046_v13, %s4067_s2  ;;  %v2117_v20 = vunpack.c.l.b16 %v2048_v42 }
 0xb06   :  { %v5100_v8 = vpack.c.b16 %v2117_v20, %v2116_v9 }
 0xb0c   :  { %v2064_v4 = vpop.permute.xlu0 %2063 }
 0xb0d   :  { %v2158_v0 = vunpack.c.l.b16 %v2064_v4 }
 0xb0f   :  { %v2160_v32 = vpack.c.b16 %v2158_v0, %v2157_v44 }
 0xb11   :  { %2163 = vrot.lane.b32.xlu1 %v2160_v32, %s4068_s25 }
 0xb14   :  { %v2060_v45 = vpop.permute.xlu0 %2059 }
 0xb15   :  { %v2156_v7 = vunpack.c.l.b16 %v2060_v45 }
 0xb17   :  { %v2159_v5 = vpack.c.b16 %v2156_v7, %v2155_v12 }
 0xb19   :  { %2081 = vrot.lane.b32.xlu1 %v5089_v17, %s4068_s25  ;;  %2161 = vrot.lane.b32.xlu0 %v2159_v5, %s4068_s25 }
 0xb1c   :  { %v2066_v63 = vpop.permute.xlu0 %2065 }
 0xb1d   :  { %v2196_v30 = vunpack.c.l.b16 %v2066_v63 }
 0xb21   :  { %2122 = vrot.lane.b32.xlu1 %v5100_v8, %s4068_s25 }
 0xb56   :  { %v2070_v23 = vpop.permute.xlu2 %2069 }
 0xb57   :  { %v2198_v62 = vunpack.c.l.b16 %v2070_v23 }
 0xb5e   :  { %v2068_v21 = vpop.permute.xlu2 %2067 }
 0xb5f   :  { %v2197_v46 = vunpack.c.l.b16 %v2068_v21 }
 0xb61   :  { %v5104_v58 = vpack.c.b16 %v2197_v46, %v2196_v30 }
 0xb63   :  { %2202 = vrot.lane.b32.xlu0 %v5104_v58, %s4068_s25 }
 0xb6b   :  { %2120 = vrot.lane.b32.xlu0 %v5108_v49, %s4068_s25 }
 0xb73   :  { %2537 = vrot.lane.b32.xlu0 %v2159_v5, %s4069_s3 }
 0xb76   :  { %v2072_v59 = vpop.permute.xlu1 %2071 }
 0xb77   :  { %v2199_v51 = vunpack.c.l.b16 %v2072_v59 }
 0xb79   :  { %v5113_v48 = vpack.c.b16 %v2199_v51, %v2198_v62 }
 0xb7b   :  { %2204 = vrot.lane.b32.xlu2 %v5113_v48, %s4068_s25 }
 0xb83   :  { %v2164_v28 = vpop.permute.xlu1 %2163  ;;  %2079 = vrot.lane.b32.xlu2 %v5085_v55, %s4068_s25 }
 0xb84   :  { %v2175_v40 = vsel %vm411_vm6, %v2164_v28, 0 }
 0xb85   :  { %2183 = vmatpush.bf16.xpose.msra.mxu0 %v2175_v40 }
 0xb8b   :  { %v2082_v10 = vpop.permute.xlu1 %2081  ;;  %v2162_v54 = vpop.permute.xlu0 %2161  ;;  %2539 = vrot.lane.b32.xlu2 %v2160_v32, %s4069_s3 }
 0xb8c   :  { %v2093_v39 = vsel %vm411_vm6, %v2082_v10, 0  ;;  %v2172_v14 = vsel %vm411_vm6, %v2162_v54, 0 }
 0xb8d   :  { %2101 = vmatpush.bf16.xpose.msrb.mxu3 %v2093_v39  ;;  %2184 = vmatpush.bf16.xpose.msra.mxu0 %v2172_v14 }
 0xb93   :  { %v2123_v31 = vpop.permute.xlu1 %2122 }
 0xb94   :  { %v2134_v34 = vsel %vm411_vm6, %v2123_v31, 0  ;;  %3640 = vmatmul.msk.bf16.vlgmr.msra.gmra.mxu0 %vm411_vm6, %v2159_v5 }
 0xb95   :  { %2142 = vmatpush.bf16.xpose.msrb.mxu1 %v2134_v34 }
 0xba4   :  { %3641 = vmatmul.msk.bf16.gmra.mxu0 %vm411_vm6, %v2160_v32 }
 0xbd5   :  { %v2205_v47 = vpop.permute.xlu2 %2204  ;;  %v2203_v22 = vpop.permute.xlu0 %2202 }
 0xbd6   :  { %v2216_v25 = vsel %vm411_vm6, %v2205_v47, 0  ;;  %v2213_v36 = vsel %vm411_vm6, %v2203_v22, 0 }
 0xbd7   :  { %2224 = vmatpush.bf16.xpose.msrb.mxu2 %v2216_v25 }
 0xbdd   :  { %v2080_v60 = vpop.permute.xlu2 %2079  ;;  %v2121_v2 = vpop.permute.xlu0 %2120 }
 0xbde   :  { %v2090_v61 = vsel %vm411_vm6, %v2080_v60, 0  ;;  %v2131_v53 = vsel %vm411_vm6, %v2121_v2, 0 }
 0xbdf   :  { %2102 = vmatpush.bf16.xpose.msrb.mxu3 %v2090_v61  ;;  %2143 = vmatpush.bf16.xpose.msrb.mxu1 %v2131_v53 }
 0xbe0   :  { %2225 = vmatpush.bf16.xpose.msrb.mxu2 %v2213_v36 }
 0xbe5   :  { %v2540_v18 = vpop.permute.xlu2 %2539  ;;  %v2538_v27 = vpop.permute.xlu0 %2537 }
 0xbe6   :  { %3636 = vmatmul.msk.bf16.vlgmr.msrb.gmra.mxu3 %vm411_vm6, %v5085_v55  ;;  %3638 = vmatmul.msk.bf16.vlgmr.msrb.gmra.mxu1 %vm411_vm6, %v5108_v49 }
 0xbe7   :  { %3642 = vmatmul.msk.bf16.vlgmr.msrb.gmra.mxu2 %vm411_vm6, %v5104_v58  ;;  %2555 = vmatpush.bf16.msrb.mxu0 %v2540_v18 }
 0xbeb   :  { %2556 = vmatpush.bf16.msrb.mxu0 %v2538_v27 }
 0xbf6   :  { %3637 = vmatmul.msk.bf16.gmra.mxu3 %vm411_vm6, %v5089_v17  ;;  %3639 = vmatmul.msk.bf16.gmra.mxu1 %vm411_vm6, %v5100_v8 }
 0xbf7   :  { %3643 = vmatmul.msk.bf16.gmra.mxu2 %vm411_vm6, %v5113_v48 }
 0xc11   :  { %v2186_v41 = vpop.f32.mrf.mxu0 }
 0xc12   :  { %v2245_v10 = vsel %vm147_vm7, %v2186_v41, -1e+30 }
 0xc13   :  { %v2277_v14 = vsel %vm150_vm0, %v2245_v10, -inf }
 0xc19   :  { %v2188_v13 = vpop.f32.mrf.mxu0 }
 0xc1a   :  { %v2246_v22 = vsel %vm147_vm7, %v2188_v13, -1e+30 }
 0xc1b   :  { %v2280_v2 = vsel %vm150_vm0, %v2246_v22, -inf }
 0xc21   :  { %v2191_v7 = vpop.f32.mrf.mxu0 }
 0xc22   :  { %v5158_v5 = vsel %vm147_vm7, %v2191_v7, -1e+30 }
 0xc23   :  { %v2283_v63 = vsel %vm150_vm0, %v5158_v5, -inf }
 0xc29   :  { %v2193_v47 = vpop.f32.mrf.mxu0 }
 0xc2a   :  { %v2248_v25 = vsel %vm147_vm7, %v2193_v47, -1e+30 }
 0xc2b   :  { %v2286_v60 = vsel %vm150_vm0, %v2248_v25, -inf }
 0xc63   :  { %v2145_v11 = vpop.f32.mrf.mxu1 }
 0xc64   :  { %v5149_v4 = vsel %vm147_vm7, %v2145_v11, -1e+30 }
 0xc65   :  { %v2265_v45 = vsel %vm150_vm0, %v5149_v4, -inf }
 0xc69   :  { %v2104_v37 = vpop.f32.mrf.mxu3 }
 0xc6a   :  { %v2237_v16 = vsel %vm147_vm7, %v2104_v37, -1e+30  ;;  %v5144_v38 = vpop.f32.mrf.mxu2 }
 0xc6b   :  { %v2147_v42 = vpop.f32.mrf.mxu1  ;;  %v2253_v29 = vsel %vm150_vm0, %v2237_v16, -inf }
 0xc6c   :  { %2254 = vmax.xlane.f32.xlu0 %v2253_v29  ;;  %v5170_v46 = vsel %vm147_vm7, %v2147_v42, -1e+30 }
 0xc6d   :  { %v2268_v51 = vsel %vm150_vm0, %v5170_v46, -inf }
 0xc71   :  { %v2106_v44 = vpop.f32.mrf.mxu3 }
 0xc72   :  { %v2238_v0 = vsel %vm147_vm7, %v2106_v44, -1e+30  ;;  %v2229_v32 = vpop.f32.mrf.mxu2 }
 0xc73   :  { %v2256_v24 = vsel %vm150_vm0, %v2238_v0, -inf  ;;  %v2150_v12 = vpop.f32.mrf.mxu1  ;;  %v5209_v61 = vsel %vm147_vm7, %v2229_v32, -1e+30 }
 0xc74   :  { %2257 = vmax.xlane.f32.xlu1 %v2256_v24  ;;  %2266 = vmax.xlane.f32.xlu0 %v2265_v45  ;;  %v5190_v54 = vsel %vm147_vm7, %v2150_v12, -1e+30  ;;  %v2292_v53 = vsel %vm150_vm0, %v5209_v61, -inf }
 0xc75   :  { %v2271_v31 = vsel %vm150_vm0, %v5190_v54, -inf }
 0xc79   :  { %v2109_v20 = vpop.f32.mrf.mxu3 }
 0xc7a   :  { %v5162_v9 = vsel %vm147_vm7, %v2109_v20, -1e+30  ;;  %v2232_v21 = vpop.f32.mrf.mxu2 }
 0xc7b   :  { %v2259_v23 = vsel %vm150_vm0, %v5162_v9, -inf  ;;  %v2152_v30 = vpop.f32.mrf.mxu1  ;;  %v2251_v36 = vsel %vm147_vm7, %v2232_v21, -1e+30 }
 0xc7c   :  { %2260 = vmax.xlane.f32.xlu1 %v2259_v23  ;;  %2284 = vmax.xlane.f32.xlu0 %v2283_v63  ;;  %v5174_v56 = vsel %vm147_vm7, %v2152_v30, -1e+30  ;;  %v2295_v18 = vsel %vm150_vm0, %v2251_v36, -inf }
 0xc7d   :  { %v2274_v28 = vsel %vm150_vm0, %v5174_v56, -inf }
 0xc81   :  { %v2111_v50 = vpop.f32.mrf.mxu3 }
 0xc82   :  { %v5178_v59 = vsel %vm147_vm7, %v2111_v50, -1e+30  ;;  %v2234_v40 = vpop.f32.mrf.mxu2 }
 0xc83   :  { %v2262_v62 = vsel %vm150_vm0, %v5178_v59, -inf  ;;  %v5194_v39 = vsel %vm147_vm7, %v2234_v40, -1e+30 }
 0xc84   :  { %2263 = vmax.xlane.f32.xlu2 %v2262_v62  ;;  %2269 = vmax.xlane.f32.xlu1 %v2268_v51  ;;  %v2298_v34 = vsel %vm150_vm0, %v5194_v39, -inf }
 0xc85   :  { %2275 = vmax.xlane.f32.xlu0 %v2274_v28 }
 0xc8c   :  { %2278 = vmax.xlane.f32.xlu2 %v2277_v14  ;;  %2272 = vmax.xlane.f32.xlu1 %v2271_v31 }
 0xc8d   :  { %2299 = vmax.xlane.f32.xlu0 %v2298_v34 }
 0xc94   :  { %2287 = vmax.xlane.f32.xlu2 %v2286_v60  ;;  %2281 = vmax.xlane.f32.xlu1 %v2280_v2 }
 0xc9c   :  { %2293 = vmax.xlane.f32.xlu2 %v2292_v53 }
 0xca4   :  { %2296 = vmax.xlane.f32.xlu2 %v2295_v18 }
 0xcad   :  { %2580 = vrot.lane.b32.xlu1 %v5113_v48, %s4069_s3 }
 0xcdf   :  { %v2255_v27 = vpop.xlane.xlu0 %2254 }
 0xce0   :  { %v2301_v41 = vsub.f32 %v2237_v16, %v2255_v27 }
 0xce2   :  { %v2317_v11 = vmul.f32 1.442695, %v2301_v41 }
 0xce4   :  { %3924 = vpow2.f32 %v2317_v11 }
 0xce7   :  { %v2258_v37 = vpop.xlane.xlu1 %2257  ;;  %v2267_v12 = vpop.xlane.xlu0 %2266 }
 0xce8   :  { %v2302_v13 = vsub.f32 %v2238_v0, %v2258_v37  ;;  %v5235_v0 = vsel %vm147_vm7, %v5144_v38, -1e+30 }
 0xce9   :  { %v2289_v7 = vsel %vm150_vm0, %v5235_v0, -inf }
 0xcea   :  { %v5218_v42 = vpop.eup %3924  ;;  %v2319_v29 = vmul.f32 1.442695, %v2302_v13 }
 0xceb   :  { %v2349_v44 = vsel %vm150_vm0, %v5218_v42, 0.0 }
 0xcec   :  { %3926 = vpow2.f32 %v2319_v29  ;;  %2350 = vadd.xlane.f32.xlu1 %v2349_v44 }
 0xcef   :  { %v5222_v32 = vpop.xlane.xlu1 %2260  ;;  %v2285_v30 = vpop.xlane.xlu0 %2284 }
 0xcf0   :  { %v2311_v52 = vsub.f32 %v5158_v5, %v2285_v30 }
 0xcf2   :  { %v5224_v24 = vpop.eup %3926  ;;  %v2337_v31 = vmul.f32 1.442695, %v2311_v52 }
 0xcf3   :  { %v2352_v48 = vsel %vm150_vm0, %v5224_v24, 0.0 }
 0xcf4   :  { %2353 = vadd.xlane.f32.xlu1 %v2352_v48 }
 0xcf7   :  { %v5228_v16 = vpop.xlane.xlu2 %2263  ;;  %v5230_v45 = vpop.xlane.xlu1 %2269 }
 0xcf8   :  { %v2276_v14 = vpop.xlane.xlu0 %2275 }
 0xcfc   :  { %2290 = vmax.xlane.f32.xlu1 %v2289_v7 }
 0xcff   :  { %v2279_v20 = vpop.xlane.xlu2 %2278  ;;  %v2273_v23 = vpop.xlane.xlu1 %2272 }
 0xd00   :  { %v2309_v63 = vsub.f32 %v2245_v10, %v2279_v20  ;;  %v2300_v60 = vpop.xlane.xlu0 %2299 }
 0xd01   :  { %v2316_v27 = vsub.f32 %v5194_v39, %v2300_v60 }
 0xd02   :  { %v2333_v21 = vmul.f32 1.442695, %v2309_v63 }
 0xd03   :  { %v2347_v37 = vmul.f32 1.442695, %v2316_v27 }
 0xd04   :  { %3928 = vpow2.f32 %v2333_v21  ;;  %v2305_v21 = vsub.f32 %v5149_v4, %v2267_v12 }
 0xd06   :  { %v2325_v30 = vmul.f32 1.442695, %v2305_v21 }
 0xd07   :  { %v2288_v50 = vpop.xlane.xlu2 %2287  ;;  %v2282_v62 = vpop.xlane.xlu1 %2281 }
 0xd08   :  { %v2310_v51 = vsub.f32 %v2246_v22, %v2282_v62  ;;  %v2312_v47 = vsub.f32 %v2248_v25, %v2288_v50  ;;  %v2304_v50 = vsub.f32 %v5178_v59, %v5228_v16  ;;  %v2307_v62 = vsub.f32 %v5190_v54, %v2273_v23 }
 0xd0a   :  { %v5239_v28 = vpop.eup %3928  ;;  %v2335_v40 = vmul.f32 1.442695, %v2310_v51  ;;  %v2339_v2 = vmul.f32 1.442695, %v2312_v47  ;;  %v2329_v52 = vmul.f32 1.442695, %v2307_v62 }
 0xd0b   :  { %v2373_v38 = vsel %vm150_vm0, %v5239_v28, 0.0 }
 0xd0c   :  { %2374 = vadd.xlane.f32.xlu0 %v2373_v38  ;;  %3930 = vpow2.f32 %v2335_v40  ;;  %v2323_v40 = vmul.f32 1.442695, %v2304_v50 }
 0xd0d   :  { %3932 = vpow2.f32 %v2337_v31 }
 0xd0e   :  { %3934 = vpow2.f32 %v2339_v2 }
 0xd0f   :  { %v2294_v34 = vpop.xlane.xlu2 %2293 }
 0xd10   :  { %v2314_v11 = vsub.f32 %v5209_v61, %v2294_v34 }
 0xd12   :  { %v5244_v10 = vpop.eup %3930  ;;  %v2343_v13 = vmul.f32 1.442695, %v2314_v11 }
 0xd13   :  { %v2376_v22 = vsel %vm150_vm0, %v5244_v10, 0.0  ;;  %v5248_v18 = vpop.eup %3932 }
 0xd14   :  { %2377 = vadd.xlane.f32.xlu1 %v2376_v22  ;;  %v2379_v25 = vsel %vm150_vm0, %v5248_v18, 0.0  ;;  %v5254_v44 = vpop.eup %3934 }
 0xd15   :  { %v2382_v61 = vsel %vm150_vm0, %v5254_v44, 0.0 }
 0xd17   :  { %v2297_v53 = vpop.xlane.xlu2 %2296 }
 0xd18   :  { %v2315_v5 = vsub.f32 %v2251_v36, %v2297_v53 }
 0xd1a   :  { %v2345_v41 = vmul.f32 1.442695, %v2315_v5 }
 0xd1c   :  { %3936 = vpow2.f32 %v2345_v41  ;;  %2380 = vadd.xlane.f32.xlu1 %v2379_v25 }
 0xd1d   :  { %3938 = vpow2.f32 %v2347_v37 }
 0xd1e   :  { %3940 = vpow2.f32 %v2343_v13 }
 0xd1f   :  { %v2581_v29 = vpop.permute.xlu1 %2580  ;;  %3942 = vpow2.f32 %v2325_v30 }
 0xd20   :  { %2596 = vmatpush.bf16.msra.mxu2 %v2581_v29 }
 0xd22   :  { %v5256_v36 = vpop.eup %3936 }
 0xd23   :  { %v2391_v39 = vsel %vm150_vm0, %v5256_v36, 0.0  ;;  %v5262_v48 = vpop.eup %3938 }
 0xd24   :  { %2392 = vadd.xlane.f32.xlu0 %v2391_v39  ;;  %2383 = vadd.xlane.f32.xlu1 %v2382_v61  ;;  %v5264_v7 = vpop.eup %3940  ;;  %v2394_v20 = vsel %vm150_vm0, %v5262_v48, 0.0 }
 0xd25   :  { %v2388_v63 = vsel %vm150_vm0, %v5264_v7, 0.0  ;;  %v5278_v38 = vpop.eup %3942 }
 0xd26   :  { %v2361_v4 = vsel %vm150_vm0, %v5278_v38, 0.0 }
 0xd2c   :  { %2395 = vadd.xlane.f32.xlu0 %v2394_v20  ;;  %2389 = vadd.xlane.f32.xlu1 %v2388_v63 }
 0xd40   :  { %2457 = vrot.lane.b32.xlu0 %v5089_v17, %s4069_s3 }
 0xd45   :  { %2455 = vrot.lane.b32.xlu1 %v5085_v55, %s4069_s3  ;;  %v2308_v55 = vsub.f32 %v5174_v56, %v2276_v14 }
 0xd47   :  { %v2331_v16 = vmul.f32 1.442695, %v2308_v55 }
 0xd5f   :  { %v2351_v51 = vpop.xlane.xlu1 %2350 }
 0xd60   :  { %3944 = vrcp.f32 %v2351_v51 }
 0xd61   :  { %3946 = vpow2.f32 %v2323_v40 }
 0xd62   :  { %3948 = vpow2.f32 %v2329_v52 }
 0xd66   :  { %v3945_v31 = vpop.eup %3944 }
 0xd67   :  { %v2354_v17 = vpop.xlane.xlu1 %2353  ;;  %v2413_v59 = vmul.f32 %v3945_v31, %v5218_v42  ;;  %v5284_v54 = vpop.eup %3946 }
 0xd68   :  { %3950 = vrcp.f32 %v2354_v17  ;;  %v5286_v12 = vpop.eup %3948  ;;  %v2358_v56 = vsel %vm150_vm0, %v5284_v54, 0.0 }
 0xd69   :  { %v2429_v34 = vpack.c.bf16 %v2413_v59, %v2413_v59  ;;  %3952 = vpow2.f32 %v2331_v16  ;;  %v2367_v42 = vsel %vm150_vm0, %v5286_v12, 0.0 }
 0xd6a   :  { %2362 = vadd.xlane.f32.xlu0 %v2361_v4 }
 0xd6b   :  { %v5294_v53 = vunpack.c.l.b16 %v2429_v34 }
 0xd6e   :  { %v3951_v23 = vpop.eup %3950 }
 0xd6f   :  { %v2414_v47 = vmul.f32 %v3951_v23, %v5224_v24  ;;  %v2291_v22 = vpop.xlane.xlu1 %2290  ;;  %2359 = vadd.xlane.f32.xlu1 %v2358_v56  ;;  %v5300_v27 = vpop.eup %3952  ;;  %v2303_v56 = vsub.f32 %v5162_v9, %v5222_v32 }
 0xd70   :  { %v2313_v14 = vsub.f32 %v5235_v0, %v2291_v22  ;;  %v2370_v0 = vsel %vm150_vm0, %v5300_v27, 0.0 }
 0xd71   :  { %v2430_v60 = vpack.c.bf16 %v2414_v47, %v2414_v47 }
 0xd72   :  { %v2341_v2 = vmul.f32 1.442695, %v2313_v14  ;;  %2368 = vadd.xlane.f32.xlu0 %v2367_v42  ;;  %v2321_v42 = vmul.f32 1.442695, %v2303_v56  ;;  %v3744_v56 = vld [vmem:[%s5643_s8 + $0x18] sm:$0xff] }
 0xd73   :  { %v5296_v5 = vunpack.c.l.b16 %v2430_v60 }
 0xd74   :  { %3954 = vpow2.f32 %v2341_v2 }
 0xd75   :  { %v2453_v24 = vpack.c.b16 %v5296_v5, %v5294_v53 }
 0xd7a   :  { %v5304_v41 = vpop.eup %3954  ;;  %2371 = vadd.xlane.f32.xlu0 %v2370_v0 }
 0xd7b   :  { %v2385_v11 = vsel %vm150_vm0, %v5304_v41, 0.0 }
 0xd7c   :  { %2386 = vadd.xlane.f32.xlu2 %v2385_v11 }
 0xd7f   :  { %v2375_v25 = vpop.xlane.xlu0 %2374 }
 0xd80   :  { %3956 = vrcp.f32 %v2375_v25 }
 0xd86   :  { %v3957_v13 = vpop.eup %3956 }
 0xd87   :  { %v2378_v37 = vpop.xlane.xlu1 %2377  ;;  %v2421_v29 = vmul.f32 %v3957_v13, %v5239_v28 }
 0xd88   :  { %3958 = vrcp.f32 %v2378_v37  ;;  %2498 = vrot.lane.b32.xlu1 %v5100_v8, %s4069_s3 }
 0xd89   :  { %v2437_v61 = vpack.c.bf16 %v2421_v29, %v2421_v29 }
 0xd8b   :  { %v2531_v30 = vunpack.c.l.b16 %v2437_v61 }
 0xd8e   :  { %v3959_v39 = vpop.eup %3958 }
 0xd8f   :  { %v2422_v20 = vmul.f32 %v3959_v39, %v5244_v10  ;;  %v2381_v63 = vpop.xlane.xlu1 %2380 }
 0xd90   :  { %3960 = vrcp.f32 %v2381_v63 }
 0xd91   :  { %v2438_v21 = vpack.c.bf16 %v2422_v20, %v2422_v20 }
 0xd93   :  { %v2532_v50 = vunpack.c.l.b16 %v2438_v21 }
 0xd94   :  { %2578 = vrot.lane.b32.xlu2 %v5104_v58, %s4069_s3 }
 0xd95   :  { %v2535_v62 = vpack.c.b16 %v2532_v50, %v2531_v30 }
 0xd96   :  { %v3961_v8 = vpop.eup %3960 }
 0xd97   :  { %v2393_v51 = vpop.xlane.xlu0 %2392  ;;  %v2384_v40 = vpop.xlane.xlu1 %2383  ;;  %3648 = vmatmul.msk.bf16.vlgmr.msrb.gmra.mxu0 %vm150_vm0, %v2535_v62  ;;  %v2423_v28 = vmul.f32 %v3961_v8, %v5248_v18 }
 0xd98   :  { %3962 = vrcp.f32 %v2384_v40 }
 0xd99   :  { %3964 = vrcp.f32 %v2393_v51  ;;  %v2439_v31 = vpack.c.bf16 %v2423_v28, %v2423_v28 }
 0xd9b   :  { %v2533_v59 = vunpack.c.l.b16 %v2439_v31 }
 0xd9e   :  { %v3963_v52 = vpop.eup %3962 }
 0xd9f   :  { %v2396_v10 = vpop.xlane.xlu0 %2395  ;;  %v3965_v17 = vpop.eup %3964  ;;  %v2424_v55 = vmul.f32 %v3963_v52, %v5254_v44 }
 0xda0   :  { %3966 = vrcp.f32 %v2396_v10  ;;  %v2427_v58 = vmul.f32 %v3965_v17, %v5256_v36  ;;  %v2390_v2 = vpop.xlane.xlu1 %2389  ;;  %v2306_v36 = vsub.f32 %v5170_v46, %v5230_v45 }
 0xda1   :  { %v2440_v4 = vpack.c.bf16 %v2424_v55, %v2424_v55  ;;  %3968 = vpow2.f32 %v2321_v42 }
 0xda2   :  { %v2443_v47 = vpack.c.bf16 %v2427_v58, %v2427_v58  ;;  %v2327_v5 = vmul.f32 1.442695, %v2306_v36 }
 0xda3   :  { %v2534_v16 = vunpack.c.l.b16 %v2440_v4 }
 0xda4   :  { %v2574_v14 = vunpack.c.l.b16 %v2443_v47  ;;  %3970 = vpow2.f32 %v2327_v5 }
 0xda5   :  { %v2536_v34 = vpack.c.b16 %v2534_v16, %v2533_v59  ;;  %3972 = vrcp.f32 %v2390_v2 }
 0xda6   :  { %v3967_v23 = vpop.eup %3966 }
 0xda7   :  { %v2428_v22 = vmul.f32 %v3967_v23, %v5262_v48  ;;  %3649 = vmatmul.msk.bf16.gmra.mxu0 %vm150_vm0, %v2536_v34  ;;  %v3969_v48 = vpop.eup %3968 }
 0xda8   :  { %v2355_v9 = vsel %vm150_vm0, %v3969_v48, 0.0 }
 0xda9   :  { %v2444_v18 = vpack.c.bf16 %v2428_v22, %v2428_v22 }
 0xdaa   :  { %v5326_v32 = vpop.eup %3970 }
 0xdab   :  { %v2575_v60 = vunpack.c.l.b16 %v2444_v18  ;;  %v2364_v11 = vsel %vm150_vm0, %v5326_v32, 0.0  ;;  %v3973_v45 = vpop.eup %3972 }
 0xdac   :  { %v2426_v25 = vmul.f32 %v3973_v45, %v5264_v7 }
 0xdad   :  { %v2577_v44 = vpack.c.b16 %v2575_v60, %v2574_v14 }
 0xdae   :  { %v2442_v13 = vpack.c.bf16 %v2426_v25, %v2426_v25 }
 0xdb0   :  { %v2573_v20 = vunpack.c.l.b16 %v2442_v13 }
 0xdb2   :  { %v2458_v53 = vpop.permute.xlu0 %2457 }
 0xdb3   :  { %2473 = vmatpush.bf16.msra.mxu3 %v2458_v53 }
 0xdb7   :  { %v2456_v0 = vpop.permute.xlu1 %2455 }
 0xdb8   :  { %2474 = vmatpush.bf16.msra.mxu3 %v2456_v0 }
 0xdbb   :  { %3644 = vmatmul.msk.bf16.vlgmr.msra.gmra.mxu3 %vm150_vm0, %v2453_v24 }
 0xdbc   :  { %2716 = vmatpush.bf16.msrb.mxu3 %v3744_v56 }
 0xdbd   :  { %2356 = vadd.xlane.f32.xlu2 %v2355_v9 }
 0xdc5   :  { %2365 = vadd.xlane.f32.xlu2 %v2364_v11 }
 0xddd   :  { %2496 = vrot.lane.b32.xlu2 %v5108_v49, %s4069_s3  ;;  %v2363_v28 = vpop.xlane.xlu0 %2362 }
 0xde2   :  { %v2360_v37 = vpop.xlane.xlu1 %2359 }
 0xde5   :  { %v2369_v16 = vpop.xlane.xlu0 %2368 }
 0xded   :  { %v2372_v53 = vpop.xlane.xlu0 %2371 }
 0xdef   :  { %v2387_v46 = vpop.xlane.xlu2 %2386 }
 0xdf0   :  { %3974 = vrcp.f32 %v2387_v46 }
 0xdf1   :  { %3976 = vrcp.f32 %v2360_v37 }
 0xdf6   :  { %v3975_v24 = vpop.eup %3974 }
 0xdf7   :  { %v2425_v29 = vmul.f32 %v3975_v24, %v5304_v41  ;;  %v2579_v39 = vpop.permute.xlu2 %2578  ;;  %v3977_v58 = vpop.eup %3976 }
 0xdf8   :  { %2597 = vmatpush.bf16.msra.mxu2 %v2579_v39  ;;  %v2416_v23 = vmul.f32 %v3977_v58, %v5284_v54 }
 0xdf9   :  { %v2441_v61 = vpack.c.bf16 %v2425_v29, %v2425_v29 }
 0xdfa   :  { %v2499_v21 = vpop.permute.xlu1 %2498  ;;  %v2432_v18 = vpack.c.bf16 %v2416_v23, %v2416_v23 }
 0xdfb   :  { %v2572_v63 = vunpack.c.l.b16 %v2441_v61  ;;  %2514 = vmatpush.bf16.msra.mxu1 %v2499_v21 }
 0xdfc   :  { %v2452_v54 = vunpack.c.l.b16 %v2432_v18 }
 0xdfd   :  { %v2576_v30 = vpack.c.b16 %v2573_v20, %v2572_v63 }
 0xdff   :  { %3650 = vmatmul.msk.bf16.vlgmr.msra.gmra.mxu2 %vm150_vm0, %v2576_v30 }
 0xe0f   :  { %3651 = vmatmul.msk.bf16.gmra.mxu2 %vm150_vm0, %v2577_v44  ;;  %v3743_v44 = vld [vmem:[%s5643_s8 + $0x10] sm:$0xff] }
 0xe10   :  { %2717 = vmatpush.bf16.msrb.mxu3 %v3743_v44 }
 0xe14   :  { %v2558_v49 = vpop.f32.mrf.mxu0 }
 0xe15   :  { %v2617_v50 = vpack.c.bf16 %v2558_v49, %v2558_v49 }
 0xe17   :  { %v2653_v51 = vunpack.c.l.b16 %v2617_v50 }
 0xe1c   :  { %v2560_v7 = vpop.f32.mrf.mxu0 }
 0xe1d   :  { %v2618_v62 = vpack.c.bf16 %v2560_v7, %v2560_v7 }
 0xe1f   :  { %v2654_v40 = vunpack.c.l.b16 %v2618_v62 }
 0xe21   :  { %v2661_v8 = vpack.c.b16 %v2654_v40, %v2653_v51 }
 0xe23   :  { %2665 = vrot.lane.b32.xlu2 %v2661_v8, %s4070_s26 }
 0xe24   :  { %v2563_v41 = vpop.f32.mrf.mxu0 }
 0xe25   :  { %v2619_v52 = vpack.c.bf16 %v2563_v41, %v2563_v41 }
 0xe27   :  { %v2655_v31 = vunpack.c.l.b16 %v2619_v52 }
 0xe2c   :  { %v2565_v10 = vpop.f32.mrf.mxu0 }
 0xe2d   :  { %v2620_v17 = vpack.c.bf16 %v2565_v10, %v2565_v10 }
 0xe2f   :  { %v2656_v55 = vunpack.c.l.b16 %v2620_v17 }
 0xe30   :  { %v2357_v4 = vpop.xlane.xlu2 %2356 }
 0xe31   :  { %3978 = vrcp.f32 %v2357_v4  ;;  %v2662_v59 = vpack.c.b16 %v2656_v55, %v2655_v31 }
 0xe32   :  { %3980 = vrcp.f32 %v2363_v28 }
 0xe33   :  { %2667 = vrot.lane.b32.xlu1 %v2662_v59, %s4070_s26 }
 0xe37   :  { %v3979_v34 = vpop.eup %3978 }
 0xe38   :  { %v2366_v47 = vpop.xlane.xlu2 %2365  ;;  %v2415_v22 = vmul.f32 %v3979_v34, %v3969_v48  ;;  %v3981_v14 = vpop.eup %3980 }
 0xe39   :  { %3982 = vrcp.f32 %v2366_v47  ;;  %v2417_v42 = vmul.f32 %v3981_v14, %v5278_v38 }
 0xe3a   :  { %v2431_v60 = vpack.c.bf16 %v2415_v22, %v2415_v22  ;;  %3984 = vrcp.f32 %v2372_v53 }
 0xe3b   :  { %v2433_v0 = vpack.c.bf16 %v2417_v42, %v2417_v42  ;;  %3986 = vrcp.f32 %v2369_v16 }
 0xe3c   :  { %v2451_v2 = vunpack.c.l.b16 %v2431_v60 }
 0xe3d   :  { %v2490_v46 = vunpack.c.l.b16 %v2433_v0 }
 0xe3e   :  { %v2454_v36 = vpack.c.b16 %v2452_v54, %v2451_v2  ;;  %v2476_v63 = vpop.f32.mrf.mxu3 }
 0xe3f   :  { %v3983_v5 = vpop.eup %3982  ;;  %v2609_v49 = vpack.c.bf16 %v2476_v63, %v2476_v63 }
 0xe40   :  { %v2418_v48 = vmul.f32 %v3983_v5, %v5326_v32  ;;  %v2497_v9 = vpop.permute.xlu2 %2496  ;;  %3645 = vmatmul.msk.bf16.gmra.mxu3 %vm150_vm0, %v2454_v36  ;;  %v3985_v38 = vpop.eup %3984 }
 0xe41   :  { %2515 = vmatpush.bf16.msra.mxu1 %v2497_v9  ;;  %v3987_v37 = vpop.eup %3986  ;;  %v2420_v24 = vmul.f32 %v3985_v38, %v5300_v27  ;;  %v2633_v7 = vunpack.c.l.b16 %v2609_v49  ;;  %v3774_v9 = vld [vmem:[%s5644_s9 + $0x1] ss:$0 sm:$0xff] }
 0xe42   :  { %v2434_v11 = vpack.c.bf16 %v2418_v48, %v2418_v48  ;;  %v2419_v13 = vmul.f32 %v3987_v37, %v5286_v12 }
 0xe43   :  { %v2436_v29 = vpack.c.bf16 %v2420_v24, %v2420_v24 }
 0xe44   :  { %v2491_v45 = vunpack.c.l.b16 %v2434_v11  ;;  %v2435_v32 = vpack.c.bf16 %v2419_v13, %v2419_v13 }
 0xe45   :  { %v2493_v39 = vunpack.c.l.b16 %v2436_v29 }
 0xe46   :  { %v2494_v25 = vpack.c.b16 %v2491_v45, %v2490_v46  ;;  %v2492_v61 = vunpack.c.l.b16 %v2435_v32  ;;  %v2478_v21 = vpop.f32.mrf.mxu3 }
 0xe47   :  { %v2610_v30 = vpack.c.bf16 %v2478_v21, %v2478_v21 }
 0xe48   :  { %3646 = vmatmul.msk.bf16.vlgmr.msra.gmra.mxu1 %vm150_vm0, %v2494_v25  ;;  %v2495_v20 = vpack.c.b16 %v2493_v39, %v2492_v61 }
 0xe49   :  { %v2634_v50 = vunpack.c.l.b16 %v2610_v30 }
 0xe4b   :  { %v2641_v62 = vpack.c.b16 %v2634_v50, %v2633_v7 }
 0xe58   :  { %3647 = vmatmul.msk.bf16.gmra.mxu1 %vm150_vm0, %v2495_v20 }
 0xe7d   :  { %v2666_v51 = vpop.permute.xlu2 %2665 }
 0xe7e   :  { %v2675_v40 = vsel %vm411_vm6, %v2641_v62, %v2666_v51 }
 0xe7f   :  { %3664 = vmatmul.msk.bf16.vlgmr.msrb.gmra.mxu3 %vm150_vm0, %v2675_v40 }
 0xe82   :  { %v2599_v12 = vpop.f32.mrf.mxu2 }
 0xe83   :  { %v2621_v27 = vpack.c.bf16 %v2599_v12, %v2599_v12 }
 0xe85   :  { %v2657_v28 = vunpack.c.l.b16 %v2621_v27 }
 0xe8a   :  { %v2601_v8 = vpop.f32.mrf.mxu2 }
 0xe8b   :  { %v2622_v41 = vpack.c.bf16 %v2601_v8, %v2601_v8 }
 0xe8d   :  { %v2658_v52 = vunpack.c.l.b16 %v2622_v41 }
 0xe8f   :  { %v2663_v10 = vpack.c.b16 %v2658_v52, %v2657_v28 }
 0xe91   :  { %2669 = vrot.lane.b32.xlu0 %v2663_v10, %s4070_s26 }
 0xe92   :  { %v2604_v17 = vpop.f32.mrf.mxu2 }
 0xe93   :  { %v2623_v31 = vpack.c.bf16 %v2604_v17, %v2604_v17 }
 0xe95   :  { %v2659_v58 = vunpack.c.l.b16 %v2623_v31 }
 0xe9a   :  { %v2606_v55 = vpop.f32.mrf.mxu2 }
 0xe9b   :  { %v2624_v4 = vpack.c.bf16 %v2606_v55, %v2606_v55 }
 0xe9d   :  { %v2660_v59 = vunpack.c.l.b16 %v2624_v4 }
 0xe9f   :  { %v2664_v16 = vpack.c.b16 %v2660_v59, %v2659_v58 }
 0xea1   :  { %2671 = vrot.lane.b32.xlu2 %v2664_v16, %s4070_s26 }
 0xea5   :  { %v2668_v60 = vpop.permute.xlu1 %2667 }
 0xec3   :  { %v2481_v23 = vpop.f32.mrf.mxu3 }
 0xec4   :  { %v2611_v34 = vpack.c.bf16 %v2481_v23, %v2481_v23 }
 0xec5   :  { %v2517_v42 = vpop.f32.mrf.mxu1 }
 0xec6   :  { %v2635_v18 = vunpack.c.l.b16 %v2611_v34  ;;  %v2613_v53 = vpack.c.bf16 %v2517_v42, %v2517_v42 }
 0xec8   :  { %v2637_v0 = vunpack.c.l.b16 %v2613_v53 }
 0xecb   :  { %v2483_v47 = vpop.f32.mrf.mxu3 }
 0xecc   :  { %v2612_v22 = vpack.c.bf16 %v2483_v47, %v2483_v47 }
 0xecd   :  { %v2519_v2 = vpop.f32.mrf.mxu1 }
 0xece   :  { %v2636_v56 = vunpack.c.l.b16 %v2612_v22  ;;  %v2614_v54 = vpack.c.bf16 %v2519_v2, %v2519_v2 }
 0xed0   :  { %v2642_v14 = vpack.c.b16 %v2636_v56, %v2635_v18  ;;  %v2638_v5 = vunpack.c.l.b16 %v2614_v54 }
 0xed2   :  { %v2678_v44 = vsel %vm411_vm6, %v2642_v14, %v2668_v60  ;;  %v2643_v48 = vpack.c.b16 %v2638_v5, %v2637_v0 }
 0xed3   :  { %3665 = vmatmul.msk.bf16.gmra.mxu3 %vm150_vm0, %v2678_v44 }
 0xed5   :  { %v2522_v36 = vpop.f32.mrf.mxu1 }
 0xed6   :  { %v2615_v32 = vpack.c.bf16 %v2522_v36, %v2522_v36 }
 0xed8   :  { %v2639_v63 = vunpack.c.l.b16 %v2615_v32  ;;  %v3746_v32 = vld [vmem:[%s5647_s12 + $0x18] sm:$0xff] }
 0xed9   :  { %3006 = vmatpush.bf16.msrb.mxu1 %v3746_v32 }
 0xedd   :  { %v2524_v37 = vpop.f32.mrf.mxu1 }
 0xede   :  { %v2616_v13 = vpack.c.bf16 %v2524_v37, %v2524_v37 }
 0xee0   :  { %v2640_v61 = vunpack.c.l.b16 %v2616_v13 }
 0xee2   :  { %v2644_v30 = vpack.c.b16 %v2640_v61, %v2639_v63  ;;  %v3745_v61 = vld [vmem:[%s5647_s12 + $0x10] sm:$0xff]  ;;  %s3512_s12 = sshll.u32 %s4072_s22, 4  ;;  %s3513_s12 = int_to_ptr.vmem [resolvable:$true] %s3512_s12 }
 0xee3   :  { %3007 = vmatpush.bf16.msrb.mxu1 %v3745_v61 }
 0xf02   :  { %v2719_v11 = vpop.f32.mrf.mxu3 }
 0xf03   :  { %v2670_v46 = vpop.permute.xlu0 %2669  ;;  %v2739_v45 = vadd.f32 %v2719_v11, %v4934_v6  ;;  %v2672_v6 = vpop.permute.xlu2 %2671 }
 0xf04   :  { %v2681_v25 = vsel %vm411_vm6, %v2643_v48, %v2670_v46  ;;  %v2684_v49 = vsel %vm411_vm6, %v2644_v30, %v2672_v6 }
 0xf05   :  { %3666 = vmatmul.msk.bf16.gmra.mxu3 %vm150_vm0, %v2681_v25  ;;  %v2752_v38 = vadd.f32 %v3774_v9, %v2739_v45 }
 0xf07   :  { %v2764_v24 = vsel %vm150_vm0, %v2752_v38, 0.0 }
 0xf08   :  { %2765 = vadd.xlane.f32.xlu1 %v2764_v24 }
 0xf0a   :  { %v2721_v29 = vpop.f32.mrf.mxu3 }
 0xf0b   :  { %v2740_v39 = vadd.f32 %v2721_v29, %v4939_v26 }
 0xf0d   :  { %v2753_v20 = vadd.f32 %v3774_v9, %v2740_v39 }
 0xf0f   :  { %v2767_v21 = vsel %vm150_vm0, %v2753_v20, 0.0 }
 0xf10   :  { %2768 = vadd.xlane.f32.xlu2 %v2767_v21 }
 0xf15   :  { %3667 = vmatmul.msk.bf16.gmra.mxu3 %vm150_vm0, %v2684_v49 }
 0xf56   :  { %v2724_v50 = vpop.f32.mrf.mxu3 }
 0xf57   :  { %v2741_v7 = vadd.f32 %v2724_v50, %v4944_v19 }
 0xf59   :  { %v5370_v62 = vadd.f32 %v3774_v9, %v2741_v7 }
 0xf5b   :  { %v2770_v26 = vsel %vm150_vm0, %v5370_v62, 0.0 }
 0xf5c   :  { %2771 = vadd.xlane.f32.xlu0 %v2770_v26 }
 0xf5e   :  { %v2726_v51 = vpop.f32.mrf.mxu3 }
 0xf5f   :  { %v2742_v40 = vadd.f32 %v2726_v51, %v4949_v33 }
 0xf61   :  { %v2755_v12 = vadd.f32 %v3774_v9, %v2742_v40 }
 0xf63   :  { %v2773_v27 = vsel %vm150_vm0, %v2755_v12, 0.0 }
 0xf64   :  { %2774 = vadd.xlane.f32.xlu1 %v2773_v27 }
 0xf7b   :  { %v2766_v8 = vpop.xlane.xlu1 %2765 }
 0xf7c   :  { %v2788_v41 = vmul.f32 %v2766_v8, %v4201_v15 }
 0xf7e   :  { %v5377_v28 = vsub.f32 %v2752_v38, %v2788_v41 }
 0xf80   :  { %v2804_v19 = vmul.f32 %v5377_v28, %v5377_v28 }
 0xf82   :  { %v2812_v52 = vsel %vm150_vm0, %v2804_v19, 0.0 }
 0xf83   :  { %2813 = vadd.xlane.f32.xlu0 %v2812_v52  ;;  %v2769_v10 = vpop.xlane.xlu2 %2768 }
 0xf84   :  { %v2789_v31 = vmul.f32 %v2769_v10, %v4201_v15 }
 0xf86   :  { %v5384_v4 = vsub.f32 %v2753_v20, %v2789_v31 }
 0xf88   :  { %v2729_v17 = vpop.f32.mrf.mxu3  ;;  %v2805_v23 = vmul.f32 %v5384_v4, %v5384_v4 }
 0xf89   :  { %v2743_v33 = vadd.f32 %v2729_v17, %v4954_v1 }
 0xf8a   :  { %v2815_v47 = vsel %vm150_vm0, %v2805_v23, 0.0  ;;  %v5446_v23 = vld [vmem:[%s5645_s10 + $0x1] ss:$0 sm:$0xff] }
 0xf8b   :  { %v2756_v55 = vadd.f32 %v3774_v9, %v2743_v33 }
 0xf8d   :  { %v2776_v58 = vsel %vm150_vm0, %v2756_v55, 0.0 }
 0xf8e   :  { %2777 = vadd.xlane.f32.xlu2 %v2776_v58 }
 0xf90   :  { %v2731_v59 = vpop.f32.mrf.mxu3 }
 0xf91   :  { %v2744_v16 = vadd.f32 %v2731_v59, %v4959_v35 }
 0xf93   :  { %v2757_v34 = vadd.f32 %v3774_v9, %v2744_v16 }
 0xf95   :  { %v2779_v22 = vsel %vm150_vm0, %v2757_v34, 0.0 }
 0xf96   :  { %2816 = vadd.xlane.f32.xlu2 %v2815_v47  ;;  %2780 = vadd.xlane.f32.xlu1 %v2779_v22 }
 0xf98   :  { %v2734_v1 = vpop.f32.mrf.mxu3 }
 0xf99   :  { %v2745_v18 = vadd.f32 %v2734_v1, %v4968_v43 }
 0xf9b   :  { %v5393_v56 = vadd.f32 %v3774_v9, %v2745_v18 }
 0xf9d   :  { %v2782_v14 = vsel %vm150_vm0, %v5393_v56, 0.0 }
 0xf9e   :  { %2783 = vadd.xlane.f32.xlu1 %v2782_v14  ;;  %v5457_v14 = vld [vmem:[%s5646_s11 + $0x1] ss:$0 sm:$0xff] }
 0xfa0   :  { %v2736_v35 = vpop.f32.mrf.mxu3 }
 0xfa1   :  { %v2746_v60 = vadd.f32 %v2736_v35, %v4980_v57 }
 0xfa3   :  { %v5398_v44 = vadd.f32 %v3774_v9, %v2746_v60 }
 0xfa5   :  { %v2785_v42 = vsel %vm150_vm0, %v5398_v44, 0.0 }
 0xfa6   :  { %2786 = vadd.xlane.f32.xlu0 %v2785_v42 }
 0xfcf   :  { %v2772_v2 = vpop.xlane.xlu0 %2771 }
 0xfd0   :  { %v2790_v54 = vmul.f32 %v2772_v2, %v4201_v15 }
 0xfd2   :  { %v5404_v43 = vsub.f32 %v5370_v62, %v2790_v54 }
 0xfd4   :  { %v2806_v53 = vmul.f32 %v5404_v43, %v5404_v43 }
 0xfd6   :  { %v2818_v36 = vsel %vm150_vm0, %v2806_v53, 0.0 }
 0xfd7   :  { %v2775_v5 = vpop.xlane.xlu1 %2774  ;;  %2819 = vadd.xlane.f32.xlu2 %v2818_v36 }
 0xfd8   :  { %v2791_v57 = vmul.f32 %v2775_v5, %v4201_v15 }
 0xfda   :  { %v5410_v0 = vsub.f32 %v2755_v12, %v2791_v57 }
 0xfdc   :  { %v2807_v48 = vmul.f32 %v5410_v0, %v5410_v0 }
 0xfde   :  { %v2821_v9 = vsel %vm150_vm0, %v2807_v48, 0.0 }
 0xfdf   :  { %2822 = vadd.xlane.f32.xlu1 %v2821_v9 }
 0xff6   :  { %v2814_v11 = vpop.xlane.xlu0 %2813 }
 0xff7   :  { %v2836_v46 = vmul.f32 %v2814_v11, %v4201_v15 }
 0xff9   :  { %v2844_v45 = vadd.f32 1e-05, %v2836_v46 }
 0xffb   :  { %3988 = vrsqrt.f32 %v2844_v45  ;;  %vm2858_vm7 = vweird.f32 %v2844_v45 }
0x1001   :  { %v2778_v25 = vpop.xlane.xlu2 %2777  ;;  %v3989_v38 = vpop.eup %3988 }
0x1002   :  { %v2792_v37 = vmul.f32 %v2778_v25, %v4201_v15  ;;  %v2853_v13 = vmul.f32 %v3989_v38, %v2844_v45  ;;  %vm2859_vm6 = vweird.f32 %v3989_v38 }
0x1003   :  { %vm2860_vm9 = vmor %vm2858_vm7, %vm2859_vm6 }
0x1004   :  { %v5417_v24 = vsub.f32 %v2756_v55, %v2792_v37  ;;  %v2854_v20 = vmul.f32 %v3989_v38, %v2853_v13 }
0x1006   :  { %v2808_v29 = vmul.f32 %v5417_v24, %v5417_v24  ;;  %v2855_v7 = vmul.f32 0.5, %v2854_v20 }
0x1008   :  { %v2824_v39 = vsel %vm150_vm0, %v2808_v29, 0.0  ;;  %v2856_v40 = vsub.f32 1.5, %v2855_v7 }
0x1009   :  { %v2817_v63 = vpop.xlane.xlu2 %2816  ;;  %v2781_v21 = vpop.xlane.xlu1 %2780  ;;  %2825 = vadd.xlane.f32.xlu0 %v2824_v39 }
0x100a   :  { %v2837_v6 = vmul.f32 %v2817_v63, %v4201_v15  ;;  %v2793_v30 = vmul.f32 %v2781_v21, %v4201_v15  ;;  %v2857_v19 = vmul.f32 %v3989_v38, %v2856_v40 }
0x100c   :  { %v2845_v49 = vadd.f32 1e-05, %v2837_v6  ;;  %v5430_v50 = vsub.f32 %v2757_v34, %v2793_v30  ;;  %v2861_v33 = vsel %vm2860_vm9, %v3989_v38, %v2857_v19 }
0x100d   :  { %v2932_v34 = vmul.f32 %v2861_v33, %v5377_v28 }
0x100e   :  { %3990 = vrsqrt.f32 %v2845_v49  ;;  %v2809_v26 = vmul.f32 %v5430_v50, %v5430_v50  ;;  %vm2868_vm11 = vweird.f32 %v2845_v49 }
0x100f   :  { %v2943_v35 = vmul.f32 %v5446_v23, %v2932_v34 }
0x1010   :  { %v2827_v51 = vsel %vm150_vm0, %v2809_v26, 0.0 }
0x1011   :  { %v2784_v12 = vpop.xlane.xlu1 %2783  ;;  %2828 = vadd.xlane.f32.xlu2 %v2827_v51  ;;  %v2954_v42 = vadd.f32 %v5457_v14, %v2943_v35 }
0x1012   :  { %v2794_v27 = vmul.f32 %v2784_v12, %v4201_v15 }
0x1014   :  { %v3991_v8 = vpop.eup %3990  ;;  %v5437_v41 = vsub.f32 %v5393_v56, %v2794_v27 }
0x1015   :  { %v2863_v52 = vmul.f32 %v3991_v8, %v2845_v49  ;;  %vm2869_vm10 = vweird.f32 %v3991_v8 }
0x1016   :  { %v2810_v10 = vmul.f32 %v5437_v41, %v5437_v41  ;;  %vm2870_vm12 = vmor %vm2868_vm11, %vm2869_vm10 }
0x1017   :  { %v2864_v17 = vmul.f32 %v3991_v8, %v2863_v52 }
0x1018   :  { %v2830_v31 = vsel %vm150_vm0, %v2810_v10, 0.0 }
0x1019   :  { %v2865_v55 = vmul.f32 0.5, %v2864_v17  ;;  %2831 = vadd.xlane.f32.xlu1 %v2830_v31  ;;  %v2787_v58 = vpop.xlane.xlu0 %2786 }
0x101a   :  { %v2795_v59 = vmul.f32 %v2787_v58, %v4201_v15 }
0x101b   :  { %v2866_v16 = vsub.f32 1.5, %v2865_v55 }
0x101c   :  { %v5450_v47 = vsub.f32 %v5398_v44, %v2795_v59 }
0x101d   :  { %v2867_v22 = vmul.f32 %v3991_v8, %v2866_v16 }
0x101e   :  { %v2811_v1 = vmul.f32 %v5450_v47, %v5450_v47 }
0x101f   :  { %v2871_v18 = vsel %vm2870_vm12, %v3991_v8, %v2867_v22 }
0x1020   :  { %v2933_v60 = vmul.f32 %v2871_v18, %v5384_v4  ;;  %v2833_v28 = vsel %vm150_vm0, %v2811_v1, 0.0 }
0x1021   :  { %2834 = vadd.xlane.f32.xlu0 %v2833_v28 }
0x1022   :  { %v2944_v44 = vmul.f32 %v5446_v23, %v2933_v60 }
0x1024   :  { %v2955_v2 = vadd.f32 %v5457_v14, %v2944_v44 }
0x1026   :  { %v2962_v54 = vpack.c.bf16 %v2955_v2, %v2954_v42 }
0x1028   :  { %3684 = vmatmul.msk.bf16.vlgmr.msrb.gmra.mxu1 %vm150_vm0, %v2962_v54 }
0x104a   :  { %v2820_v53 = vpop.xlane.xlu2 %2819 }
0x104b   :  { %v2838_v36 = vmul.f32 %v2820_v53, %v4201_v15 }
0x104d   :  { %v2846_v5 = vadd.f32 1e-05, %v2838_v36 }
0x104f   :  { %3992 = vrsqrt.f32 %v2846_v5  ;;  %vm2878_vm14 = vweird.f32 %v2846_v5 }
0x1052   :  { %v2823_v57 = vpop.xlane.xlu1 %2822 }
0x1053   :  { %v2839_v4 = vmul.f32 %v2823_v57, %v4201_v15 }
0x1055   :  { %v3993_v48 = vpop.eup %3992  ;;  %v2847_v9 = vadd.f32 1e-05, %v2839_v4 }
0x1056   :  { %v2873_v11 = vmul.f32 %v3993_v48, %v2846_v5  ;;  %vm2879_vm13 = vweird.f32 %v3993_v48 }
0x1057   :  { %3994 = vrsqrt.f32 %v2847_v9  ;;  %vm2880_vm1 = vmor %vm2878_vm14, %vm2879_vm13  ;;  %vm2888_vm3 = vweird.f32 %v2847_v9 }
0x1058   :  { %v2874_v46 = vmul.f32 %v3993_v48, %v2873_v11 }
0x105a   :  { %v2875_v45 = vmul.f32 0.5, %v2874_v46 }
0x105c   :  { %v2876_v25 = vsub.f32 1.5, %v2875_v45 }
0x105d   :  { %v3995_v38 = vpop.eup %3994 }
0x105e   :  { %v2877_v37 = vmul.f32 %v3993_v48, %v2876_v25  ;;  %v2883_v13 = vmul.f32 %v3995_v38, %v2847_v9  ;;  %vm2889_vm2 = vweird.f32 %v3995_v38 }
0x105f   :  { %vm2890_vm4 = vmor %vm2888_vm3, %vm2889_vm2 }
0x1060   :  { %v2884_v29 = vmul.f32 %v3995_v38, %v2883_v13  ;;  %v2881_v32 = vsel %vm2880_vm1, %v3993_v48, %v2877_v37 }
0x1061   :  { %v2934_v20 = vmul.f32 %v2881_v32, %v5404_v43 }
0x1062   :  { %v2885_v39 = vmul.f32 0.5, %v2884_v29 }
0x1063   :  { %v2945_v30 = vmul.f32 %v5446_v23, %v2934_v20 }
0x1064   :  { %v2886_v61 = vsub.f32 1.5, %v2885_v39 }
0x1065   :  { %v2956_v7 = vadd.f32 %v5457_v14, %v2945_v30 }
0x1066   :  { %v2887_v63 = vmul.f32 %v3995_v38, %v2886_v61 }
0x1068   :  { %v2891_v21 = vsel %vm2890_vm4, %v3995_v38, %v2887_v63 }
0x1069   :  { %v2935_v6 = vmul.f32 %v2891_v21, %v5410_v0 }
0x106b   :  { %v2946_v49 = vmul.f32 %v5446_v23, %v2935_v6 }
0x106d   :  { %v2957_v26 = vadd.f32 %v5457_v14, %v2946_v49 }
0x106f   :  { %v2963_v51 = vpack.c.bf16 %v2957_v26, %v2956_v7 }
0x1071   :  { %3685 = vmatmul.msk.bf16.gmra.mxu1 %vm150_vm0, %v2963_v51 }
0x107c   :  { %v2826_v40 = vpop.xlane.xlu0 %2825 }
0x107d   :  { %v2840_v43 = vmul.f32 %v2826_v40, %v4201_v15 }
0x107f   :  { %v2848_v12 = vadd.f32 1e-05, %v2840_v43 }
0x1081   :  { %3996 = vrsqrt.f32 %v2848_v12  ;;  %vm2898_vm8 = vweird.f32 %v2848_v12 }
0x1084   :  { %v2829_v27 = vpop.xlane.xlu2 %2828 }
0x1085   :  { %v2841_v8 = vmul.f32 %v2829_v27, %v4201_v15 }
0x1087   :  { %v3997_v0 = vpop.eup %3996  ;;  %v2849_v19 = vadd.f32 1e-05, %v2841_v8 }
0x1088   :  { %v2893_v52 = vmul.f32 %v3997_v0, %v2848_v12  ;;  %vm2899_vm5 = vweird.f32 %v3997_v0 }
0x1089   :  { %3998 = vrsqrt.f32 %v2849_v19  ;;  %vm2900_vm6 = vmor %vm2898_vm8, %vm2899_vm5  ;;  %vm2908_vm9 = vweird.f32 %v2849_v19 }
0x108a   :  { %v2894_v10 = vmul.f32 %v3997_v0, %v2893_v52 }
0x108c   :  { %v2895_v17 = vmul.f32 0.5, %v2894_v10  ;;  %v2832_v31 = vpop.xlane.xlu1 %2831 }
0x108d   :  { %v2842_v33 = vmul.f32 %v2832_v31, %v4201_v15 }
0x108e   :  { %v2896_v55 = vsub.f32 1.5, %v2895_v17 }
0x108f   :  { %v3999_v58 = vpop.eup %3998  ;;  %v2850_v59 = vadd.f32 1e-05, %v2842_v33 }
0x1090   :  { %v2897_v16 = vmul.f32 %v3997_v0, %v2896_v55  ;;  %v2903_v34 = vmul.f32 %v3999_v58, %v2849_v19  ;;  %vm2909_vm7 = vweird.f32 %v3999_v58 }
0x1091   :  { %4000 = vrsqrt.f32 %v2850_v59  ;;  %vm2910_vm10 = vmor %vm2908_vm9, %vm2909_vm7  ;;  %vm2918_vm12 = vweird.f32 %v2850_v59 }
0x1092   :  { %v2904_v22 = vmul.f32 %v3999_v58, %v2903_v34  ;;  %v2901_v1 = vsel %vm2900_vm6, %v3997_v0, %v2897_v16 }
0x1093   :  { %v2936_v42 = vmul.f32 %v2901_v1, %v5417_v24 }
0x1094   :  { %v2905_v18 = vmul.f32 0.5, %v2904_v22  ;;  %v2835_v35 = vpop.xlane.xlu0 %2834  ;;  %v3750_v22 = vld [vmem:[%s5649_s14 + $0x38] sm:$0xff] }
0x1095   :  { %v2843_v60 = vmul.f32 %v2835_v35, %v4201_v15  ;;  %v2947_v4 = vmul.f32 %v5446_v23, %v2936_v42  ;;  %3402 = vmatpush.bf16.msra.mxu0 %v3750_v22 }
0x1096   :  { %v2906_v28 = vsub.f32 1.5, %v2905_v18 }
0x1097   :  { %v4001_v44 = vpop.eup %4000  ;;  %v2851_v2 = vadd.f32 1e-05, %v2843_v60  ;;  %v2958_v45 = vadd.f32 %v5457_v14, %v2947_v4  ;;  %v3748_v4 = vld [vmem:[%s5649_s14 + $0x28] sm:$0xff] }
0x1098   :  { %v2907_v54 = vmul.f32 %v3999_v58, %v2906_v28  ;;  %v2913_v53 = vmul.f32 %v4001_v44, %v2850_v59  ;;  %vm2919_vm11 = vweird.f32 %v4001_v44 }
0x1099   :  { %4002 = vrsqrt.f32 %v2851_v2  ;;  %vm2920_vm13 = vmor %vm2918_vm12, %vm2919_vm11  ;;  %vm2928_vm1 = vweird.f32 %v2851_v2 }
0x109a   :  { %v2911_v36 = vsel %vm2910_vm10, %v3999_v58, %v2907_v54  ;;  %v2914_v5 = vmul.f32 %v4001_v44, %v2913_v53 }
0x109b   :  { %v2937_v57 = vmul.f32 %v2911_v36, %v5430_v50  ;;  %v5488_v50 = vld [vmem:[%s5648_s13 + $0x1] ss:$0 sm:$0xff] }
0x109c   :  { %v2915_v48 = vmul.f32 0.5, %v2914_v5 }
0x109d   :  { %v2948_v9 = vmul.f32 %v5446_v23, %v2937_v57 }
0x109e   :  { %v2916_v11 = vsub.f32 1.5, %v2915_v48 }
0x109f   :  { %v4003_v46 = vpop.eup %4002  ;;  %v2959_v24 = vadd.f32 %v5457_v14, %v2948_v9 }
0x10a0   :  { %v2917_v25 = vmul.f32 %v4001_v44, %v2916_v11  ;;  %v2923_v38 = vmul.f32 %v4003_v46, %v2851_v2  ;;  %vm2929_vm14 = vweird.f32 %v4003_v46  ;;  %v3749_v2 = vld [vmem:[%s5649_s14 + $0x30] sm:$0xff] }
0x10a1   :  { %v2964_v37 = vpack.c.bf16 %v2959_v24, %v2958_v45  ;;  %vm2930_vm2 = vmor %vm2928_vm1, %vm2929_vm14  ;;  %3403 = vmatpush.bf16.msra.mxu0 %v3749_v2 }
0x10a2   :  { %v2924_v13 = vmul.f32 %v4003_v46, %v2923_v38  ;;  %v2921_v29 = vsel %vm2920_vm13, %v4001_v44, %v2917_v25  ;;  %v3747_v38 = vld [vmem:[%s5649_s14 + $0x20] sm:$0xff] }
0x10a3   :  { %3686 = vmatmul.msk.bf16.gmra.mxu1 %vm150_vm0, %v2964_v37  ;;  %v2938_v63 = vmul.f32 %v2921_v29, %v5437_v41 }
0x10a4   :  { %v2925_v32 = vmul.f32 0.5, %v2924_v13 }
0x10a5   :  { %v3009_v39 = vpop.f32.mrf.mxu1  ;;  %v2949_v26 = vmul.f32 %v5446_v23, %v2938_v63  ;;  %3404 = vmatpush.bf16.msra.mxu0 %v3748_v4 }
0x10a6   :  { %v2926_v61 = vsub.f32 1.5, %v2925_v32  ;;  %v5492_v20 = vadd.f32 %v5488_v50, %v3009_v39 }
0x10a7   :  { %v2960_v27 = vadd.f32 %v5457_v14, %v2949_v26 }
0x10a8   :  { %v2927_v21 = vmul.f32 %v4003_v46, %v2926_v61  ;;  %v5496_v6 = vmul.f32 0.70710677, %v5492_v20 }
0x10a9   :  { %3405 = vmatpush.bf16.msra.mxu0 %v3747_v38 }
0x10aa   :  { %v2931_v30 = vsel %vm2930_vm2, %v4003_v46, %v2927_v21  ;;  %v3061_v49 = vand.u32 2147483647, %v5496_v6  ;;  %vm3045_vm11 = vcmp.ge.f32.partialorder %v5496_v6, 0.0 }
0x10ab   :  { %v2939_v7 = vmul.f32 %v2931_v30, %v5450_v47 }
0x10ac   :  { %v3069_v51 = vmul.f32 0.3275911, %v3061_v49  ;;  %v3277_v60 = vsub.f32 0.0, %v3061_v49 }
0x10ad   :  { %v3011_v40 = vpop.f32.mrf.mxu1  ;;  %v2950_v43 = vmul.f32 %v5446_v23, %v2939_v7 }
0x10ae   :  { %v3077_v12 = vadd.f32 1.0, %v3069_v51  ;;  %v5503_v41 = vadd.f32 %v5488_v50, %v3011_v40  ;;  %v3285_v5 = vmul.f32 %v3277_v60, %v3061_v49 }
0x10af   :  { %v2961_v8 = vadd.f32 %v5457_v14, %v2950_v43 }
0x10b0   :  { %4004 = vrcp.f32 %v3077_v12  ;;  %v5508_v0 = vmul.f32 0.70710677, %v5503_v41  ;;  %v3096_v33 = vand.u32 2147483648, %v3077_v12  ;;  %v3094_v58 = vand.u32 2147483647, %v3077_v12 }
0x10b1   :  { %v2965_v19 = vpack.c.bf16 %v2961_v8, %v2960_v27  ;;  %vm3090_vm4 = vweird.f32 %v3077_v12  ;;  %v3293_v45 = vmul.f32 1.442695, %v3285_v5 }
0x10b2   :  { %v3062_v47 = vand.u32 2147483647, %v5508_v0  ;;  %v3097_v59 = vor.u32 1.1754944e-38, %v3096_v33  ;;  %vm3095_vm8 = vcmp.eq.f32.partialorder %v3094_v58, 8.507059e+37  ;;  %vm3046_vm12 = vcmp.ge.f32.partialorder %v5508_v0, 0.0 }
0x10b3   :  { %3687 = vmatmul.msk.bf16.gmra.mxu1 %vm150_vm0, %v2965_v19  ;;  %v3030_v58 = vmul.f32 0.5, %v5503_v41 }
0x10b4   :  { %v3070_v52 = vmul.f32 0.3275911, %v3062_v47  ;;  %v3278_v25 = vsub.f32 0.0, %v3062_v47 }
0x10b6   :  { %v4005_v10 = vpop.eup %4004  ;;  %v3078_v17 = vadd.f32 1.0, %v3070_v52  ;;  %v3286_v39 = vmul.f32 %v3278_v25, %v3062_v47  ;;  %v3053_v47 = vsel %vm3045_vm11, 1.0, %v4071_v3 }
0x10b7   :  { %v3086_v23 = vmul.f32 %v4005_v10, %v3077_v12  ;;  %vm3091_vm3 = vweird.f32 %v4005_v10 }
0x10b8   :  { %4006 = vrcp.f32 %v3078_v17  ;;  %vm3092_vm5 = vmor %vm3090_vm4, %vm3091_vm3  ;;  %v3111_v42 = vand.u32 2147483648, %v3078_v17  ;;  %v3109_v53 = vand.u32 2147483647, %v3078_v17  ;;  %vm3105_vm7 = vweird.f32 %v3078_v17 }
0x10b9   :  { %v3087_v31 = vsub.f32 1.0, %v3086_v23  ;;  %4008 = vpow2.f32 %v3293_v45  ;;  %v3295_v49 = vmul.f32 1.442695, %v3286_v39 }
0x10ba   :  { %v3112_v9 = vor.u32 1.1754944e-38, %v3111_v42  ;;  %vm3110_vm10 = vcmp.eq.f32.partialorder %v3109_v53, 8.507059e+37 }
0x10bb   :  { %v3088_v55 = vmul.f32 %v4005_v10, %v3087_v31  ;;  %4010 = vpow2.f32 %v3295_v49 }
0x10bd   :  { %v3089_v14 = vadd.f32 %v4005_v10, %v3088_v55  ;;  %v3029_v55 = vmul.f32 0.5, %v5492_v20 }
0x10be   :  { %v4007_v16 = vpop.eup %4006 }
0x10bf   :  { %v3093_v34 = vsel %vm3092_vm5, %v4005_v10, %v3089_v14  ;;  %v3101_v18 = vmul.f32 %v4007_v16, %v3078_v17  ;;  %vm3106_vm6 = vweird.f32 %v4007_v16  ;;  %v4009_v26 = vpop.eup %4008  ;;  %v3054_v17 = vsel %vm3046_vm12, 1.0, %v4071_v3 }
0x10c0   :  { %v3098_v1 = vsel %vm3095_vm8, %v3097_v59, %v3093_v34  ;;  %vm3107_vm9 = vmor %vm3105_vm7, %vm3106_vm6 }
0x10c1   :  { %v3205_v35 = vmul.f32 1.0614054, %v3098_v1  ;;  %v3102_v28 = vsub.f32 1.0, %v3101_v18  ;;  %v4011_v19 = vpop.eup %4010 }
0x10c3   :  { %v3213_v44 = vadd.f32 -1.4531521, %v3205_v35  ;;  %v3103_v54 = vmul.f32 %v4007_v16, %v3102_v28 }
0x10c5   :  { %v3221_v36 = vmul.f32 %v3213_v44, %v3098_v1  ;;  %v3104_v57 = vadd.f32 %v4007_v16, %v3103_v54 }
0x10c7   :  { %v3229_v48 = vadd.f32 1.4214138, %v3221_v36  ;;  %v3108_v11 = vsel %vm3107_vm9, %v4007_v16, %v3104_v57 }
0x10c8   :  { %v3113_v24 = vsel %vm3110_vm10, %v3112_v9, %v3108_v11 }
0x10c9   :  { %v3237_v46 = vmul.f32 %v3229_v48, %v3098_v1  ;;  %v3206_v37 = vmul.f32 1.0614054, %v3113_v24 }
0x10cb   :  { %v3245_v13 = vadd.f32 -0.28449672, %v3237_v46  ;;  %v3214_v29 = vadd.f32 -1.4531521, %v3206_v37 }
0x10cd   :  { %v3253_v32 = vmul.f32 %v3245_v13, %v3098_v1  ;;  %v3222_v61 = vmul.f32 %v3214_v29, %v3113_v24 }
0x10cf   :  { %v3261_v63 = vadd.f32 0.2548296, %v3253_v32  ;;  %v3230_v21 = vadd.f32 1.4214138, %v3222_v61 }
0x10d1   :  { %v3269_v30 = vmul.f32 %v3261_v63, %v3098_v1  ;;  %v3238_v7 = vmul.f32 %v3230_v21, %v3113_v24 }
0x10d3   :  { %v3309_v51 = vmul.f32 %v4009_v26, %v3269_v30  ;;  %v3246_v40 = vadd.f32 -0.28449672, %v3238_v7 }
0x10d5   :  { %v3254_v43 = vmul.f32 %v3246_v40, %v3113_v24  ;;  %v3317_v12 = vsub.f32 1.0, %v3309_v51 }
0x10d7   :  { %v3262_v27 = vadd.f32 0.2548296, %v3254_v43  ;;  %v3325_v52 = vmul.f32 %v3317_v12, %v3053_v47 }
0x10d9   :  { %v3270_v8 = vmul.f32 %v3262_v27, %v3113_v24  ;;  %v3333_v31 = vadd.f32 1.0, %v3325_v52 }
0x10db   :  { %v3310_v10 = vmul.f32 %v4011_v19, %v3270_v8  ;;  %v3341_v14 = vmul.f32 %v3333_v31, %v3029_v55 }
0x10dd   :  { %v3318_v23 = vsub.f32 1.0, %v3310_v10 }
0x10df   :  { %v3326_v33 = vmul.f32 %v3318_v23, %v3054_v17 }
0x10e1   :  { %v3334_v6 = vadd.f32 1.0, %v3326_v33 }
0x10e3   :  { %v3342_v59 = vmul.f32 %v3334_v6, %v3030_v58 }
0x10e5   :  { %v3349_v16 = vpack.c.bf16 %v3342_v59, %v3341_v14 }
0x10e7   :  { %3712 = vmatmul.msk.bf16.vlgmr.msra.gmra.mxu0 %vm1710_vm15, %v3349_v16 }
0x10ee   :  { %v3014_v34 = vpop.f32.mrf.mxu1 }
0x10ef   :  { %v5532_v22 = vadd.f32 %v5488_v50, %v3014_v34 }
0x10f1   :  { %v5535_v0 = vmul.f32 0.70710677, %v5532_v22 }
0x10f3   :  { %v3063_v1 = vand.u32 2147483647, %v5535_v0  ;;  %vm3047_vm6 = vcmp.ge.f32.partialorder %v5535_v0, 0.0 }
0x10f5   :  { %v3071_v18 = vmul.f32 0.3275911, %v3063_v1  ;;  %v3279_v25 = vsub.f32 0.0, %v3063_v1 }
0x10f6   :  { %v3016_v35 = vpop.f32.mrf.mxu1 }
0x10f7   :  { %v3079_v20 = vadd.f32 1.0, %v3071_v18  ;;  %v5539_v41 = vadd.f32 %v5488_v50, %v3016_v35  ;;  %v3287_v61 = vmul.f32 %v3279_v25, %v3063_v1 }
0x10f9   :  { %4012 = vrcp.f32 %v3079_v20  ;;  %v5542_v60 = vmul.f32 0.70710677, %v5539_v41  ;;  %v3126_v36 = vand.u32 2147483648, %v3079_v20  ;;  %v3124_v57 = vand.u32 2147483647, %v3079_v20 }
0x10fa   :  { %vm3120_vm14 = vweird.f32 %v3079_v20  ;;  %v3297_v26 = vmul.f32 1.442695, %v3287_v61 }
0x10fb   :  { %v3064_v28 = vand.u32 2147483647, %v5542_v60  ;;  %v3127_v48 = vor.u32 1.1754944e-38, %v3126_v36  ;;  %vm3125_vm2 = vcmp.eq.f32.partialorder %v3124_v57, 8.507059e+37  ;;  %vm3048_vm7 = vcmp.ge.f32.partialorder %v5542_v60, 0.0 }
0x10fd   :  { %v3072_v44 = vmul.f32 0.3275911, %v3064_v28  ;;  %v3280_v40 = vsub.f32 0.0, %v3064_v28 }
0x10ff   :  { %v4013_v42 = vpop.eup %4012  ;;  %v3080_v54 = vadd.f32 1.0, %v3072_v44  ;;  %v3288_v19 = vmul.f32 %v3280_v40, %v3064_v28 }
0x1100   :  { %v3116_v2 = vmul.f32 %v4013_v42, %v3079_v20  ;;  %vm3121_vm13 = vweird.f32 %v4013_v42  ;;  %v3055_v20 = vsel %vm3047_vm6, 1.0, %v4071_v3 }
0x1101   :  { %4014 = vrcp.f32 %v3080_v54  ;;  %vm3122_vm1 = vmor %vm3120_vm14, %vm3121_vm13  ;;  %v3141_v13 = vand.u32 2147483648, %v3080_v54  ;;  %v3139_v32 = vand.u32 2147483647, %v3080_v54  ;;  %vm3135_vm4 = vweird.f32 %v3080_v54 }
0x1102   :  { %v3117_v53 = vsub.f32 1.0, %v3116_v2  ;;  %4016 = vpow2.f32 %v3297_v26  ;;  %v3299_v17 = vmul.f32 1.442695, %v3288_v19 }
0x1103   :  { %v3142_v30 = vor.u32 1.1754944e-38, %v3141_v13  ;;  %vm3140_vm8 = vcmp.eq.f32.partialorder %v3139_v32, 8.507059e+37 }
0x1104   :  { %v3118_v5 = vmul.f32 %v4013_v42, %v3117_v53  ;;  %4018 = vpow2.f32 %v3299_v17 }
0x1106   :  { %v3119_v4 = vadd.f32 %v4013_v42, %v3118_v5 }
0x1107   :  { %v4015_v9 = vpop.eup %4014 }
0x1108   :  { %v3123_v11 = vsel %vm3122_vm1, %v4013_v42, %v3119_v4  ;;  %v3131_v45 = vmul.f32 %v4015_v9, %v3080_v54  ;;  %vm3136_vm3 = vweird.f32 %v4015_v9  ;;  %v4017_v33 = vpop.eup %4016  ;;  %v3056_v54 = vsel %vm3048_vm7, 1.0, %v4071_v3 }
0x1109   :  { %v3128_v46 = vsel %vm3125_vm2, %v3127_v48, %v3123_v11  ;;  %vm3137_vm5 = vmor %vm3135_vm4, %vm3136_vm3  ;;  %v3031_v48 = vmul.f32 0.5, %v5532_v22 }
0x110a   :  { %v3207_v24 = vmul.f32 1.0614054, %v3128_v46  ;;  %v3132_v38 = vsub.f32 1.0, %v3131_v45  ;;  %v4019_v35 = vpop.eup %4018 }
0x110c   :  { %v3215_v37 = vadd.f32 -1.4531521, %v3207_v24  ;;  %v3133_v29 = vmul.f32 %v4015_v9, %v3132_v38 }
0x110e   :  { %v3223_v39 = vmul.f32 %v3215_v37, %v3128_v46  ;;  %v3134_v63 = vadd.f32 %v4015_v9, %v3133_v29 }
0x1110   :  { %v3231_v21 = vadd.f32 1.4214138, %v3223_v39  ;;  %v3138_v49 = vsel %vm3137_vm5, %v4015_v9, %v3134_v63  ;;  %v3032_v9 = vmul.f32 0.5, %v5539_v41 }
0x1111   :  { %v3143_v51 = vsel %vm3140_vm8, %v3142_v30, %v3138_v49 }
0x1112   :  { %v3239_v7 = vmul.f32 %v3231_v21, %v3128_v46  ;;  %v3208_v43 = vmul.f32 1.0614054, %v3143_v51 }
0x1114   :  { %v3247_v12 = vadd.f32 -0.28449672, %v3239_v7  ;;  %v3216_v27 = vadd.f32 -1.4531521, %v3208_v43 }
0x1116   :  { %v3255_v8 = vmul.f32 %v3247_v12, %v3128_v46  ;;  %v3224_v47 = vmul.f32 %v3216_v27, %v3143_v51 }
0x1118   :  { %v3263_v52 = vadd.f32 0.2548296, %v3255_v8  ;;  %v3232_v10 = vadd.f32 1.4214138, %v3224_v47 }
0x111a   :  { %v3271_v23 = vmul.f32 %v3263_v52, %v3128_v46  ;;  %v3240_v31 = vmul.f32 %v3232_v10, %v3143_v51 }
0x111c   :  { %v3311_v55 = vmul.f32 %v4017_v33, %v3271_v23  ;;  %v3248_v58 = vadd.f32 -0.28449672, %v3240_v31 }
0x111e   :  { %v3256_v6 = vmul.f32 %v3248_v58, %v3143_v51  ;;  %v3319_v59 = vsub.f32 1.0, %v3311_v55 }
0x1120   :  { %v3019_v14 = vpop.f32.mrf.mxu1  ;;  %v3264_v16 = vadd.f32 0.2548296, %v3256_v6  ;;  %v3327_v28 = vmul.f32 %v3319_v59, %v3055_v20 }
0x1121   :  { %v5547_v34 = vadd.f32 %v5488_v50, %v3019_v14 }
0x1122   :  { %v3272_v1 = vmul.f32 %v3264_v16, %v3143_v51  ;;  %v3335_v36 = vadd.f32 1.0, %v3327_v28 }
0x1123   :  { %v5550_v18 = vmul.f32 0.70710677, %v5547_v34 }
0x1124   :  { %v3312_v44 = vmul.f32 %v4019_v35, %v3272_v1  ;;  %v3343_v46 = vmul.f32 %v3335_v36, %v3031_v48 }
0x1125   :  { %v3065_v42 = vand.u32 2147483647, %v5550_v18 }
0x1126   :  { %v3320_v2 = vsub.f32 1.0, %v3312_v44 }
0x1127   :  { %v3073_v0 = vmul.f32 0.3275911, %v3065_v42  ;;  %v3281_v52 = vsub.f32 0.0, %v3065_v42 }
0x1128   :  { %v3021_v53 = vpop.f32.mrf.mxu1  ;;  %v3328_v5 = vmul.f32 %v3320_v2, %v3056_v54 }
0x1129   :  { %v3081_v57 = vadd.f32 1.0, %v3073_v0  ;;  %v5557_v4 = vadd.f32 %v5488_v50, %v3021_v53  ;;  %v3289_v6 = vmul.f32 %v3281_v52, %v3065_v42 }
0x112a   :  { %v3336_v11 = vadd.f32 1.0, %v3328_v5 }
0x112b   :  { %4020 = vrcp.f32 %v3081_v57  ;;  %v5562_v60 = vmul.f32 0.70710677, %v5557_v4  ;;  %v3156_v61 = vand.u32 2147483648, %v3081_v57  ;;  %v3154_v30 = vand.u32 2147483647, %v3081_v57 }
0x112c   :  { %v3344_v45 = vmul.f32 %v3336_v11, %v3032_v9  ;;  %vm3150_vm10 = vweird.f32 %v3081_v57  ;;  %v3301_v54 = vmul.f32 1.442695, %v3289_v6 }
0x112d   :  { %v5565_v24 = vand.u32 2147483647, %v5562_v60  ;;  %v3157_v51 = vor.u32 1.1754944e-38, %v3156_v61  ;;  %vm3155_vm12 = vcmp.eq.f32.partialorder %v3154_v30, 8.507059e+37 }
0x112e   :  { %v3350_v25 = vpack.c.bf16 %v3344_v45, %v3343_v46 }
0x112f   :  { %v3074_v38 = vmul.f32 0.3275911, %v5565_v24  ;;  %v3282_v44 = vsub.f32 0.0, %v5565_v24 }
0x1130   :  { %v3024_v37 = vpop.f32.mrf.mxu1  ;;  %3713 = vmatmul.msk.bf16.gmra.mxu0 %vm1710_vm15, %v3350_v25 }
0x1131   :  { %v4021_v13 = vpop.eup %4020  ;;  %v5569_v29 = vadd.f32 %v5488_v50, %v3024_v37  ;;  %v3082_v41 = vadd.f32 1.0, %v3074_v38  ;;  %v3290_v46 = vmul.f32 %v3282_v44, %v5565_v24 }
0x1132   :  { %v3146_v22 = vmul.f32 %v4021_v13, %v3081_v57  ;;  %vm3151_vm9 = vweird.f32 %v4021_v13 }
0x1133   :  { %v5573_v32 = vmul.f32 0.70710677, %v5569_v29  ;;  %4022 = vrcp.f32 %v3082_v41  ;;  %vm3152_vm11 = vmor %vm3150_vm10, %vm3151_vm9  ;;  %v3171_v31 = vand.u32 2147483648, %v3082_v41  ;;  %v3169_v55 = vand.u32 2147483647, %v3082_v41 }
0x1134   :  { %v3147_v39 = vsub.f32 1.0, %v3146_v22  ;;  %vm3165_vm14 = vweird.f32 %v3082_v41  ;;  %v3303_v61 = vmul.f32 1.442695, %v3290_v46  ;;  %vm3049_vm9 = vcmp.ge.f32.partialorder %v5550_v18, 0.0 }
0x1135   :  { %v5576_v63 = vand.u32 2147483647, %v5573_v32  ;;  %v3172_v35 = vor.u32 1.1754944e-38, %v3171_v31  ;;  %vm3170_vm2 = vcmp.eq.f32.partialorder %v3169_v55, 8.507059e+37 }
0x1136   :  { %v3148_v21 = vmul.f32 %v4021_v13, %v3147_v39 }
0x1137   :  { %v3075_v49 = vmul.f32 0.3275911, %v5576_v63  ;;  %v3283_v24 = vsub.f32 0.0, %v5576_v63 }
0x1138   :  { %v3149_v7 = vadd.f32 %v4021_v13, %v3148_v21  ;;  %v3026_v26 = vpop.f32.mrf.mxu1 }
0x1139   :  { %v3083_v40 = vadd.f32 1.0, %v3075_v49  ;;  %v5580_v43 = vadd.f32 %v5488_v50, %v3026_v26  ;;  %v4023_v12 = vpop.eup %4022 }
0x113a   :  { %v3153_v27 = vsel %vm3152_vm11, %v4021_v13, %v3149_v7  ;;  %v3161_v19 = vmul.f32 %v4023_v12, %v3082_v41  ;;  %vm3166_vm13 = vweird.f32 %v4023_v12 }
0x113b   :  { %v3158_v8 = vsel %vm3155_vm12, %v3157_v51, %v3153_v27  ;;  %4024 = vrcp.f32 %v3083_v40  ;;  %v5583_v23 = vmul.f32 0.70710677, %v5580_v43  ;;  %vm3167_vm1 = vmor %vm3165_vm14, %vm3166_vm13  ;;  %v3186_v42 = vand.u32 2147483648, %v3083_v40 }
0x113c   :  { %v3209_v47 = vmul.f32 1.0614054, %v3158_v8  ;;  %v3162_v10 = vsub.f32 1.0, %v3161_v19  ;;  %v3184_v9 = vand.u32 2147483647, %v3083_v40  ;;  %vm3180_vm4 = vweird.f32 %v3083_v40 }
0x113d   :  { %v5586_v50 = vand.u32 2147483647, %v5583_v23  ;;  %v3187_v37 = vor.u32 1.1754944e-38, %v3186_v42  ;;  %vm3050_vm12 = vcmp.ge.f32.partialorder %v5562_v60, 0.0  ;;  %vm3051_vm13 = vcmp.ge.f32.partialorder %v5573_v32, 0.0 }
0x113e   :  { %v3217_v17 = vadd.f32 -1.4531521, %v3209_v47  ;;  %v3163_v33 = vmul.f32 %v4023_v12, %v3162_v10  ;;  %vm3185_vm8 = vcmp.eq.f32.partialorder %v3184_v9, 8.507059e+37  ;;  %vm3052_vm14 = vcmp.ge.f32.partialorder %v5583_v23, 0.0 }
0x113f   :  { %v3076_v16 = vmul.f32 0.3275911, %v5586_v50  ;;  %v3284_v44 = vsub.f32 0.0, %v5586_v50  ;;  %v3036_v32 = vmul.f32 0.5, %v5580_v43 }
0x1140   :  { %v3225_v58 = vmul.f32 %v3217_v17, %v3158_v8  ;;  %v3164_v59 = vadd.f32 %v4023_v12, %v3163_v33  ;;  %v3291_v33 = vmul.f32 %v3283_v24, %v5576_v63  ;;  %v3057_v63 = vsel %vm3049_vm9, 1.0, %v4071_v3 }
0x1141   :  { %v4025_v14 = vpop.eup %4024  ;;  %v3084_v2 = vadd.f32 1.0, %v3076_v16 }
0x1142   :  { %v3233_v1 = vadd.f32 1.4214138, %v3225_v58  ;;  %v3176_v20 = vmul.f32 %v4025_v14, %v3083_v40  ;;  %v3168_v28 = vsel %vm3167_vm1, %v4023_v12, %v3164_v59  ;;  %vm3181_vm3 = vweird.f32 %v4025_v14 }
0x1143   :  { %v3173_v53 = vsel %vm3170_vm2, %v3172_v35, %v3168_v28  ;;  %4026 = vrcp.f32 %v3084_v2  ;;  %vm3182_vm5 = vmor %vm3180_vm4, %vm3181_vm3  ;;  %v3201_v47 = vand.u32 2147483648, %v3084_v2  ;;  %v3199_v17 = vand.u32 2147483647, %v3084_v2 }
0x1144   :  { %v3241_v0 = vmul.f32 %v3233_v1, %v3158_v8  ;;  %v3177_v36 = vsub.f32 1.0, %v3176_v20  ;;  %v3210_v5 = vmul.f32 1.0614054, %v3173_v53  ;;  %4028 = vpow2.f32 %v3301_v54 }
0x1145   :  { %4030 = vpow2.f32 %v3303_v61  ;;  %vm3195_vm7 = vweird.f32 %v3084_v2  ;;  %vm3200_vm11 = vcmp.eq.f32.partialorder %v3199_v17, 8.507059e+37  ;;  %v3305_v20 = vmul.f32 1.442695, %v3291_v33 }
0x1146   :  { %v3249_v57 = vadd.f32 -0.28449672, %v3241_v0  ;;  %v3178_v48 = vmul.f32 %v4025_v14, %v3177_v36  ;;  %v3218_v11 = vadd.f32 -1.4531521, %v3210_v5  ;;  %v3035_v17 = vmul.f32 0.5, %v5569_v29 }
0x1147   :  { %4032 = vpow2.f32 %v3305_v20  ;;  %vm3433_vm1 = vcmask 1040384   ;;  %vm3437_vm2 = vcmask 254976  }
0x1148   :  { %v3257_v45 = vmul.f32 %v3249_v57, %v3158_v8  ;;  %v3179_v25 = vadd.f32 %v4025_v14, %v3178_v48  ;;  %v3226_v38 = vmul.f32 %v3218_v11, %v3173_v53  ;;  %v3292_v57 = vmul.f32 %v3284_v44, %v5586_v50 }
0x1149   :  { %v4027_v41 = vpop.eup %4026 }
0x114a   :  { %v3265_v13 = vadd.f32 0.2548296, %v3257_v45  ;;  %v3183_v22 = vsel %vm3182_vm5, %v4025_v14, %v3179_v25  ;;  %v3234_v39 = vadd.f32 1.4214138, %v3226_v38  ;;  %v3191_v7 = vmul.f32 %v4027_v41, %v3084_v2  ;;  %v4029_v51 = vpop.eup %4028 }
0x114b   :  { %v3188_v21 = vsel %vm3185_vm8, %v3187_v37, %v3183_v22  ;;  %vm3196_vm6 = vweird.f32 %v4027_v41  ;;  %v3202_v14 = vor.u32 1.1754944e-38, %v3201_v47  ;;  %v4031_v1 = vpop.eup %4030  ;;  %v3033_v38 = vmul.f32 0.5, %v5547_v34 }
0x114c   :  { %v3273_v30 = vmul.f32 %v3265_v13, %v3158_v8  ;;  %v3211_v49 = vmul.f32 1.0614054, %v3188_v21  ;;  %v3242_v26 = vmul.f32 %v3234_v39, %v3173_v53  ;;  %v3192_v27 = vsub.f32 1.0, %v3191_v7  ;;  %vm3197_vm10 = vmor %vm3195_vm7, %vm3196_vm6 }
0x114d   :  { %v3034_v37 = vmul.f32 0.5, %v5557_v4  ;;  %v3307_v13 = vmul.f32 1.442695, %v3292_v57  ;;  %vm3505_vm5 = vcmask 74752  }
0x114e   :  { %v3219_v12 = vadd.f32 -1.4531521, %v3211_v49  ;;  %v3313_v40 = vmul.f32 %v4029_v51, %v3273_v30  ;;  %v3250_v19 = vadd.f32 -0.28449672, %v3242_v26  ;;  %v3193_v10 = vmul.f32 %v4027_v41, %v3192_v27 }
0x114f   :  { %4034 = vpow2.f32 %v3307_v13  ;;  %v3059_v51 = vsel %vm3051_vm13, 1.0, %v4071_v3 }
0x1150   :  { %v3227_v52 = vmul.f32 %v3219_v12, %v3188_v21  ;;  %v3258_v31 = vmul.f32 %v3250_v19, %v3173_v53  ;;  %v3194_v55 = vadd.f32 %v4027_v41, %v3193_v10  ;;  %v3321_v58 = vsub.f32 1.0, %v3313_v40 }
0x1151   :  { %v3060_v19 = vsel %vm3052_vm14, 1.0, %v4071_v3 }
0x1152   :  { %v3235_v8 = vadd.f32 1.4214138, %v3227_v52  ;;  %v3266_v6 = vadd.f32 0.2548296, %v3258_v31  ;;  %v3198_v16 = vsel %vm3197_vm10, %v4027_v41, %v3194_v55  ;;  %v3329_v2 = vmul.f32 %v3321_v58, %v3057_v63  ;;  %v4033_v41 = vpop.eup %4032 }
0x1153   :  { %v3203_v28 = vsel %vm3200_vm11, %v3202_v14, %v3198_v16  ;;  %v3778_v16 = vld [vmem:[%s5672_s23 + $0x1] ss:$0 sm:$0xff] }
0x1154   :  { %v3243_v59 = vmul.f32 %v3235_v8, %v3188_v21  ;;  %v3274_v35 = vmul.f32 %v3266_v6, %v3173_v53  ;;  %v3212_v54 = vmul.f32 1.0614054, %v3203_v28  ;;  %v3058_v53 = vsel %vm3050_vm12, 1.0, %v4071_v3 }
0x1155   :  { %v3337_v11 = vadd.f32 1.0, %v3329_v2  ;;  %v4035_v4 = vpop.eup %4034 }
0x1156   :  { %v3251_v0 = vadd.f32 -0.28449672, %v3243_v59  ;;  %v3314_v18 = vmul.f32 %v4031_v1, %v3274_v35  ;;  %v3220_v5 = vadd.f32 -1.4531521, %v3212_v54 }
0x1157   :  { %v3345_v39 = vmul.f32 %v3337_v11, %v3033_v38 }
0x1158   :  { %v3259_v36 = vmul.f32 %v3251_v0, %v3188_v21  ;;  %v3322_v42 = vsub.f32 1.0, %v3314_v18  ;;  %v3228_v9 = vmul.f32 %v3220_v5, %v3203_v28  ;;  %v3751_v18 = vld [vmem:[%s5653_s18] sm:$0xff] }
0x115a   :  { %v3267_v48 = vadd.f32 0.2548296, %v3259_v36  ;;  %v3330_v46 = vmul.f32 %v3322_v42, %v3058_v53  ;;  %v3236_v25 = vadd.f32 1.4214138, %v3228_v9 }
0x115c   :  { %v3275_v45 = vmul.f32 %v3267_v48, %v3188_v21  ;;  %v3338_v60 = vadd.f32 1.0, %v3330_v46  ;;  %v3244_v22 = vmul.f32 %v3236_v25, %v3203_v28 }
0x115e   :  { %v3346_v61 = vmul.f32 %v3338_v60, %v3034_v37  ;;  %v3315_v30 = vmul.f32 %v4033_v41, %v3275_v45  ;;  %v3252_v50 = vadd.f32 -0.28449672, %v3244_v22  ;;  %v3779_v45 = vld [vmem:[%s5651_s16] ss:$0 sm:$0xff] }
0x115f   :  { %v3781_v22 = vld [vmem:[%s5654_s19] ss:$0 sm:$0xff] }
0x1160   :  { %v3351_v49 = vpack.c.bf16 %v3346_v61, %v3345_v39  ;;  %v3260_v7 = vmul.f32 %v3252_v50, %v3203_v28  ;;  %v3323_v21 = vsub.f32 1.0, %v3315_v30 }
0x1162   :  { %3714 = vmatmul.msk.bf16.gmra.mxu0 %vm1710_vm15, %v3351_v49  ;;  %v3268_v26 = vadd.f32 0.2548296, %v3260_v7  ;;  %v3331_v12 = vmul.f32 %v3323_v21, %v3059_v51 }
0x1164   :  { %v3407_v34 = vpop.f32.mrf.mxu0  ;;  %v3276_v24 = vmul.f32 %v3268_v26, %v3203_v28  ;;  %v3339_v47 = vadd.f32 1.0, %v3331_v12 }
0x1166   :  { %v3316_v27 = vmul.f32 %v4035_v4, %v3276_v24  ;;  %v3347_v33 = vmul.f32 %v3339_v47, %v3035_v17 }
0x1168   :  { %v3324_v40 = vsub.f32 1.0, %v3316_v27 }
0x116a   :  { %v3332_v52 = vmul.f32 %v3324_v40, %v3060_v19 }
0x116c   :  { %v3408_v10 = vpop.f32.mrf.mxu0  ;;  %v3340_v31 = vadd.f32 1.0, %v3332_v52 }
0x116e   :  { %v3348_v8 = vmul.f32 %v3340_v31, %v3036_v32 }
0x1170   :  { %v3352_v55 = vpack.c.bf16 %v3348_v8, %v3347_v33 }
0x1172   :  { %3715 = vmatmul.msk.bf16.gmra.mxu0 %vm1710_vm15, %v3352_v55 }
0x11ad   :  { %v3410_v58 = vpop.f32.mrf.mxu0 }
0x11ae   :  { %v3421_v3 = vadd.f32 %v3410_v58, %v5370_v62 }
0x11b0   :  { %v3428_v1 = vadd.f32 %v3778_v16, %v3421_v3 }
0x11b5   :  { %v3412_v6 = vpop.f32.mrf.mxu0 }
0x11df   :  { %v3414_v23 = vpop.f32.mrf.mxu0 }
0x11e7   :  { %v3415_v14 = vpop.f32.mrf.mxu0 }
0x11ef   :  { %v3417_v59 = vpop.f32.mrf.mxu0 }
0x11f0   :  { %v3422_v29 = vadd.f32 %v3417_v59, %v5393_v56  ;;  %v3752_v56 = vld [vmem:[%s5653_s18 + $0x8] sm:$0xff] }
0x11f1   :  { %3498 = vmatpush.bf16.msrb.mxu2 %v3752_v56 }
0x11f2   :  { %v3429_v43 = vadd.f32 %v3778_v16, %v3422_v29 }
0x11f4   :  { %v3431_v35 = vrot.slane %v3429_v43, 7 }
0x11f5   :  { %3499 = vmatpush.bf16.msrb.mxu2 %v3751_v18 }
0x11f6   :  { %v3434_v20 = vsel %vm3433_vm1, %v3428_v1, %v3431_v35 }
0x11f7   :  { %v3419_v28 = vpop.f32.mrf.mxu0  ;;  %v3438_v44 = vsel %vm3437_vm2, %v3434_v20, 0.0 }
0x11f8   :  { %3439 = vadd.xlane.f32.xlu2 %v3438_v44 }
0x126b   :  { %v3440_v63 = vpop.xlane.xlu2 %3439 }
0x126c   :  { %v3441_v0 = vmul.f32 %v3440_v63, %v4201_v15 }
0x126e   :  { %v3442_v54 = vsub.f32 %v3434_v20, %v3441_v0 }
0x1270   :  { %v3443_v62 = vmul.f32 %v3442_v54, %v3442_v54 }
0x1272   :  { %v3444_v2 = vsel %vm3437_vm2, %v3443_v62, 0.0 }
0x1273   :  { %3445 = vadd.xlane.f32.xlu1 %v3444_v2 }
0x12e6   :  { %v3446_v36 = vpop.xlane.xlu1 %3445 }
0x12e7   :  { %v3447_v5 = vmul.f32 %v3446_v36, %v4201_v15  ;;  %v3780_v15 = vld [vmem:[%s5652_s17] ss:$0 sm:$0xff] }
0x12e9   :  { %v3448_v42 = vadd.f32 1e-05, %v3447_v5 }
0x12eb   :  { %4036 = vrsqrt.f32 %v3448_v42  ;;  %vm3455_vm3 = vweird.f32 %v3448_v42 }
0x12f1   :  { %v4037_v57 = vpop.eup %4036 }
0x12f2   :  { %v3450_v53 = vmul.f32 %v4037_v57, %v3448_v42  ;;  %vm3456_vm15 = vweird.f32 %v4037_v57 }
0x12f3   :  { %vm3457_vm4 = vmor %vm3455_vm3, %vm3456_vm15 }
0x12f4   :  { %v3451_v48 = vmul.f32 %v4037_v57, %v3450_v53 }
0x12f6   :  { %v3452_v9 = vmul.f32 0.5, %v3451_v48 }
0x12f8   :  { %v3453_v11 = vsub.f32 1.5, %v3452_v9 }
0x12fa   :  { %v3454_v46 = vmul.f32 %v4037_v57, %v3453_v11 }
0x12fc   :  { %v3458_v25 = vsel %vm3457_vm4, %v4037_v57, %v3454_v46 }
0x12fd   :  { %v3459_v38 = vmul.f32 %v3458_v25, %v3442_v54 }
0x12ff   :  { %v3463_v37 = vmul.f32 %v3779_v45, %v3459_v38 }
0x1301   :  { %v3467_v60 = vadd.f32 %v3780_v15, %v3463_v37 }
0x1303   :  { %v3468_v13 = vpack.c.bf16 %v3467_v60, %v3467_v60 }
0x1305   :  { %3725 = vmatmul.msk.bf16.vlgmr.msrb.gmra.mxu2 %vm150_vm0, %v3468_v13 }
0x1388   :  { %v3501_v41 = vpop.f32.mrf.mxu2 }
0x1389   :  { %v3502_v39 = vadd.f32 %v3781_v22, %v3501_v41 }
0x138b   :  { %3506 = vst.msk [vmem:[#allocation2] sm:$0x3] %vm3505_vm5, %v3502_v39 }
0x138c   :  { %3517 = dma.vmem_to_hbm [thread:$0]  %s3513_s12, 32, %s3515_s15, [#allocation3]  }
0x1390   :  { %v3503_v61 = vpop.f32.mrf.mxu2 }
0x1391   :  { %4064 = dma.done.wait [#allocation3], 32  }
0x1392   :  { %4065 = vsyncadd [#allocation3], 4294967264 }
0x1393   :  { %3522 = vsyncpa [#allocation3], 1 }

</bundles_post_ra>
